<compile_context>
chip_gen: v5e
topology: v5e:2x2
jax: 0.10.0
libtpu: 0.0.40
codegen_flags: <defaults>
</compile_context>

<pallas_src>
import functools
import math

import jax
import jax.numpy as jnp
from jax.experimental import pallas as pl
from jax.experimental.pallas import tpu as pltpu

NUM_CLASSES = 5
NUM_ANCHORS = 4


# ----------------------------------------------------------------------------
# Pallas kernel: direct stride-1 KxK convolution on a pre-padded NHWC image.
# One grid step == one batch element.  One matmul per tap over the full slab.
# ----------------------------------------------------------------------------
def _conv_kernel(x_ref, w_ref, b_ref, o_ref, *, K, Hout, Wout, relu):
    # x_ref: (Hin, Win, Cin)    padded image for this batch element (bf16)
    # w_ref: (K*K, Cin, Cout)   taps flattened on the leading axis (bf16)
    # b_ref: (1, Cout)          f32 bias
    # o_ref: (Hout*Wout, Cout)  lane-dense 2-D output slab
    cin = x_ref.shape[-1]
    cout = o_ref.shape[-1]
    acc = jnp.zeros((Hout * Wout, cout), jnp.float32)
    for kh in range(K):                      # K*K <= 9 taps: tiny static unroll
        for kw in range(K):
            patch = x_ref[kh:kh + Hout, kw:kw + Wout, :]      # (Hout, Wout, Cin)
            lhs = patch.reshape(Hout * Wout, cin)             # whole-slab matmul lhs
            acc = acc + jnp.dot(lhs, w_ref[kh * K + kw],
                                preferred_element_type=jnp.float32)
    acc = acc + b_ref[...]                   # bias applied once to the whole tile
    if relu:
        acc = jnp.maximum(acc, 0.0)
    o_ref[...] = acc.astype(o_ref.dtype)     # single store of the whole tile


def conv2d_pallas(x, w, b, *, stride=1, padding=0, relu=False,
                  out_dtype=jnp.bfloat16):
    """x: (B, H, W, Cin); w: (K, K, Cin, Cout); b: (Cout,). Returns NHWC output.

    Stride > 1 is folded into the channel dimension with a space-to-depth
    transform (pure JAX glue), so the Pallas kernel always runs stride-1 and
    only computes the outputs that are actually kept.
    """
    B, H, W, Cin = x.shape
    K = w.shape[0]
    Cout = w.shape[-1]
    s = stride

    xp = jnp.pad(x, ((0, 0), (padding, padding), (padding, padding), (0, 0)))
    Hp, Wp = H + 2 * padding, W + 2 * padding
    Hout = (Hp - K) // s + 1
    Wout = (Wp - K) // s + 1

    if s > 1:
        # --- fold stride into channels (space-to-depth), all in plain JAX ---
        Kq = -(-K // s)                      # ceil(K / s)
        Hq = Hout + Kq - 1
        Wq = Wout + Kq - 1
        pad_h = Hq * s - Hp
        pad_w = Wq * s - Wp
        assert pad_h >= 0 and pad_w >= 0
        xp = jnp.pad(xp, ((0, 0), (0, pad_h), (0, pad_w), (0, 0)))
        # y[b, i, j, (ph*s + pw)*Cin + c] = xp[b, s*i + ph, s*j + pw, c]
        xp = xp.reshape(B, Hq, s, Wq, s, Cin)
        xp = xp.transpose(0, 1, 3, 2, 4, 5).reshape(B, Hq, Wq, s * s * Cin)
        # w_eff[qh*Kq + qw, (ph*s + pw)*Cin + c, co] = w[s*qh + ph, s*qw + pw, c, co]
        wpad = jnp.pad(w, ((0, Kq * s - K), (0, Kq * s - K), (0, 0), (0, 0)))
        w_eff = (wpad.reshape(Kq, s, Kq, s, Cin, Cout)
                 .transpose(0, 2, 1, 3, 4, 5)
                 .reshape(Kq * Kq, s * s * Cin, Cout))
        K_eff, Cin_eff = Kq, s * s * Cin
        Hin, Win = Hq, Wq
    else:
        w_eff = w.reshape(K * K, Cin, Cout)
        K_eff, Cin_eff = K, Cin
        Hin, Win = Hp, Wp

    # bf16 activations/weights (native MXU input); f32 accumulation/bias in-kernel.
    xp = xp.astype(jnp.bfloat16)
    w_eff = w_eff.astype(jnp.bfloat16)
    b2 = b.reshape(1, Cout).astype(jnp.float32)

    kernel = functools.partial(_conv_kernel, K=K_eff, Hout=Hout, Wout=Wout, relu=relu)

    out = pl.pallas_call(
        kernel,
        grid=(B,),
        in_specs=[
            pl.BlockSpec((None, Hin, Win, Cin_eff), lambda i: (i, 0, 0, 0)),
            pl.BlockSpec((K_eff * K_eff, Cin_eff, Cout), lambda i: (0, 0, 0)),
            pl.BlockSpec((1, Cout), lambda i: (0, 0)),
        ],
        out_specs=pl.BlockSpec((None, Hout * Wout, Cout), lambda i: (i, 0, 0)),
        out_shape=jax.ShapeDtypeStruct((B, Hout * Wout, Cout), out_dtype),
        compiler_params=pltpu.CompilerParams(
            dimension_semantics=("parallel",)),   # batch iterations are independent
    )(xp, w_eff, b2)

    return out.reshape(B, Hout, Wout, Cout)


# ----------------------------------------------------------------------------
# Deterministic synthetic parameters (xavier-uniform weights, zero biases)
# ----------------------------------------------------------------------------
def _xavier_conv(key, K, cin, cout):
    fan_in, fan_out = K * K * cin, K * K * cout
    limit = math.sqrt(6.0 / (fan_in + fan_out))
    w = jax.random.uniform(key, (K, K, cin, cout), jnp.float32, -limit, limit)
    b = jnp.zeros((cout,), jnp.float32)
    return w, b


def make_ssd_params(key, in_ch=3):
    ks = jax.random.split(key, 16)
    params = {}
    # base_net: two stride-2 3x3 convs (-> s3_x, c5_x) and a 1x1 conv (-> fc_x)
    params["base0"] = _xavier_conv(ks[0], 3, in_ch, 16)   # s3_x channels
    params["base1"] = _xavier_conv(ks[1], 3, 16, 32)      # c5_x channels
    params["base2"] = _xavier_conv(ks[2], 1, 32, 64)      # fc_x channels (unused by head)
    # extras: two stride-2 3x3 convs with ReLU
    params["extras"] = [
        _xavier_conv(ks[3], 3, 32, 64),
        _xavier_conv(ks[4], 3, 64, 64),
    ]
    # headers over [c5_x, extra0_out, extra1_out]
    feat_channels = [32, 64, 64]
    params["cls"] = [
        _xavier_conv(ks[5 + i], 3, c, NUM_ANCHORS * NUM_CLASSES)
        for i, c in enumerate(feat_channels)
    ]
    params["reg"] = [
        _xavier_conv(ks[8 + i], 3, c, NUM_ANCHORS * 4)
        for i, c in enumerate(feat_channels)
    ]
    return params


# ----------------------------------------------------------------------------
# SSD forward (is_test=False path): returns (confidences, locations)
# ----------------------------------------------------------------------------
def _compute_header(i, feat_nhwc, params):
    """cls + reg fused into a single pallas_call via Cout concatenation."""
    B, H, W, _ = feat_nhwc.shape
    wc, bc = params["cls"][i]
    wr, br = params["reg"][i]
    w = jnp.concatenate([wc, wr], axis=-1)          # (3, 3, C, 20 + 16)
    b = jnp.concatenate([bc, br], axis=0)
    out = conv2d_pallas(feat_nhwc, w, b, stride=1, padding=1, relu=False,
                        out_dtype=jnp.float32)
    n_cls_ch = NUM_ANCHORS * NUM_CLASSES
    # PyTorch: NCHW -> permute(0,2,3,1) -> view(B, -1, C).  Output is already NHWC.
    conf = out[..., :n_cls_ch].reshape(B, H * W * NUM_ANCHORS, NUM_CLASSES)
    loc = out[..., n_cls_ch:].reshape(B, H * W * NUM_ANCHORS, 4)
    return conf, loc


def ssd_forward(x_nchw, params):
    x = jnp.transpose(x_nchw, (0, 2, 3, 1)).astype(jnp.float32)  # NCHW -> NHWC

    # base_net(x) -> (s3_x, c5_x, fc_x); fc_x is never consumed by the head
    # outputs, so its conv is skipped (dead compute per review).
    s3 = conv2d_pallas(x, *params["base0"], stride=2, padding=1, relu=True)
    c5 = conv2d_pallas(s3, *params["base1"], stride=2, padding=1, relu=True)

    confidences, locations = [], []
    header_index = 0

    feat = c5
    conf, loc = _compute_header(header_index, feat, params)
    header_index += 1
    confidences.append(conf)
    locations.append(loc)

    for ew, eb in params["extras"]:
        feat = conv2d_pallas(feat, ew, eb, stride=2, padding=1, relu=True)
        conf, loc = _compute_header(header_index, feat, params)
        header_index += 1
        confidences.append(conf)
        locations.append(loc)

    confidences = jnp.concatenate(confidences, axis=1)
    locations = jnp.concatenate(locations, axis=1)
    # TODO(synk): is_test branch (softmax + priors decode) depends on external
    # box_utils/config priors; only the training-path outputs are produced here.
    return confidences, locations


if __name__ == "__main__":
    key = jax.random.PRNGKey(0)
    pkey, xkey = jax.random.split(key)

    params = make_ssd_params(pkey, in_ch=3)
    # Small NCHW input consistent with the module's conv-in-NCHW convention.
    x = jax.random.normal(xkey, (2, 3, 16, 16), jnp.float32)

    fwd = jax.jit(ssd_forward)
    confidences, locations = fwd(x, params)
    confidences = jax.block_until_ready(confidences)
    locations = jax.block_until_ready(locations)

    # feature maps: 4x4, 2x2, 1x1 with 4 anchors each -> 64 + 16 + 4 = 84 priors
    assert confidences.shape == (2, 84, NUM_CLASSES), confidences.shape
    assert locations.shape == (2, 84, 4), locations.shape
    assert confidences.dtype == jnp.float32 and locations.dtype == jnp.float32
    assert bool(jnp.all(jnp.isfinite(confidences)))
    assert bool(jnp.all(jnp.isfinite(locations)))

    print("KERNEL_OK")
</pallas_src>

<mosaic_0001>
module attributes {stable_mosaic.version = 11 : i64} {
  func.func @_conv_kernel(%arg0: i32, %arg1: memref<1x9x9x12xbf16, #tpu.memory_space<vmem>>, %arg2: memref<4x12x16xbf16, #tpu.memory_space<vmem>>, %arg3: memref<1x16xf32, #tpu.memory_space<vmem>>, %arg4: memref<1x64x16xbf16, #tpu.memory_space<vmem>>) attributes {dimension_semantics = [#tpu.dimension_semantics<parallel>], iteration_bounds = array<i64: 2>, scalar_prefetch = 0 : i64, scratch_operands = 0 : i64, tpu.core_type = #tpu.core_type<tc>, window_params = [{transform_indices = @transform_0, window_bounds = array<i64: 1, 9, 9, 12>}, {pipeline_mode = #tpu.pipeline_mode<synchronous>, transform_indices = @transform_1, window_bounds = array<i64: 4, 12, 16>}, {pipeline_mode = #tpu.pipeline_mode<synchronous>, transform_indices = @transform_2, window_bounds = array<i64: 1, 16>}, {transform_indices = @transform_3, window_bounds = array<i64: 1, 64, 16>}]} {
    %cst = arith.constant 0.000000e+00 : f32
    %0 = vector.broadcast %cst : f32 to vector<64x16xf32>
    %c0 = arith.constant 0 : index
    %c0_0 = arith.constant 0 : index
    %c0_1 = arith.constant 0 : index
    %c0_2 = arith.constant 0 : index
    %1 = vector.load %arg1[%c0, %c0_0, %c0_1, %c0_2] : memref<1x9x9x12xbf16, #tpu.memory_space<vmem>>, vector<1x8x8x12xbf16>
    %2 = vector.shape_cast %1 : vector<1x8x8x12xbf16> to vector<8x8x12xbf16>
    %3 = vector.shape_cast %2 : vector<8x8x12xbf16> to vector<64x12xbf16>
    %c0_3 = arith.constant 0 : index
    %c0_4 = arith.constant 0 : index
    %c0_5 = arith.constant 0 : index
    %4 = vector.load %arg2[%c0_3, %c0_4, %c0_5] : memref<4x12x16xbf16, #tpu.memory_space<vmem>>, vector<1x12x16xbf16>
    %5 = vector.shape_cast %4 : vector<1x12x16xbf16> to vector<12x16xbf16>
    %cst_6 = arith.constant dense<0.000000e+00> : vector<64x16xf32>
    %6 = tpu.matmul %3, %5, %cst_6 {dimension_numbers = #tpu.dot_dimension_numbers<[1], [0], [0], [1], [0, 0, 1, 1], [], []>} : vector<64x12xbf16>, vector<12x16xbf16>, vector<64x16xf32> -> vector<64x16xf32>
    %7 = arith.addf %0, %6 : vector<64x16xf32>
    %c0_7 = arith.constant 0 : index
    %c0_8 = arith.constant 0 : index
    %c1 = arith.constant 1 : index
    %c0_9 = arith.constant 0 : index
    %8 = vector.load %arg1[%c0_7, %c0_8, %c1, %c0_9] : memref<1x9x9x12xbf16, #tpu.memory_space<vmem>>, vector<1x8x8x12xbf16>
    %9 = vector.shape_cast %8 : vector<1x8x8x12xbf16> to vector<8x8x12xbf16>
    %10 = vector.shape_cast %9 : vector<8x8x12xbf16> to vector<64x12xbf16>
    %c1_10 = arith.constant 1 : index
    %c0_11 = arith.constant 0 : index
    %c0_12 = arith.constant 0 : index
    %11 = vector.load %arg2[%c1_10, %c0_11, %c0_12] : memref<4x12x16xbf16, #tpu.memory_space<vmem>>, vector<1x12x16xbf16>
    %12 = vector.shape_cast %11 : vector<1x12x16xbf16> to vector<12x16xbf16>
    %cst_13 = arith.constant dense<0.000000e+00> : vector<64x16xf32>
    %13 = tpu.matmul %10, %12, %cst_13 {dimension_numbers = #tpu.dot_dimension_numbers<[1], [0], [0], [1], [0, 0, 1, 1], [], []>} : vector<64x12xbf16>, vector<12x16xbf16>, vector<64x16xf32> -> vector<64x16xf32>
    %14 = arith.addf %7, %13 : vector<64x16xf32>
    %c0_14 = arith.constant 0 : index
    %c1_15 = arith.constant 1 : index
    %c0_16 = arith.constant 0 : index
    %c0_17 = arith.constant 0 : index
    %15 = vector.load %arg1[%c0_14, %c1_15, %c0_16, %c0_17] : memref<1x9x9x12xbf16, #tpu.memory_space<vmem>>, vector<1x8x8x12xbf16>
    %16 = vector.shape_cast %15 : vector<1x8x8x12xbf16> to vector<8x8x12xbf16>
    %17 = vector.shape_cast %16 : vector<8x8x12xbf16> to vector<64x12xbf16>
    %c2 = arith.constant 2 : index
    %c0_18 = arith.constant 0 : index
    %c0_19 = arith.constant 0 : index
    %18 = vector.load %arg2[%c2, %c0_18, %c0_19] : memref<4x12x16xbf16, #tpu.memory_space<vmem>>, vector<1x12x16xbf16>
    %19 = vector.shape_cast %18 : vector<1x12x16xbf16> to vector<12x16xbf16>
    %cst_20 = arith.constant dense<0.000000e+00> : vector<64x16xf32>
    %20 = tpu.matmul %17, %19, %cst_20 {dimension_numbers = #tpu.dot_dimension_numbers<[1], [0], [0], [1], [0, 0, 1, 1], [], []>} : vector<64x12xbf16>, vector<12x16xbf16>, vector<64x16xf32> -> vector<64x16xf32>
    %21 = arith.addf %14, %20 : vector<64x16xf32>
    %c0_21 = arith.constant 0 : index
    %c1_22 = arith.constant 1 : index
    %c1_23 = arith.constant 1 : index
    %c0_24 = arith.constant 0 : index
    %22 = vector.load %arg1[%c0_21, %c1_22, %c1_23, %c0_24] : memref<1x9x9x12xbf16, #tpu.memory_space<vmem>>, vector<1x8x8x12xbf16>
    %23 = vector.shape_cast %22 : vector<1x8x8x12xbf16> to vector<8x8x12xbf16>
    %24 = vector.shape_cast %23 : vector<8x8x12xbf16> to vector<64x12xbf16>
    %c3 = arith.constant 3 : index
    %c0_25 = arith.constant 0 : index
    %c0_26 = arith.constant 0 : index
    %25 = vector.load %arg2[%c3, %c0_25, %c0_26] : memref<4x12x16xbf16, #tpu.memory_space<vmem>>, vector<1x12x16xbf16>
    %26 = vector.shape_cast %25 : vector<1x12x16xbf16> to vector<12x16xbf16>
    %cst_27 = arith.constant dense<0.000000e+00> : vector<64x16xf32>
    %27 = tpu.matmul %24, %26, %cst_27 {dimension_numbers = #tpu.dot_dimension_numbers<[1], [0], [0], [1], [0, 0, 1, 1], [], []>} : vector<64x12xbf16>, vector<12x16xbf16>, vector<64x16xf32> -> vector<64x16xf32>
    %28 = arith.addf %21, %27 : vector<64x16xf32>
    %c0_28 = arith.constant 0 : index
    %c0_29 = arith.constant 0 : index
    %29 = vector.load %arg3[%c0_28, %c0_29] : memref<1x16xf32, #tpu.memory_space<vmem>>, vector<1x16xf32>
    %30 = vector.broadcast %29 : vector<1x16xf32> to vector<64x16xf32>
    %31 = arith.addf %28, %30 : vector<64x16xf32>
    %cst_30 = arith.constant 0.000000e+00 : f32
    %32 = vector.broadcast %cst_30 : f32 to vector<64x16xf32>
    %33 = arith.maximumf %31, %32 : vector<64x16xf32>
    %34 = arith.truncf %33 : vector<64x16xf32> to vector<64x16xbf16>
    %c0_31 = arith.constant 0 : index
    %c0_32 = arith.constant 0 : index
    %c0_33 = arith.constant 0 : index
    %35 = vector.load %arg4[%c0_31, %c0_32, %c0_33] : memref<1x64x16xbf16, #tpu.memory_space<vmem>>, vector<1x64x16xbf16>
    %36 = vector.shape_cast %35 : vector<1x64x16xbf16> to vector<64x16xbf16>
    %37 = vector.shape_cast %34 : vector<64x16xbf16> to vector<1x64x16xbf16>
    tpu.vector_store %arg4[%c0_31, %c0_32, %c0_33], %37 {strides = array<i32>} : memref<1x64x16xbf16, #tpu.memory_space<vmem>>, vector<1x64x16xbf16>,
    return
  }
  func.func @transform_0(%arg0: i32) -> (i32, i32, i32, i32) {
    %c0_i32 = arith.constant 0 : i32
    %c0_i32_0 = arith.constant 0 : i32
    %c0_i32_1 = arith.constant 0 : i32
    %c0_i32_2 = arith.constant 0 : i32
    return %arg0, %c0_i32, %c0_i32_0, %c0_i32_1 : i32, i32, i32, i32
  }
  func.func @transform_1(%arg0: i32) -> (i32, i32, i32) {
    %c0_i32 = arith.constant 0 : i32
    %c0_i32_0 = arith.constant 0 : i32
    %c0_i32_1 = arith.constant 0 : i32
    %c0_i32_2 = arith.constant 0 : i32
    return %c0_i32, %c0_i32_0, %c0_i32_1 : i32, i32, i32
  }
  func.func @transform_2(%arg0: i32) -> (i32, i32) {
    %c0_i32 = arith.constant 0 : i32
    %c0_i32_0 = arith.constant 0 : i32
    %c0_i32_1 = arith.constant 0 : i32
    return %c0_i32, %c0_i32_0 : i32, i32
  }
  func.func @transform_3(%arg0: i32) -> (i32, i32, i32) {
    %c0_i32 = arith.constant 0 : i32
    %c0_i32_0 = arith.constant 0 : i32
    %c0_i32_1 = arith.constant 0 : i32
    return %arg0, %c0_i32, %c0_i32_0 : i32, i32, i32
  }
}

module attributes {stable_mosaic.version = 11 : i64} {
  func.func @_conv_kernel(%arg0: i32, %arg1: memref<1x5x5x64xbf16, #tpu.memory_space<vmem>>, %arg2: memref<4x64x32xbf16, #tpu.memory_space<vmem>>, %arg3: memref<1x32xf32, #tpu.memory_space<vmem>>, %arg4: memref<1x16x32xbf16, #tpu.memory_space<vmem>>) attributes {dimension_semantics = [#tpu.dimension_semantics<parallel>], iteration_bounds = array<i64: 2>, scalar_prefetch = 0 : i64, scratch_operands = 0 : i64, tpu.core_type = #tpu.core_type<tc>, window_params = [{transform_indices = @transform_0, window_bounds = array<i64: 1, 5, 5, 64>}, {pipeline_mode = #tpu.pipeline_mode<synchronous>, transform_indices = @transform_1, window_bounds = array<i64: 4, 64, 32>}, {pipeline_mode = #tpu.pipeline_mode<synchronous>, transform_indices = @transform_2, window_bounds = array<i64: 1, 32>}, {transform_indices = @transform_3, window_bounds = array<i64: 1, 16, 32>}]} {
    %cst = arith.constant 0.000000e+00 : f32
    %0 = vector.broadcast %cst : f32 to vector<16x32xf32>
    %c0 = arith.constant 0 : index
    %c0_0 = arith.constant 0 : index
    %c0_1 = arith.constant 0 : index
    %c0_2 = arith.constant 0 : index
    %1 = vector.load %arg1[%c0, %c0_0, %c0_1, %c0_2] : memref<1x5x5x64xbf16, #tpu.memory_space<vmem>>, vector<1x4x4x64xbf16>
    %2 = vector.shape_cast %1 : vector<1x4x4x64xbf16> to vector<4x4x64xbf16>
    %3 = vector.shape_cast %2 : vector<4x4x64xbf16> to vector<16x64xbf16>
    %c0_3 = arith.constant 0 : index
    %c0_4 = arith.constant 0 : index
    %c0_5 = arith.constant 0 : index
    %4 = vector.load %arg2[%c0_3, %c0_4, %c0_5] : memref<4x64x32xbf16, #tpu.memory_space<vmem>>, vector<1x64x32xbf16>
    %5 = vector.shape_cast %4 : vector<1x64x32xbf16> to vector<64x32xbf16>
    %cst_6 = arith.constant dense<0.000000e+00> : vector<16x32xf32>
    %6 = tpu.matmul %3, %5, %cst_6 {dimension_numbers = #tpu.dot_dimension_numbers<[1], [0], [0], [1], [0, 0, 1, 1], [], []>} : vector<16x64xbf16>, vector<64x32xbf16>, vector<16x32xf32> -> vector<16x32xf32>
    %7 = arith.addf %0, %6 : vector<16x32xf32>
    %c0_7 = arith.constant 0 : index
    %c0_8 = arith.constant 0 : index
    %c1 = arith.constant 1 : index
    %c0_9 = arith.constant 0 : index
    %8 = vector.load %arg1[%c0_7, %c0_8, %c1, %c0_9] : memref<1x5x5x64xbf16, #tpu.memory_space<vmem>>, vector<1x4x4x64xbf16>
    %9 = vector.shape_cast %8 : vector<1x4x4x64xbf16> to vector<4x4x64xbf16>
    %10 = vector.shape_cast %9 : vector<4x4x64xbf16> to vector<16x64xbf16>
    %c1_10 = arith.constant 1 : index
    %c0_11 = arith.constant 0 : index
    %c0_12 = arith.constant 0 : index
    %11 = vector.load %arg2[%c1_10, %c0_11, %c0_12] : memref<4x64x32xbf16, #tpu.memory_space<vmem>>, vector<1x64x32xbf16>
    %12 = vector.shape_cast %11 : vector<1x64x32xbf16> to vector<64x32xbf16>
    %cst_13 = arith.constant dense<0.000000e+00> : vector<16x32xf32>
    %13 = tpu.matmul %10, %12, %cst_13 {dimension_numbers = #tpu.dot_dimension_numbers<[1], [0], [0], [1], [0, 0, 1, 1], [], []>} : vector<16x64xbf16>, vector<64x32xbf16>, vector<16x32xf32> -> vector<16x32xf32>
    %14 = arith.addf %7, %13 : vector<16x32xf32>
    %c0_14 = arith.constant 0 : index
    %c1_15 = arith.constant 1 : index
    %c0_16 = arith.constant 0 : index
    %c0_17 = arith.constant 0 : index
    %15 = vector.load %arg1[%c0_14, %c1_15, %c0_16, %c0_17] : memref<1x5x5x64xbf16, #tpu.memory_space<vmem>>, vector<1x4x4x64xbf16>
    %16 = vector.shape_cast %15 : vector<1x4x4x64xbf16> to vector<4x4x64xbf16>
    %17 = vector.shape_cast %16 : vector<4x4x64xbf16> to vector<16x64xbf16>
    %c2 = arith.constant 2 : index
    %c0_18 = arith.constant 0 : index
    %c0_19 = arith.constant 0 : index
    %18 = vector.load %arg2[%c2, %c0_18, %c0_19] : memref<4x64x32xbf16, #tpu.memory_space<vmem>>, vector<1x64x32xbf16>
    %19 = vector.shape_cast %18 : vector<1x64x32xbf16> to vector<64x32xbf16>
    %cst_20 = arith.constant dense<0.000000e+00> : vector<16x32xf32>
    %20 = tpu.matmul %17, %19, %cst_20 {dimension_numbers = #tpu.dot_dimension_numbers<[1], [0], [0], [1], [0, 0, 1, 1], [], []>} : vector<16x64xbf16>, vector<64x32xbf16>, vector<16x32xf32> -> vector<16x32xf32>
    %21 = arith.addf %14, %20 : vector<16x32xf32>
    %c0_21 = arith.constant 0 : index
    %c1_22 = arith.constant 1 : index
    %c1_23 = arith.constant 1 : index
    %c0_24 = arith.constant 0 : index
    %22 = vector.load %arg1[%c0_21, %c1_22, %c1_23, %c0_24] : memref<1x5x5x64xbf16, #tpu.memory_space<vmem>>, vector<1x4x4x64xbf16>
    %23 = vector.shape_cast %22 : vector<1x4x4x64xbf16> to vector<4x4x64xbf16>
    %24 = vector.shape_cast %23 : vector<4x4x64xbf16> to vector<16x64xbf16>
    %c3 = arith.constant 3 : index
    %c0_25 = arith.constant 0 : index
    %c0_26 = arith.constant 0 : index
    %25 = vector.load %arg2[%c3, %c0_25, %c0_26] : memref<4x64x32xbf16, #tpu.memory_space<vmem>>, vector<1x64x32xbf16>
    %26 = vector.shape_cast %25 : vector<1x64x32xbf16> to vector<64x32xbf16>
    %cst_27 = arith.constant dense<0.000000e+00> : vector<16x32xf32>
    %27 = tpu.matmul %24, %26, %cst_27 {dimension_numbers = #tpu.dot_dimension_numbers<[1], [0], [0], [1], [0, 0, 1, 1], [], []>} : vector<16x64xbf16>, vector<64x32xbf16>, vector<16x32xf32> -> vector<16x32xf32>
    %28 = arith.addf %21, %27 : vector<16x32xf32>
    %c0_28 = arith.constant 0 : index
    %c0_29 = arith.constant 0 : index
    %29 = vector.load %arg3[%c0_28, %c0_29] : memref<1x32xf32, #tpu.memory_space<vmem>>, vector<1x32xf32>
    %30 = vector.broadcast %29 : vector<1x32xf32> to vector<16x32xf32>
    %31 = arith.addf %28, %30 : vector<16x32xf32>
    %cst_30 = arith.constant 0.000000e+00 : f32
    %32 = vector.broadcast %cst_30 : f32 to vector<16x32xf32>
    %33 = arith.maximumf %31, %32 : vector<16x32xf32>
    %34 = arith.truncf %33 : vector<16x32xf32> to vector<16x32xbf16>
    %c0_31 = arith.constant 0 : index
    %c0_32 = arith.constant 0 : index
    %c0_33 = arith.constant 0 : index
    %35 = vector.load %arg4[%c0_31, %c0_32, %c0_33] : memref<1x16x32xbf16, #tpu.memory_space<vmem>>, vector<1x16x32xbf16>
    %36 = vector.shape_cast %35 : vector<1x16x32xbf16> to vector<16x32xbf16>
    %37 = vector.shape_cast %34 : vector<16x32xbf16> to vector<1x16x32xbf16>
    tpu.vector_store %arg4[%c0_31, %c0_32, %c0_33], %37 {strides = array<i32>} : memref<1x16x32xbf16, #tpu.memory_space<vmem>>, vector<1x16x32xbf16>,
    return
  }
  func.func @transform_0(%arg0: i32) -> (i32, i32, i32, i32) {
    %c0_i32 = arith.constant 0 : i32
    %c0_i32_0 = arith.constant 0 : i32
    %c0_i32_1 = arith.constant 0 : i32
    %c0_i32_2 = arith.constant 0 : i32
    return %arg0, %c0_i32, %c0_i32_0, %c0_i32_1 : i32, i32, i32, i32
  }
  func.func @transform_1(%arg0: i32) -> (i32, i32, i32) {
    %c0_i32 = arith.constant 0 : i32
    %c0_i32_0 = arith.constant 0 : i32
    %c0_i32_1 = arith.constant 0 : i32
    %c0_i32_2 = arith.constant 0 : i32
    return %c0_i32, %c0_i32_0, %c0_i32_1 : i32, i32, i32
  }
  func.func @transform_2(%arg0: i32) -> (i32, i32) {
    %c0_i32 = arith.constant 0 : i32
    %c0_i32_0 = arith.constant 0 : i32
    %c0_i32_1 = arith.constant 0 : i32
    return %c0_i32, %c0_i32_0 : i32, i32
  }
  func.func @transform_3(%arg0: i32) -> (i32, i32, i32) {
    %c0_i32 = arith.constant 0 : i32
    %c0_i32_0 = arith.constant 0 : i32
    %c0_i32_1 = arith.constant 0 : i32
    return %arg0, %c0_i32, %c0_i32_0 : i32, i32, i32
  }
}

module attributes {stable_mosaic.version = 11 : i64} {
  func.func @_conv_kernel(%arg0: i32, %arg1: memref<1x3x3x128xbf16, #tpu.memory_space<vmem>>, %arg2: memref<4x128x64xbf16, #tpu.memory_space<vmem>>, %arg3: memref<1x64xf32, #tpu.memory_space<vmem>>, %arg4: memref<1x4x64xbf16, #tpu.memory_space<vmem>>) attributes {dimension_semantics = [#tpu.dimension_semantics<parallel>], iteration_bounds = array<i64: 2>, scalar_prefetch = 0 : i64, scratch_operands = 0 : i64, tpu.core_type = #tpu.core_type<tc>, window_params = [{transform_indices = @transform_0, window_bounds = array<i64: 1, 3, 3, 128>}, {pipeline_mode = #tpu.pipeline_mode<synchronous>, transform_indices = @transform_1, window_bounds = array<i64: 4, 128, 64>}, {pipeline_mode = #tpu.pipeline_mode<synchronous>, transform_indices = @transform_2, window_bounds = array<i64: 1, 64>}, {transform_indices = @transform_3, window_bounds = array<i64: 1, 4, 64>}]} {
    %cst = arith.constant 0.000000e+00 : f32
    %0 = vector.broadcast %cst : f32 to vector<4x64xf32>
    %c0 = arith.constant 0 : index
    %c0_0 = arith.constant 0 : index
    %c0_1 = arith.constant 0 : index
    %c0_2 = arith.constant 0 : index
    %1 = vector.load %arg1[%c0, %c0_0, %c0_1, %c0_2] : memref<1x3x3x128xbf16, #tpu.memory_space<vmem>>, vector<1x2x2x128xbf16>
    %2 = vector.shape_cast %1 : vector<1x2x2x128xbf16> to vector<2x2x128xbf16>
    %3 = vector.shape_cast %2 : vector<2x2x128xbf16> to vector<4x128xbf16>
    %c0_3 = arith.constant 0 : index
    %c0_4 = arith.constant 0 : index
    %c0_5 = arith.constant 0 : index
    %4 = vector.load %arg2[%c0_3, %c0_4, %c0_5] : memref<4x128x64xbf16, #tpu.memory_space<vmem>>, vector<1x128x64xbf16>
    %5 = vector.shape_cast %4 : vector<1x128x64xbf16> to vector<128x64xbf16>
    %cst_6 = arith.constant dense<0.000000e+00> : vector<4x64xf32>
    %6 = tpu.matmul %3, %5, %cst_6 {dimension_numbers = #tpu.dot_dimension_numbers<[1], [0], [0], [1], [0, 0, 1, 1], [], []>} : vector<4x128xbf16>, vector<128x64xbf16>, vector<4x64xf32> -> vector<4x64xf32>
    %7 = arith.addf %0, %6 : vector<4x64xf32>
    %c0_7 = arith.constant 0 : index
    %c0_8 = arith.constant 0 : index
    %c1 = arith.constant 1 : index
    %c0_9 = arith.constant 0 : index
    %8 = vector.load %arg1[%c0_7, %c0_8, %c1, %c0_9] : memref<1x3x3x128xbf16, #tpu.memory_space<vmem>>, vector<1x2x2x128xbf16>
    %9 = vector.shape_cast %8 : vector<1x2x2x128xbf16> to vector<2x2x128xbf16>
    %10 = vector.shape_cast %9 : vector<2x2x128xbf16> to vector<4x128xbf16>
    %c1_10 = arith.constant 1 : index
    %c0_11 = arith.constant 0 : index
    %c0_12 = arith.constant 0 : index
    %11 = vector.load %arg2[%c1_10, %c0_11, %c0_12] : memref<4x128x64xbf16, #tpu.memory_space<vmem>>, vector<1x128x64xbf16>
    %12 = vector.shape_cast %11 : vector<1x128x64xbf16> to vector<128x64xbf16>
    %cst_13 = arith.constant dense<0.000000e+00> : vector<4x64xf32>
    %13 = tpu.matmul %10, %12, %cst_13 {dimension_numbers = #tpu.dot_dimension_numbers<[1], [0], [0], [1], [0, 0, 1, 1], [], []>} : vector<4x128xbf16>, vector<128x64xbf16>, vector<4x64xf32> -> vector<4x64xf32>
    %14 = arith.addf %7, %13 : vector<4x64xf32>
    %c0_14 = arith.constant 0 : index
    %c1_15 = arith.constant 1 : index
    %c0_16 = arith.constant 0 : index
    %c0_17 = arith.constant 0 : index
    %15 = vector.load %arg1[%c0_14, %c1_15, %c0_16, %c0_17] : memref<1x3x3x128xbf16, #tpu.memory_space<vmem>>, vector<1x2x2x128xbf16>
    %16 = vector.shape_cast %15 : vector<1x2x2x128xbf16> to vector<2x2x128xbf16>
    %17 = vector.shape_cast %16 : vector<2x2x128xbf16> to vector<4x128xbf16>
    %c2 = arith.constant 2 : index
    %c0_18 = arith.constant 0 : index
    %c0_19 = arith.constant 0 : index
    %18 = vector.load %arg2[%c2, %c0_18, %c0_19] : memref<4x128x64xbf16, #tpu.memory_space<vmem>>, vector<1x128x64xbf16>
    %19 = vector.shape_cast %18 : vector<1x128x64xbf16> to vector<128x64xbf16>
    %cst_20 = arith.constant dense<0.000000e+00> : vector<4x64xf32>
    %20 = tpu.matmul %17, %19, %cst_20 {dimension_numbers = #tpu.dot_dimension_numbers<[1], [0], [0], [1], [0, 0, 1, 1], [], []>} : vector<4x128xbf16>, vector<128x64xbf16>, vector<4x64xf32> -> vector<4x64xf32>
    %21 = arith.addf %14, %20 : vector<4x64xf32>
    %c0_21 = arith.constant 0 : index
    %c1_22 = arith.constant 1 : index
    %c1_23 = arith.constant 1 : index
    %c0_24 = arith.constant 0 : index
    %22 = vector.load %arg1[%c0_21, %c1_22, %c1_23, %c0_24] : memref<1x3x3x128xbf16, #tpu.memory_space<vmem>>, vector<1x2x2x128xbf16>
    %23 = vector.shape_cast %22 : vector<1x2x2x128xbf16> to vector<2x2x128xbf16>
    %24 = vector.shape_cast %23 : vector<2x2x128xbf16> to vector<4x128xbf16>
    %c3 = arith.constant 3 : index
    %c0_25 = arith.constant 0 : index
    %c0_26 = arith.constant 0 : index
    %25 = vector.load %arg2[%c3, %c0_25, %c0_26] : memref<4x128x64xbf16, #tpu.memory_space<vmem>>, vector<1x128x64xbf16>
    %26 = vector.shape_cast %25 : vector<1x128x64xbf16> to vector<128x64xbf16>
    %cst_27 = arith.constant dense<0.000000e+00> : vector<4x64xf32>
    %27 = tpu.matmul %24, %26, %cst_27 {dimension_numbers = #tpu.dot_dimension_numbers<[1], [0], [0], [1], [0, 0, 1, 1], [], []>} : vector<4x128xbf16>, vector<128x64xbf16>, vector<4x64xf32> -> vector<4x64xf32>
    %28 = arith.addf %21, %27 : vector<4x64xf32>
    %c0_28 = arith.constant 0 : index
    %c0_29 = arith.constant 0 : index
    %29 = vector.load %arg3[%c0_28, %c0_29] : memref<1x64xf32, #tpu.memory_space<vmem>>, vector<1x64xf32>
    %30 = vector.broadcast %29 : vector<1x64xf32> to vector<4x64xf32>
    %31 = arith.addf %28, %30 : vector<4x64xf32>
    %cst_30 = arith.constant 0.000000e+00 : f32
    %32 = vector.broadcast %cst_30 : f32 to vector<4x64xf32>
    %33 = arith.maximumf %31, %32 : vector<4x64xf32>
    %34 = arith.truncf %33 : vector<4x64xf32> to vector<4x64xbf16>
    %c0_31 = arith.constant 0 : index
    %c0_32 = arith.constant 0 : index
    %c0_33 = arith.constant 0 : index
    %35 = vector.load %arg4[%c0_31, %c0_32, %c0_33] : memref<1x4x64xbf16, #tpu.memory_space<vmem>>, vector<1x4x64xbf16>
    %36 = vector.shape_cast %35 : vector<1x4x64xbf16> to vector<4x64xbf16>
    %37 = vector.shape_cast %34 : vector<4x64xbf16> to vector<1x4x64xbf16>
    tpu.vector_store %arg4[%c0_31, %c0_32, %c0_33], %37 {strides = array<i32>} : memref<1x4x64xbf16, #tpu.memory_space<vmem>>, vector<1x4x64xbf16>,
    return
  }
  func.func @transform_0(%arg0: i32) -> (i32, i32, i32, i32) {
    %c0_i32 = arith.constant 0 : i32
    %c0_i32_0 = arith.constant 0 : i32
    %c0_i32_1 = arith.constant 0 : i32
    %c0_i32_2 = arith.constant 0 : i32
    return %arg0, %c0_i32, %c0_i32_0, %c0_i32_1 : i32, i32, i32, i32
  }
  func.func @transform_1(%arg0: i32) -> (i32, i32, i32) {
    %c0_i32 = arith.constant 0 : i32
    %c0_i32_0 = arith.constant 0 : i32
    %c0_i32_1 = arith.constant 0 : i32
    %c0_i32_2 = arith.constant 0 : i32
    return %c0_i32, %c0_i32_0, %c0_i32_1 : i32, i32, i32
  }
  func.func @transform_2(%arg0: i32) -> (i32, i32) {
    %c0_i32 = arith.constant 0 : i32
    %c0_i32_0 = arith.constant 0 : i32
    %c0_i32_1 = arith.constant 0 : i32
    return %c0_i32, %c0_i32_0 : i32, i32
  }
  func.func @transform_3(%arg0: i32) -> (i32, i32, i32) {
    %c0_i32 = arith.constant 0 : i32
    %c0_i32_0 = arith.constant 0 : i32
    %c0_i32_1 = arith.constant 0 : i32
    return %arg0, %c0_i32, %c0_i32_0 : i32, i32, i32
  }
}

module attributes {stable_mosaic.version = 11 : i64} {
  func.func @_conv_kernel(%arg0: i32, %arg1: memref<1x2x2x256xbf16, #tpu.memory_space<vmem>>, %arg2: memref<4x256x64xbf16, #tpu.memory_space<vmem>>, %arg3: memref<1x64xf32, #tpu.memory_space<vmem>>, %arg4: memref<1x1x64xbf16, #tpu.memory_space<vmem>>) attributes {dimension_semantics = [#tpu.dimension_semantics<parallel>], iteration_bounds = array<i64: 2>, scalar_prefetch = 0 : i64, scratch_operands = 0 : i64, tpu.core_type = #tpu.core_type<tc>, window_params = [{transform_indices = @transform_0, window_bounds = array<i64: 1, 2, 2, 256>}, {pipeline_mode = #tpu.pipeline_mode<synchronous>, transform_indices = @transform_1, window_bounds = array<i64: 4, 256, 64>}, {pipeline_mode = #tpu.pipeline_mode<synchronous>, transform_indices = @transform_2, window_bounds = array<i64: 1, 64>}, {transform_indices = @transform_3, window_bounds = array<i64: 1, 1, 64>}]} {
    %cst = arith.constant 0.000000e+00 : f32
    %0 = vector.broadcast %cst : f32 to vector<1x64xf32>
    %c0 = arith.constant 0 : index
    %c0_0 = arith.constant 0 : index
    %c0_1 = arith.constant 0 : index
    %c0_2 = arith.constant 0 : index
    %1 = vector.load %arg1[%c0, %c0_0, %c0_1, %c0_2] : memref<1x2x2x256xbf16, #tpu.memory_space<vmem>>, vector<1x1x1x256xbf16>
    %2 = vector.shape_cast %1 : vector<1x1x1x256xbf16> to vector<1x1x256xbf16>
    %3 = vector.shape_cast %2 : vector<1x1x256xbf16> to vector<1x256xbf16>
    %c0_3 = arith.constant 0 : index
    %c0_4 = arith.constant 0 : index
    %c0_5 = arith.constant 0 : index
    %4 = vector.load %arg2[%c0_3, %c0_4, %c0_5] : memref<4x256x64xbf16, #tpu.memory_space<vmem>>, vector<1x256x64xbf16>
    %5 = vector.shape_cast %4 : vector<1x256x64xbf16> to vector<256x64xbf16>
    %cst_6 = arith.constant dense<0.000000e+00> : vector<1x64xf32>
    %6 = tpu.matmul %3, %5, %cst_6 {dimension_numbers = #tpu.dot_dimension_numbers<[1], [0], [0], [1], [0, 0, 1, 1], [], []>} : vector<1x256xbf16>, vector<256x64xbf16>, vector<1x64xf32> -> vector<1x64xf32>
    %7 = arith.addf %0, %6 : vector<1x64xf32>
    %c0_7 = arith.constant 0 : index
    %c0_8 = arith.constant 0 : index
    %c1 = arith.constant 1 : index
    %c0_9 = arith.constant 0 : index
    %8 = vector.load %arg1[%c0_7, %c0_8, %c1, %c0_9] : memref<1x2x2x256xbf16, #tpu.memory_space<vmem>>, vector<1x1x1x256xbf16>
    %9 = vector.shape_cast %8 : vector<1x1x1x256xbf16> to vector<1x1x256xbf16>
    %10 = vector.shape_cast %9 : vector<1x1x256xbf16> to vector<1x256xbf16>
    %c1_10 = arith.constant 1 : index
    %c0_11 = arith.constant 0 : index
    %c0_12 = arith.constant 0 : index
    %11 = vector.load %arg2[%c1_10, %c0_11, %c0_12] : memref<4x256x64xbf16, #tpu.memory_space<vmem>>, vector<1x256x64xbf16>
    %12 = vector.shape_cast %11 : vector<1x256x64xbf16> to vector<256x64xbf16>
    %cst_13 = arith.constant dense<0.000000e+00> : vector<1x64xf32>
    %13 = tpu.matmul %10, %12, %cst_13 {dimension_numbers = #tpu.dot_dimension_numbers<[1], [0], [0], [1], [0, 0, 1, 1], [], []>} : vector<1x256xbf16>, vector<256x64xbf16>, vector<1x64xf32> -> vector<1x64xf32>
    %14 = arith.addf %7, %13 : vector<1x64xf32>
    %c0_14 = arith.constant 0 : index
    %c1_15 = arith.constant 1 : index
    %c0_16 = arith.constant 0 : index
    %c0_17 = arith.constant 0 : index
    %15 = vector.load %arg1[%c0_14, %c1_15, %c0_16, %c0_17] : memref<1x2x2x256xbf16, #tpu.memory_space<vmem>>, vector<1x1x1x256xbf16>
    %16 = vector.shape_cast %15 : vector<1x1x1x256xbf16> to vector<1x1x256xbf16>
    %17 = vector.shape_cast %16 : vector<1x1x256xbf16> to vector<1x256xbf16>
    %c2 = arith.constant 2 : index
    %c0_18 = arith.constant 0 : index
    %c0_19 = arith.constant 0 : index
    %18 = vector.load %arg2[%c2, %c0_18, %c0_19] : memref<4x256x64xbf16, #tpu.memory_space<vmem>>, vector<1x256x64xbf16>
    %19 = vector.shape_cast %18 : vector<1x256x64xbf16> to vector<256x64xbf16>
    %cst_20 = arith.constant dense<0.000000e+00> : vector<1x64xf32>
    %20 = tpu.matmul %17, %19, %cst_20 {dimension_numbers = #tpu.dot_dimension_numbers<[1], [0], [0], [1], [0, 0, 1, 1], [], []>} : vector<1x256xbf16>, vector<256x64xbf16>, vector<1x64xf32> -> vector<1x64xf32>
    %21 = arith.addf %14, %20 : vector<1x64xf32>
    %c0_21 = arith.constant 0 : index
    %c1_22 = arith.constant 1 : index
    %c1_23 = arith.constant 1 : index
    %c0_24 = arith.constant 0 : index
    %22 = vector.load %arg1[%c0_21, %c1_22, %c1_23, %c0_24] : memref<1x2x2x256xbf16, #tpu.memory_space<vmem>>, vector<1x1x1x256xbf16>
    %23 = vector.shape_cast %22 : vector<1x1x1x256xbf16> to vector<1x1x256xbf16>
    %24 = vector.shape_cast %23 : vector<1x1x256xbf16> to vector<1x256xbf16>
    %c3 = arith.constant 3 : index
    %c0_25 = arith.constant 0 : index
    %c0_26 = arith.constant 0 : index
    %25 = vector.load %arg2[%c3, %c0_25, %c0_26] : memref<4x256x64xbf16, #tpu.memory_space<vmem>>, vector<1x256x64xbf16>
    %26 = vector.shape_cast %25 : vector<1x256x64xbf16> to vector<256x64xbf16>
    %cst_27 = arith.constant dense<0.000000e+00> : vector<1x64xf32>
    %27 = tpu.matmul %24, %26, %cst_27 {dimension_numbers = #tpu.dot_dimension_numbers<[1], [0], [0], [1], [0, 0, 1, 1], [], []>} : vector<1x256xbf16>, vector<256x64xbf16>, vector<1x64xf32> -> vector<1x64xf32>
    %28 = arith.addf %21, %27 : vector<1x64xf32>
    %c0_28 = arith.constant 0 : index
    %c0_29 = arith.constant 0 : index
    %29 = vector.load %arg3[%c0_28, %c0_29] : memref<1x64xf32, #tpu.memory_space<vmem>>, vector<1x64xf32>
    %30 = arith.addf %28, %29 : vector<1x64xf32>
    %cst_30 = arith.constant 0.000000e+00 : f32
    %31 = vector.broadcast %cst_30 : f32 to vector<1x64xf32>
    %32 = arith.maximumf %30, %31 : vector<1x64xf32>
    %33 = arith.truncf %32 : vector<1x64xf32> to vector<1x64xbf16>
    %c0_31 = arith.constant 0 : index
    %c0_32 = arith.constant 0 : index
    %c0_33 = arith.constant 0 : index
    %34 = vector.load %arg4[%c0_31, %c0_32, %c0_33] : memref<1x1x64xbf16, #tpu.memory_space<vmem>>, vector<1x1x64xbf16>
    %35 = vector.shape_cast %34 : vector<1x1x64xbf16> to vector<1x64xbf16>
    %36 = vector.shape_cast %33 : vector<1x64xbf16> to vector<1x1x64xbf16>
    tpu.vector_store %arg4[%c0_31, %c0_32, %c0_33], %36 {strides = array<i32>} : memref<1x1x64xbf16, #tpu.memory_space<vmem>>, vector<1x1x64xbf16>,
    return
  }
  func.func @transform_0(%arg0: i32) -> (i32, i32, i32, i32) {
    %c0_i32 = arith.constant 0 : i32
    %c0_i32_0 = arith.constant 0 : i32
    %c0_i32_1 = arith.constant 0 : i32
    %c0_i32_2 = arith.constant 0 : i32
    return %arg0, %c0_i32, %c0_i32_0, %c0_i32_1 : i32, i32, i32, i32
  }
  func.func @transform_1(%arg0: i32) -> (i32, i32, i32) {
    %c0_i32 = arith.constant 0 : i32
    %c0_i32_0 = arith.constant 0 : i32
    %c0_i32_1 = arith.constant 0 : i32
    %c0_i32_2 = arith.constant 0 : i32
    return %c0_i32, %c0_i32_0, %c0_i32_1 : i32, i32, i32
  }
  func.func @transform_2(%arg0: i32) -> (i32, i32) {
    %c0_i32 = arith.constant 0 : i32
    %c0_i32_0 = arith.constant 0 : i32
    %c0_i32_1 = arith.constant 0 : i32
    return %c0_i32, %c0_i32_0 : i32, i32
  }
  func.func @transform_3(%arg0: i32) -> (i32, i32, i32) {
    %c0_i32 = arith.constant 0 : i32
    %c0_i32_0 = arith.constant 0 : i32
    %c0_i32_1 = arith.constant 0 : i32
    return %arg0, %c0_i32, %c0_i32_0 : i32, i32, i32
  }
}

module attributes {stable_mosaic.version = 11 : i64} {
  func.func @_conv_kernel(%arg0: i32, %arg1: memref<1x3x3x64xbf16, #tpu.memory_space<vmem>>, %arg2: memref<9x64x36xbf16, #tpu.memory_space<vmem>>, %arg3: memref<1x36xf32, #tpu.memory_space<vmem>>, %arg4: memref<1x1x36xf32, #tpu.memory_space<vmem>>) attributes {dimension_semantics = [#tpu.dimension_semantics<parallel>], iteration_bounds = array<i64: 2>, scalar_prefetch = 0 : i64, scratch_operands = 0 : i64, tpu.core_type = #tpu.core_type<tc>, window_params = [{transform_indices = @transform_0, window_bounds = array<i64: 1, 3, 3, 64>}, {pipeline_mode = #tpu.pipeline_mode<synchronous>, transform_indices = @transform_1, window_bounds = array<i64: 9, 64, 36>}, {pipeline_mode = #tpu.pipeline_mode<synchronous>, transform_indices = @transform_2, window_bounds = array<i64: 1, 36>}, {transform_indices = @transform_3, window_bounds = array<i64: 1, 1, 36>}]} {
    %cst = arith.constant 0.000000e+00 : f32
    %0 = vector.broadcast %cst : f32 to vector<1x36xf32>
    %c0 = arith.constant 0 : index
    %c0_0 = arith.constant 0 : index
    %c0_1 = arith.constant 0 : index
    %c0_2 = arith.constant 0 : index
    %1 = vector.load %arg1[%c0, %c0_0, %c0_1, %c0_2] : memref<1x3x3x64xbf16, #tpu.memory_space<vmem>>, vector<1x1x1x64xbf16>
    %2 = vector.shape_cast %1 : vector<1x1x1x64xbf16> to vector<1x1x64xbf16>
    %3 = vector.shape_cast %2 : vector<1x1x64xbf16> to vector<1x64xbf16>
    %c0_3 = arith.constant 0 : index
    %c0_4 = arith.constant 0 : index
    %c0_5 = arith.constant 0 : index
    %4 = vector.load %arg2[%c0_3, %c0_4, %c0_5] : memref<9x64x36xbf16, #tpu.memory_space<vmem>>, vector<1x64x36xbf16>
    %5 = vector.shape_cast %4 : vector<1x64x36xbf16> to vector<64x36xbf16>
    %cst_6 = arith.constant dense<0.000000e+00> : vector<1x36xf32>
    %6 = tpu.matmul %3, %5, %cst_6 {dimension_numbers = #tpu.dot_dimension_numbers<[1], [0], [0], [1], [0, 0, 1, 1], [], []>} : vector<1x64xbf16>, vector<64x36xbf16>, vector<1x36xf32> -> vector<1x36xf32>
    %7 = arith.addf %0, %6 : vector<1x36xf32>
    %c0_7 = arith.constant 0 : index
    %c0_8 = arith.constant 0 : index
    %c1 = arith.constant 1 : index
    %c0_9 = arith.constant 0 : index
    %8 = vector.load %arg1[%c0_7, %c0_8, %c1, %c0_9] : memref<1x3x3x64xbf16, #tpu.memory_space<vmem>>, vector<1x1x1x64xbf16>
    %9 = vector.shape_cast %8 : vector<1x1x1x64xbf16> to vector<1x1x64xbf16>
    %10 = vector.shape_cast %9 : vector<1x1x64xbf16> to vector<1x64xbf16>
    %c1_10 = arith.constant 1 : index
    %c0_11 = arith.constant 0 : index
    %c0_12 = arith.constant 0 : index
    %11 = vector.load %arg2[%c1_10, %c0_11, %c0_12] : memref<9x64x36xbf16, #tpu.memory_space<vmem>>, vector<1x64x36xbf16>
    %12 = vector.shape_cast %11 : vector<1x64x36xbf16> to vector<64x36xbf16>
    %cst_13 = arith.constant dense<0.000000e+00> : vector<1x36xf32>
    %13 = tpu.matmul %10, %12, %cst_13 {dimension_numbers = #tpu.dot_dimension_numbers<[1], [0], [0], [1], [0, 0, 1, 1], [], []>} : vector<1x64xbf16>, vector<64x36xbf16>, vector<1x36xf32> -> vector<1x36xf32>
    %14 = arith.addf %7, %13 : vector<1x36xf32>
    %c0_14 = arith.constant 0 : index
    %c0_15 = arith.constant 0 : index
    %c2 = arith.constant 2 : index
    %c0_16 = arith.constant 0 : index
    %15 = vector.load %arg1[%c0_14, %c0_15, %c2, %c0_16] : memref<1x3x3x64xbf16, #tpu.memory_space<vmem>>, vector<1x1x1x64xbf16>
    %16 = vector.shape_cast %15 : vector<1x1x1x64xbf16> to vector<1x1x64xbf16>
    %17 = vector.shape_cast %16 : vector<1x1x64xbf16> to vector<1x64xbf16>
    %c2_17 = arith.constant 2 : index
    %c0_18 = arith.constant 0 : index
    %c0_19 = arith.constant 0 : index
    %18 = vector.load %arg2[%c2_17, %c0_18, %c0_19] : memref<9x64x36xbf16, #tpu.memory_space<vmem>>, vector<1x64x36xbf16>
    %19 = vector.shape_cast %18 : vector<1x64x36xbf16> to vector<64x36xbf16>
    %cst_20 = arith.constant dense<0.000000e+00> : vector<1x36xf32>
    %20 = tpu.matmul %17, %19, %cst_20 {dimension_numbers = #tpu.dot_dimension_numbers<[1], [0], [0], [1], [0, 0, 1, 1], [], []>} : vector<1x64xbf16>, vector<64x36xbf16>, vector<1x36xf32> -> vector<1x36xf32>
    %21 = arith.addf %14, %20 : vector<1x36xf32>
    %c0_21 = arith.constant 0 : index
    %c1_22 = arith.constant 1 : index
    %c0_23 = arith.constant 0 : index
    %c0_24 = arith.constant 0 : index
    %22 = vector.load %arg1[%c0_21, %c1_22, %c0_23, %c0_24] : memref<1x3x3x64xbf16, #tpu.memory_space<vmem>>, vector<1x1x1x64xbf16>
    %23 = vector.shape_cast %22 : vector<1x1x1x64xbf16> to vector<1x1x64xbf16>
    %24 = vector.shape_cast %23 : vector<1x1x64xbf16> to vector<1x64xbf16>
    %c3 = arith.constant 3 : index
    %c0_25 = arith.constant 0 : index
    %c0_26 = arith.constant 0 : index
    %25 = vector.load %arg2[%c3, %c0_25, %c0_26] : memref<9x64x36xbf16, #tpu.memory_space<vmem>>, vector<1x64x36xbf16>
    %26 = vector.shape_cast %25 : vector<1x64x36xbf16> to vector<64x36xbf16>
    %cst_27 = arith.constant dense<0.000000e+00> : vector<1x36xf32>
    %27 = tpu.matmul %24, %26, %cst_27 {dimension_numbers = #tpu.dot_dimension_numbers<[1], [0], [0], [1], [0, 0, 1, 1], [], []>} : vector<1x64xbf16>, vector<64x36xbf16>, vector<1x36xf32> -> vector<1x36xf32>
    %28 = arith.addf %21, %27 : vector<1x36xf32>
    %c0_28 = arith.constant 0 : index
    %c1_29 = arith.constant 1 : index
    %c1_30 = arith.constant 1 : index
    %c0_31 = arith.constant 0 : index
    %29 = vector.load %arg1[%c0_28, %c1_29, %c1_30, %c0_31] : memref<1x3x3x64xbf16, #tpu.memory_space<vmem>>, vector<1x1x1x64xbf16>
    %30 = vector.shape_cast %29 : vector<1x1x1x64xbf16> to vector<1x1x64xbf16>
    %31 = vector.shape_cast %30 : vector<1x1x64xbf16> to vector<1x64xbf16>
    %c4 = arith.constant 4 : index
    %c0_32 = arith.constant 0 : index
    %c0_33 = arith.constant 0 : index
    %32 = vector.load %arg2[%c4, %c0_32, %c0_33] : memref<9x64x36xbf16, #tpu.memory_space<vmem>>, vector<1x64x36xbf16>
    %33 = vector.shape_cast %32 : vector<1x64x36xbf16> to vector<64x36xbf16>
    %cst_34 = arith.constant dense<0.000000e+00> : vector<1x36xf32>
    %34 = tpu.matmul %31, %33, %cst_34 {dimension_numbers = #tpu.dot_dimension_numbers<[1], [0], [0], [1], [0, 0, 1, 1], [], []>} : vector<1x64xbf16>, vector<64x36xbf16>, vector<1x36xf32> -> vector<1x36xf32>
    %35 = arith.addf %28, %34 : vector<1x36xf32>
    %c0_35 = arith.constant 0 : index
    %c1_36 = arith.constant 1 : index
    %c2_37 = arith.constant 2 : index
    %c0_38 = arith.constant 0 : index
    %36 = vector.load %arg1[%c0_35, %c1_36, %c2_37, %c0_38] : memref<1x3x3x64xbf16, #tpu.memory_space<vmem>>, vector<1x1x1x64xbf16>
    %37 = vector.shape_cast %36 : vector<1x1x1x64xbf16> to vector<1x1x64xbf16>
    %38 = vector.shape_cast %37 : vector<1x1x64xbf16> to vector<1x64xbf16>
    %c5 = arith.constant 5 : index
    %c0_39 = arith.constant 0 : index
    %c0_40 = arith.constant 0 : index
    %39 = vector.load %arg2[%c5, %c0_39, %c0_40] : memref<9x64x36xbf16, #tpu.memory_space<vmem>>, vector<1x64x36xbf16>
    %40 = vector.shape_cast %39 : vector<1x64x36xbf16> to vector<64x36xbf16>
    %cst_41 = arith.constant dense<0.000000e+00> : vector<1x36xf32>
    %41 = tpu.matmul %38, %40, %cst_41 {dimension_numbers = #tpu.dot_dimension_numbers<[1], [0], [0], [1], [0, 0, 1, 1], [], []>} : vector<1x64xbf16>, vector<64x36xbf16>, vector<1x36xf32> -> vector<1x36xf32>
    %42 = arith.addf %35, %41 : vector<1x36xf32>
    %c0_42 = arith.constant 0 : index
    %c2_43 = arith.constant 2 : index
    %c0_44 = arith.constant 0 : index
    %c0_45 = arith.constant 0 : index
    %43 = vector.load %arg1[%c0_42, %c2_43, %c0_44, %c0_45] : memref<1x3x3x64xbf16, #tpu.memory_space<vmem>>, vector<1x1x1x64xbf16>
    %44 = vector.shape_cast %43 : vector<1x1x1x64xbf16> to vector<1x1x64xbf16>
    %45 = vector.shape_cast %44 : vector<1x1x64xbf16> to vector<1x64xbf16>
    %c6 = arith.constant 6 : index
    %c0_46 = arith.constant 0 : index
    %c0_47 = arith.constant 0 : index
    %46 = vector.load %arg2[%c6, %c0_46, %c0_47] : memref<9x64x36xbf16, #tpu.memory_space<vmem>>, vector<1x64x36xbf16>
    %47 = vector.shape_cast %46 : vector<1x64x36xbf16> to vector<64x36xbf16>
    %cst_48 = arith.constant dense<0.000000e+00> : vector<1x36xf32>
    %48 = tpu.matmul %45, %47, %cst_48 {dimension_numbers = #tpu.dot_dimension_numbers<[1], [0], [0], [1], [0, 0, 1, 1], [], []>} : vector<1x64xbf16>, vector<64x36xbf16>, vector<1x36xf32> -> vector<1x36xf32>
    %49 = arith.addf %42, %48 : vector<1x36xf32>
    %c0_49 = arith.constant 0 : index
    %c2_50 = arith.constant 2 : index
    %c1_51 = arith.constant 1 : index
    %c0_52 = arith.constant 0 : index
    %50 = vector.load %arg1[%c0_49, %c2_50, %c1_51, %c0_52] : memref<1x3x3x64xbf16, #tpu.memory_space<vmem>>, vector<1x1x1x64xbf16>
    %51 = vector.shape_cast %50 : vector<1x1x1x64xbf16> to vector<1x1x64xbf16>
    %52 = vector.shape_cast %51 : vector<1x1x64xbf16> to vector<1x64xbf16>
    %c7 = arith.constant 7 : index
    %c0_53 = arith.constant 0 : index
    %c0_54 = arith.constant 0 : index
    %53 = vector.load %arg2[%c7, %c0_53, %c0_54] : memref<9x64x36xbf16, #tpu.memory_space<vmem>>, vector<1x64x36xbf16>
    %54 = vector.shape_cast %53 : vector<1x64x36xbf16> to vector<64x36xbf16>
    %cst_55 = arith.constant dense<0.000000e+00> : vector<1x36xf32>
    %55 = tpu.matmul %52, %54, %cst_55 {dimension_numbers = #tpu.dot_dimension_numbers<[1], [0], [0], [1], [0, 0, 1, 1], [], []>} : vector<1x64xbf16>, vector<64x36xbf16>, vector<1x36xf32> -> vector<1x36xf32>
    %56 = arith.addf %49, %55 : vector<1x36xf32>
    %c0_56 = arith.constant 0 : index
    %c2_57 = arith.constant 2 : index
    %c2_58 = arith.constant 2 : index
    %c0_59 = arith.constant 0 : index
    %57 = vector.load %arg1[%c0_56, %c2_57, %c2_58, %c0_59] : memref<1x3x3x64xbf16, #tpu.memory_space<vmem>>, vector<1x1x1x64xbf16>
    %58 = vector.shape_cast %57 : vector<1x1x1x64xbf16> to vector<1x1x64xbf16>
    %59 = vector.shape_cast %58 : vector<1x1x64xbf16> to vector<1x64xbf16>
    %c8 = arith.constant 8 : index
    %c0_60 = arith.constant 0 : index
    %c0_61 = arith.constant 0 : index
    %60 = vector.load %arg2[%c8, %c0_60, %c0_61] : memref<9x64x36xbf16, #tpu.memory_space<vmem>>, vector<1x64x36xbf16>
    %61 = vector.shape_cast %60 : vector<1x64x36xbf16> to vector<64x36xbf16>
    %cst_62 = arith.constant dense<0.000000e+00> : vector<1x36xf32>
    %62 = tpu.matmul %59, %61, %cst_62 {dimension_numbers = #tpu.dot_dimension_numbers<[1], [0], [0], [1], [0, 0, 1, 1], [], []>} : vector<1x64xbf16>, vector<64x36xbf16>, vector<1x36xf32> -> vector<1x36xf32>
    %63 = arith.addf %56, %62 : vector<1x36xf32>
    %c0_63 = arith.constant 0 : index
    %c0_64 = arith.constant 0 : index
    %64 = vector.load %arg3[%c0_63, %c0_64] : memref<1x36xf32, #tpu.memory_space<vmem>>, vector<1x36xf32>
    %65 = arith.addf %63, %64 : vector<1x36xf32>
    %c0_65 = arith.constant 0 : index
    %c0_66 = arith.constant 0 : index
    %c0_67 = arith.constant 0 : index
    %66 = vector.load %arg4[%c0_65, %c0_66, %c0_67] : memref<1x1x36xf32, #tpu.memory_space<vmem>>, vector<1x1x36xf32>
    %67 = vector.shape_cast %66 : vector<1x1x36xf32> to vector<1x36xf32>
    %68 = vector.shape_cast %65 : vector<1x36xf32> to vector<1x1x36xf32>
    tpu.vector_store %arg4[%c0_65, %c0_66, %c0_67], %68 {strides = array<i32>} : memref<1x1x36xf32, #tpu.memory_space<vmem>>, vector<1x1x36xf32>,
    return
  }
  func.func @transform_0(%arg0: i32) -> (i32, i32, i32, i32) {
    %c0_i32 = arith.constant 0 : i32
    %c0_i32_0 = arith.constant 0 : i32
    %c0_i32_1 = arith.constant 0 : i32
    %c0_i32_2 = arith.constant 0 : i32
    return %arg0, %c0_i32, %c0_i32_0, %c0_i32_1 : i32, i32, i32, i32
  }
  func.func @transform_1(%arg0: i32) -> (i32, i32, i32) {
    %c0_i32 = arith.constant 0 : i32
    %c0_i32_0 = arith.constant 0 : i32
    %c0_i32_1 = arith.constant 0 : i32
    %c0_i32_2 = arith.constant 0 : i32
    return %c0_i32, %c0_i32_0, %c0_i32_1 : i32, i32, i32
  }
  func.func @transform_2(%arg0: i32) -> (i32, i32) {
    %c0_i32 = arith.constant 0 : i32
    %c0_i32_0 = arith.constant 0 : i32
    %c0_i32_1 = arith.constant 0 : i32
    return %c0_i32, %c0_i32_0 : i32, i32
  }
  func.func @transform_3(%arg0: i32) -> (i32, i32, i32) {
    %c0_i32 = arith.constant 0 : i32
    %c0_i32_0 = arith.constant 0 : i32
    %c0_i32_1 = arith.constant 0 : i32
    return %arg0, %c0_i32, %c0_i32_0 : i32, i32, i32
  }
}

module attributes {stable_mosaic.version = 11 : i64} {
  func.func @_conv_kernel(%arg0: i32, %arg1: memref<1x4x4x64xbf16, #tpu.memory_space<vmem>>, %arg2: memref<9x64x36xbf16, #tpu.memory_space<vmem>>, %arg3: memref<1x36xf32, #tpu.memory_space<vmem>>, %arg4: memref<1x4x36xf32, #tpu.memory_space<vmem>>) attributes {dimension_semantics = [#tpu.dimension_semantics<parallel>], iteration_bounds = array<i64: 2>, scalar_prefetch = 0 : i64, scratch_operands = 0 : i64, tpu.core_type = #tpu.core_type<tc>, window_params = [{transform_indices = @transform_0, window_bounds = array<i64: 1, 4, 4, 64>}, {pipeline_mode = #tpu.pipeline_mode<synchronous>, transform_indices = @transform_1, window_bounds = array<i64: 9, 64, 36>}, {pipeline_mode = #tpu.pipeline_mode<synchronous>, transform_indices = @transform_2, window_bounds = array<i64: 1, 36>}, {transform_indices = @transform_3, window_bounds = array<i64: 1, 4, 36>}]} {
    %cst = arith.constant 0.000000e+00 : f32
    %0 = vector.broadcast %cst : f32 to vector<4x36xf32>
    %c0 = arith.constant 0 : index
    %c0_0 = arith.constant 0 : index
    %c0_1 = arith.constant 0 : index
    %c0_2 = arith.constant 0 : index
    %1 = vector.load %arg1[%c0, %c0_0, %c0_1, %c0_2] : memref<1x4x4x64xbf16, #tpu.memory_space<vmem>>, vector<1x2x2x64xbf16>
    %2 = vector.shape_cast %1 : vector<1x2x2x64xbf16> to vector<2x2x64xbf16>
    %3 = vector.shape_cast %2 : vector<2x2x64xbf16> to vector<4x64xbf16>
    %c0_3 = arith.constant 0 : index
    %c0_4 = arith.constant 0 : index
    %c0_5 = arith.constant 0 : index
    %4 = vector.load %arg2[%c0_3, %c0_4, %c0_5] : memref<9x64x36xbf16, #tpu.memory_space<vmem>>, vector<1x64x36xbf16>
    %5 = vector.shape_cast %4 : vector<1x64x36xbf16> to vector<64x36xbf16>
    %cst_6 = arith.constant dense<0.000000e+00> : vector<4x36xf32>
    %6 = tpu.matmul %3, %5, %cst_6 {dimension_numbers = #tpu.dot_dimension_numbers<[1], [0], [0], [1], [0, 0, 1, 1], [], []>} : vector<4x64xbf16>, vector<64x36xbf16>, vector<4x36xf32> -> vector<4x36xf32>
    %7 = arith.addf %0, %6 : vector<4x36xf32>
    %c0_7 = arith.constant 0 : index
    %c0_8 = arith.constant 0 : index
    %c1 = arith.constant 1 : index
    %c0_9 = arith.constant 0 : index
    %8 = vector.load %arg1[%c0_7, %c0_8, %c1, %c0_9] : memref<1x4x4x64xbf16, #tpu.memory_space<vmem>>, vector<1x2x2x64xbf16>
    %9 = vector.shape_cast %8 : vector<1x2x2x64xbf16> to vector<2x2x64xbf16>
    %10 = vector.shape_cast %9 : vector<2x2x64xbf16> to vector<4x64xbf16>
    %c1_10 = arith.constant 1 : index
    %c0_11 = arith.constant 0 : index
    %c0_12 = arith.constant 0 : index
    %11 = vector.load %arg2[%c1_10, %c0_11, %c0_12] : memref<9x64x36xbf16, #tpu.memory_space<vmem>>, vector<1x64x36xbf16>
    %12 = vector.shape_cast %11 : vector<1x64x36xbf16> to vector<64x36xbf16>
    %cst_13 = arith.constant dense<0.000000e+00> : vector<4x36xf32>
    %13 = tpu.matmul %10, %12, %cst_13 {dimension_numbers = #tpu.dot_dimension_numbers<[1], [0], [0], [1], [0, 0, 1, 1], [], []>} : vector<4x64xbf16>, vector<64x36xbf16>, vector<4x36xf32> -> vector<4x36xf32>
    %14 = arith.addf %7, %13 : vector<4x36xf32>
    %c0_14 = arith.constant 0 : index
    %c0_15 = arith.constant 0 : index
    %c2 = arith.constant 2 : index
    %c0_16 = arith.constant 0 : index
    %15 = vector.load %arg1[%c0_14, %c0_15, %c2, %c0_16] : memref<1x4x4x64xbf16, #tpu.memory_space<vmem>>, vector<1x2x2x64xbf16>
    %16 = vector.shape_cast %15 : vector<1x2x2x64xbf16> to vector<2x2x64xbf16>
    %17 = vector.shape_cast %16 : vector<2x2x64xbf16> to vector<4x64xbf16>
    %c2_17 = arith.constant 2 : index
    %c0_18 = arith.constant 0 : index
    %c0_19 = arith.constant 0 : index
    %18 = vector.load %arg2[%c2_17, %c0_18, %c0_19] : memref<9x64x36xbf16, #tpu.memory_space<vmem>>, vector<1x64x36xbf16>
    %19 = vector.shape_cast %18 : vector<1x64x36xbf16> to vector<64x36xbf16>
    %cst_20 = arith.constant dense<0.000000e+00> : vector<4x36xf32>
    %20 = tpu.matmul %17, %19, %cst_20 {dimension_numbers = #tpu.dot_dimension_numbers<[1], [0], [0], [1], [0, 0, 1, 1], [], []>} : vector<4x64xbf16>, vector<64x36xbf16>, vector<4x36xf32> -> vector<4x36xf32>
    %21 = arith.addf %14, %20 : vector<4x36xf32>
    %c0_21 = arith.constant 0 : index
    %c1_22 = arith.constant 1 : index
    %c0_23 = arith.constant 0 : index
    %c0_24 = arith.constant 0 : index
    %22 = vector.load %arg1[%c0_21, %c1_22, %c0_23, %c0_24] : memref<1x4x4x64xbf16, #tpu.memory_space<vmem>>, vector<1x2x2x64xbf16>
    %23 = vector.shape_cast %22 : vector<1x2x2x64xbf16> to vector<2x2x64xbf16>
    %24 = vector.shape_cast %23 : vector<2x2x64xbf16> to vector<4x64xbf16>
    %c3 = arith.constant 3 : index
    %c0_25 = arith.constant 0 : index
    %c0_26 = arith.constant 0 : index
    %25 = vector.load %arg2[%c3, %c0_25, %c0_26] : memref<9x64x36xbf16, #tpu.memory_space<vmem>>, vector<1x64x36xbf16>
    %26 = vector.shape_cast %25 : vector<1x64x36xbf16> to vector<64x36xbf16>
    %cst_27 = arith.constant dense<0.000000e+00> : vector<4x36xf32>
    %27 = tpu.matmul %24, %26, %cst_27 {dimension_numbers = #tpu.dot_dimension_numbers<[1], [0], [0], [1], [0, 0, 1, 1], [], []>} : vector<4x64xbf16>, vector<64x36xbf16>, vector<4x36xf32> -> vector<4x36xf32>
    %28 = arith.addf %21, %27 : vector<4x36xf32>
    %c0_28 = arith.constant 0 : index
    %c1_29 = arith.constant 1 : index
    %c1_30 = arith.constant 1 : index
    %c0_31 = arith.constant 0 : index
    %29 = vector.load %arg1[%c0_28, %c1_29, %c1_30, %c0_31] : memref<1x4x4x64xbf16, #tpu.memory_space<vmem>>, vector<1x2x2x64xbf16>
    %30 = vector.shape_cast %29 : vector<1x2x2x64xbf16> to vector<2x2x64xbf16>
    %31 = vector.shape_cast %30 : vector<2x2x64xbf16> to vector<4x64xbf16>
    %c4 = arith.constant 4 : index
    %c0_32 = arith.constant 0 : index
    %c0_33 = arith.constant 0 : index
    %32 = vector.load %arg2[%c4, %c0_32, %c0_33] : memref<9x64x36xbf16, #tpu.memory_space<vmem>>, vector<1x64x36xbf16>
    %33 = vector.shape_cast %32 : vector<1x64x36xbf16> to vector<64x36xbf16>
    %cst_34 = arith.constant dense<0.000000e+00> : vector<4x36xf32>
    %34 = tpu.matmul %31, %33, %cst_34 {dimension_numbers = #tpu.dot_dimension_numbers<[1], [0], [0], [1], [0, 0, 1, 1], [], []>} : vector<4x64xbf16>, vector<64x36xbf16>, vector<4x36xf32> -> vector<4x36xf32>
    %35 = arith.addf %28, %34 : vector<4x36xf32>
    %c0_35 = arith.constant 0 : index
    %c1_36 = arith.constant 1 : index
    %c2_37 = arith.constant 2 : index
    %c0_38 = arith.constant 0 : index
    %36 = vector.load %arg1[%c0_35, %c1_36, %c2_37, %c0_38] : memref<1x4x4x64xbf16, #tpu.memory_space<vmem>>, vector<1x2x2x64xbf16>
    %37 = vector.shape_cast %36 : vector<1x2x2x64xbf16> to vector<2x2x64xbf16>
    %38 = vector.shape_cast %37 : vector<2x2x64xbf16> to vector<4x64xbf16>
    %c5 = arith.constant 5 : index
    %c0_39 = arith.constant 0 : index
    %c0_40 = arith.constant 0 : index
    %39 = vector.load %arg2[%c5, %c0_39, %c0_40] : memref<9x64x36xbf16, #tpu.memory_space<vmem>>, vector<1x64x36xbf16>
    %40 = vector.shape_cast %39 : vector<1x64x36xbf16> to vector<64x36xbf16>
    %cst_41 = arith.constant dense<0.000000e+00> : vector<4x36xf32>
    %41 = tpu.matmul %38, %40, %cst_41 {dimension_numbers = #tpu.dot_dimension_numbers<[1], [0], [0], [1], [0, 0, 1, 1], [], []>} : vector<4x64xbf16>, vector<64x36xbf16>, vector<4x36xf32> -> vector<4x36xf32>
    %42 = arith.addf %35, %41 : vector<4x36xf32>
    %c0_42 = arith.constant 0 : index
    %c2_43 = arith.constant 2 : index
    %c0_44 = arith.constant 0 : index
    %c0_45 = arith.constant 0 : index
    %43 = vector.load %arg1[%c0_42, %c2_43, %c0_44, %c0_45] : memref<1x4x4x64xbf16, #tpu.memory_space<vmem>>, vector<1x2x2x64xbf16>
    %44 = vector.shape_cast %43 : vector<1x2x2x64xbf16> to vector<2x2x64xbf16>
    %45 = vector.shape_cast %44 : vector<2x2x64xbf16> to vector<4x64xbf16>
    %c6 = arith.constant 6 : index
    %c0_46 = arith.constant 0 : index
    %c0_47 = arith.constant 0 : index
    %46 = vector.load %arg2[%c6, %c0_46, %c0_47] : memref<9x64x36xbf16, #tpu.memory_space<vmem>>, vector<1x64x36xbf16>
    %47 = vector.shape_cast %46 : vector<1x64x36xbf16> to vector<64x36xbf16>
    %cst_48 = arith.constant dense<0.000000e+00> : vector<4x36xf32>
    %48 = tpu.matmul %45, %47, %cst_48 {dimension_numbers = #tpu.dot_dimension_numbers<[1], [0], [0], [1], [0, 0, 1, 1], [], []>} : vector<4x64xbf16>, vector<64x36xbf16>, vector<4x36xf32> -> vector<4x36xf32>
    %49 = arith.addf %42, %48 : vector<4x36xf32>
    %c0_49 = arith.constant 0 : index
    %c2_50 = arith.constant 2 : index
    %c1_51 = arith.constant 1 : index
    %c0_52 = arith.constant 0 : index
    %50 = vector.load %arg1[%c0_49, %c2_50, %c1_51, %c0_52] : memref<1x4x4x64xbf16, #tpu.memory_space<vmem>>, vector<1x2x2x64xbf16>
    %51 = vector.shape_cast %50 : vector<1x2x2x64xbf16> to vector<2x2x64xbf16>
    %52 = vector.shape_cast %51 : vector<2x2x64xbf16> to vector<4x64xbf16>
    %c7 = arith.constant 7 : index
    %c0_53 = arith.constant 0 : index
    %c0_54 = arith.constant 0 : index
    %53 = vector.load %arg2[%c7, %c0_53, %c0_54] : memref<9x64x36xbf16, #tpu.memory_space<vmem>>, vector<1x64x36xbf16>
    %54 = vector.shape_cast %53 : vector<1x64x36xbf16> to vector<64x36xbf16>
    %cst_55 = arith.constant dense<0.000000e+00> : vector<4x36xf32>
    %55 = tpu.matmul %52, %54, %cst_55 {dimension_numbers = #tpu.dot_dimension_numbers<[1], [0], [0], [1], [0, 0, 1, 1], [], []>} : vector<4x64xbf16>, vector<64x36xbf16>, vector<4x36xf32> -> vector<4x36xf32>
    %56 = arith.addf %49, %55 : vector<4x36xf32>
    %c0_56 = arith.constant 0 : index
    %c2_57 = arith.constant 2 : index
    %c2_58 = arith.constant 2 : index
    %c0_59 = arith.constant 0 : index
    %57 = vector.load %arg1[%c0_56, %c2_57, %c2_58, %c0_59] : memref<1x4x4x64xbf16, #tpu.memory_space<vmem>>, vector<1x2x2x64xbf16>
    %58 = vector.shape_cast %57 : vector<1x2x2x64xbf16> to vector<2x2x64xbf16>
    %59 = vector.shape_cast %58 : vector<2x2x64xbf16> to vector<4x64xbf16>
    %c8 = arith.constant 8 : index
    %c0_60 = arith.constant 0 : index
    %c0_61 = arith.constant 0 : index
    %60 = vector.load %arg2[%c8, %c0_60, %c0_61] : memref<9x64x36xbf16, #tpu.memory_space<vmem>>, vector<1x64x36xbf16>
    %61 = vector.shape_cast %60 : vector<1x64x36xbf16> to vector<64x36xbf16>
    %cst_62 = arith.constant dense<0.000000e+00> : vector<4x36xf32>
    %62 = tpu.matmul %59, %61, %cst_62 {dimension_numbers = #tpu.dot_dimension_numbers<[1], [0], [0], [1], [0, 0, 1, 1], [], []>} : vector<4x64xbf16>, vector<64x36xbf16>, vector<4x36xf32> -> vector<4x36xf32>
    %63 = arith.addf %56, %62 : vector<4x36xf32>
    %c0_63 = arith.constant 0 : index
    %c0_64 = arith.constant 0 : index
    %64 = vector.load %arg3[%c0_63, %c0_64] : memref<1x36xf32, #tpu.memory_space<vmem>>, vector<1x36xf32>
    %65 = vector.broadcast %64 : vector<1x36xf32> to vector<4x36xf32>
    %66 = arith.addf %63, %65 : vector<4x36xf32>
    %c0_65 = arith.constant 0 : index
    %c0_66 = arith.constant 0 : index
    %c0_67 = arith.constant 0 : index
    %67 = vector.load %arg4[%c0_65, %c0_66, %c0_67] : memref<1x4x36xf32, #tpu.memory_space<vmem>>, vector<1x4x36xf32>
    %68 = vector.shape_cast %67 : vector<1x4x36xf32> to vector<4x36xf32>
    %69 = vector.shape_cast %66 : vector<4x36xf32> to vector<1x4x36xf32>
    tpu.vector_store %arg4[%c0_65, %c0_66, %c0_67], %69 {strides = array<i32>} : memref<1x4x36xf32, #tpu.memory_space<vmem>>, vector<1x4x36xf32>,
    return
  }
  func.func @transform_0(%arg0: i32) -> (i32, i32, i32, i32) {
    %c0_i32 = arith.constant 0 : i32
    %c0_i32_0 = arith.constant 0 : i32
    %c0_i32_1 = arith.constant 0 : i32
    %c0_i32_2 = arith.constant 0 : i32
    return %arg0, %c0_i32, %c0_i32_0, %c0_i32_1 : i32, i32, i32, i32
  }
  func.func @transform_1(%arg0: i32) -> (i32, i32, i32) {
    %c0_i32 = arith.constant 0 : i32
    %c0_i32_0 = arith.constant 0 : i32
    %c0_i32_1 = arith.constant 0 : i32
    %c0_i32_2 = arith.constant 0 : i32
    return %c0_i32, %c0_i32_0, %c0_i32_1 : i32, i32, i32
  }
  func.func @transform_2(%arg0: i32) -> (i32, i32) {
    %c0_i32 = arith.constant 0 : i32
    %c0_i32_0 = arith.constant 0 : i32
    %c0_i32_1 = arith.constant 0 : i32
    return %c0_i32, %c0_i32_0 : i32, i32
  }
  func.func @transform_3(%arg0: i32) -> (i32, i32, i32) {
    %c0_i32 = arith.constant 0 : i32
    %c0_i32_0 = arith.constant 0 : i32
    %c0_i32_1 = arith.constant 0 : i32
    return %arg0, %c0_i32, %c0_i32_0 : i32, i32, i32
  }
}

module attributes {stable_mosaic.version = 11 : i64} {
  func.func @_conv_kernel(%arg0: i32, %arg1: memref<1x6x6x32xbf16, #tpu.memory_space<vmem>>, %arg2: memref<9x32x36xbf16, #tpu.memory_space<vmem>>, %arg3: memref<1x36xf32, #tpu.memory_space<vmem>>, %arg4: memref<1x16x36xf32, #tpu.memory_space<vmem>>) attributes {dimension_semantics = [#tpu.dimension_semantics<parallel>], iteration_bounds = array<i64: 2>, scalar_prefetch = 0 : i64, scratch_operands = 0 : i64, tpu.core_type = #tpu.core_type<tc>, window_params = [{transform_indices = @transform_0, window_bounds = array<i64: 1, 6, 6, 32>}, {pipeline_mode = #tpu.pipeline_mode<synchronous>, transform_indices = @transform_1, window_bounds = array<i64: 9, 32, 36>}, {pipeline_mode = #tpu.pipeline_mode<synchronous>, transform_indices = @transform_2, window_bounds = array<i64: 1, 36>}, {transform_indices = @transform_3, window_bounds = array<i64: 1, 16, 36>}]} {
    %cst = arith.constant 0.000000e+00 : f32
    %0 = vector.broadcast %cst : f32 to vector<16x36xf32>
    %c0 = arith.constant 0 : index
    %c0_0 = arith.constant 0 : index
    %c0_1 = arith.constant 0 : index
    %c0_2 = arith.constant 0 : index
    %1 = vector.load %arg1[%c0, %c0_0, %c0_1, %c0_2] : memref<1x6x6x32xbf16, #tpu.memory_space<vmem>>, vector<1x4x4x32xbf16>
    %2 = vector.shape_cast %1 : vector<1x4x4x32xbf16> to vector<4x4x32xbf16>
    %3 = vector.shape_cast %2 : vector<4x4x32xbf16> to vector<16x32xbf16>
    %c0_3 = arith.constant 0 : index
    %c0_4 = arith.constant 0 : index
    %c0_5 = arith.constant 0 : index
    %4 = vector.load %arg2[%c0_3, %c0_4, %c0_5] : memref<9x32x36xbf16, #tpu.memory_space<vmem>>, vector<1x32x36xbf16>
    %5 = vector.shape_cast %4 : vector<1x32x36xbf16> to vector<32x36xbf16>
    %cst_6 = arith.constant dense<0.000000e+00> : vector<16x36xf32>
    %6 = tpu.matmul %3, %5, %cst_6 {dimension_numbers = #tpu.dot_dimension_numbers<[1], [0], [0], [1], [0, 0, 1, 1], [], []>} : vector<16x32xbf16>, vector<32x36xbf16>, vector<16x36xf32> -> vector<16x36xf32>
    %7 = arith.addf %0, %6 : vector<16x36xf32>
    %c0_7 = arith.constant 0 : index
    %c0_8 = arith.constant 0 : index
    %c1 = arith.constant 1 : index
    %c0_9 = arith.constant 0 : index
    %8 = vector.load %arg1[%c0_7, %c0_8, %c1, %c0_9] : memref<1x6x6x32xbf16, #tpu.memory_space<vmem>>, vector<1x4x4x32xbf16>
    %9 = vector.shape_cast %8 : vector<1x4x4x32xbf16> to vector<4x4x32xbf16>
    %10 = vector.shape_cast %9 : vector<4x4x32xbf16> to vector<16x32xbf16>
    %c1_10 = arith.constant 1 : index
    %c0_11 = arith.constant 0 : index
    %c0_12 = arith.constant 0 : index
    %11 = vector.load %arg2[%c1_10, %c0_11, %c0_12] : memref<9x32x36xbf16, #tpu.memory_space<vmem>>, vector<1x32x36xbf16>
    %12 = vector.shape_cast %11 : vector<1x32x36xbf16> to vector<32x36xbf16>
    %cst_13 = arith.constant dense<0.000000e+00> : vector<16x36xf32>
    %13 = tpu.matmul %10, %12, %cst_13 {dimension_numbers = #tpu.dot_dimension_numbers<[1], [0], [0], [1], [0, 0, 1, 1], [], []>} : vector<16x32xbf16>, vector<32x36xbf16>, vector<16x36xf32> -> vector<16x36xf32>
    %14 = arith.addf %7, %13 : vector<16x36xf32>
    %c0_14 = arith.constant 0 : index
    %c0_15 = arith.constant 0 : index
    %c2 = arith.constant 2 : index
    %c0_16 = arith.constant 0 : index
    %15 = vector.load %arg1[%c0_14, %c0_15, %c2, %c0_16] : memref<1x6x6x32xbf16, #tpu.memory_space<vmem>>, vector<1x4x4x32xbf16>
    %16 = vector.shape_cast %15 : vector<1x4x4x32xbf16> to vector<4x4x32xbf16>
    %17 = vector.shape_cast %16 : vector<4x4x32xbf16> to vector<16x32xbf16>
    %c2_17 = arith.constant 2 : index
    %c0_18 = arith.constant 0 : index
    %c0_19 = arith.constant 0 : index
    %18 = vector.load %arg2[%c2_17, %c0_18, %c0_19] : memref<9x32x36xbf16, #tpu.memory_space<vmem>>, vector<1x32x36xbf16>
    %19 = vector.shape_cast %18 : vector<1x32x36xbf16> to vector<32x36xbf16>
    %cst_20 = arith.constant dense<0.000000e+00> : vector<16x36xf32>
    %20 = tpu.matmul %17, %19, %cst_20 {dimension_numbers = #tpu.dot_dimension_numbers<[1], [0], [0], [1], [0, 0, 1, 1], [], []>} : vector<16x32xbf16>, vector<32x36xbf16>, vector<16x36xf32> -> vector<16x36xf32>
    %21 = arith.addf %14, %20 : vector<16x36xf32>
    %c0_21 = arith.constant 0 : index
    %c1_22 = arith.constant 1 : index
    %c0_23 = arith.constant 0 : index
    %c0_24 = arith.constant 0 : index
    %22 = vector.load %arg1[%c0_21, %c1_22, %c0_23, %c0_24] : memref<1x6x6x32xbf16, #tpu.memory_space<vmem>>, vector<1x4x4x32xbf16>
    %23 = vector.shape_cast %22 : vector<1x4x4x32xbf16> to vector<4x4x32xbf16>
    %24 = vector.shape_cast %23 : vector<4x4x32xbf16> to vector<16x32xbf16>
    %c3 = arith.constant 3 : index
    %c0_25 = arith.constant 0 : index
    %c0_26 = arith.constant 0 : index
    %25 = vector.load %arg2[%c3, %c0_25, %c0_26] : memref<9x32x36xbf16, #tpu.memory_space<vmem>>, vector<1x32x36xbf16>
    %26 = vector.shape_cast %25 : vector<1x32x36xbf16> to vector<32x36xbf16>
    %cst_27 = arith.constant dense<0.000000e+00> : vector<16x36xf32>
    %27 = tpu.matmul %24, %26, %cst_27 {dimension_numbers = #tpu.dot_dimension_numbers<[1], [0], [0], [1], [0, 0, 1, 1], [], []>} : vector<16x32xbf16>, vector<32x36xbf16>, vector<16x36xf32> -> vector<16x36xf32>
    %28 = arith.addf %21, %27 : vector<16x36xf32>
    %c0_28 = arith.constant 0 : index
    %c1_29 = arith.constant 1 : index
    %c1_30 = arith.constant 1 : index
    %c0_31 = arith.constant 0 : index
    %29 = vector.load %arg1[%c0_28, %c1_29, %c1_30, %c0_31] : memref<1x6x6x32xbf16, #tpu.memory_space<vmem>>, vector<1x4x4x32xbf16>
    %30 = vector.shape_cast %29 : vector<1x4x4x32xbf16> to vector<4x4x32xbf16>
    %31 = vector.shape_cast %30 : vector<4x4x32xbf16> to vector<16x32xbf16>
    %c4 = arith.constant 4 : index
    %c0_32 = arith.constant 0 : index
    %c0_33 = arith.constant 0 : index
    %32 = vector.load %arg2[%c4, %c0_32, %c0_33] : memref<9x32x36xbf16, #tpu.memory_space<vmem>>, vector<1x32x36xbf16>
    %33 = vector.shape_cast %32 : vector<1x32x36xbf16> to vector<32x36xbf16>
    %cst_34 = arith.constant dense<0.000000e+00> : vector<16x36xf32>
    %34 = tpu.matmul %31, %33, %cst_34 {dimension_numbers = #tpu.dot_dimension_numbers<[1], [0], [0], [1], [0, 0, 1, 1], [], []>} : vector<16x32xbf16>, vector<32x36xbf16>, vector<16x36xf32> -> vector<16x36xf32>
    %35 = arith.addf %28, %34 : vector<16x36xf32>
    %c0_35 = arith.constant 0 : index
    %c1_36 = arith.constant 1 : index
    %c2_37 = arith.constant 2 : index
    %c0_38 = arith.constant 0 : index
    %36 = vector.load %arg1[%c0_35, %c1_36, %c2_37, %c0_38] : memref<1x6x6x32xbf16, #tpu.memory_space<vmem>>, vector<1x4x4x32xbf16>
    %37 = vector.shape_cast %36 : vector<1x4x4x32xbf16> to vector<4x4x32xbf16>
    %38 = vector.shape_cast %37 : vector<4x4x32xbf16> to vector<16x32xbf16>
    %c5 = arith.constant 5 : index
    %c0_39 = arith.constant 0 : index
    %c0_40 = arith.constant 0 : index
    %39 = vector.load %arg2[%c5, %c0_39, %c0_40] : memref<9x32x36xbf16, #tpu.memory_space<vmem>>, vector<1x32x36xbf16>
    %40 = vector.shape_cast %39 : vector<1x32x36xbf16> to vector<32x36xbf16>
    %cst_41 = arith.constant dense<0.000000e+00> : vector<16x36xf32>
    %41 = tpu.matmul %38, %40, %cst_41 {dimension_numbers = #tpu.dot_dimension_numbers<[1], [0], [0], [1], [0, 0, 1, 1], [], []>} : vector<16x32xbf16>, vector<32x36xbf16>, vector<16x36xf32> -> vector<16x36xf32>
    %42 = arith.addf %35, %41 : vector<16x36xf32>
    %c0_42 = arith.constant 0 : index
    %c2_43 = arith.constant 2 : index
    %c0_44 = arith.constant 0 : index
    %c0_45 = arith.constant 0 : index
    %43 = vector.load %arg1[%c0_42, %c2_43, %c0_44, %c0_45] : memref<1x6x6x32xbf16, #tpu.memory_space<vmem>>, vector<1x4x4x32xbf16>
    %44 = vector.shape_cast %43 : vector<1x4x4x32xbf16> to vector<4x4x32xbf16>
    %45 = vector.shape_cast %44 : vector<4x4x32xbf16> to vector<16x32xbf16>
    %c6 = arith.constant 6 : index
    %c0_46 = arith.constant 0 : index
    %c0_47 = arith.constant 0 : index
    %46 = vector.load %arg2[%c6, %c0_46, %c0_47] : memref<9x32x36xbf16, #tpu.memory_space<vmem>>, vector<1x32x36xbf16>
    %47 = vector.shape_cast %46 : vector<1x32x36xbf16> to vector<32x36xbf16>
    %cst_48 = arith.constant dense<0.000000e+00> : vector<16x36xf32>
    %48 = tpu.matmul %45, %47, %cst_48 {dimension_numbers = #tpu.dot_dimension_numbers<[1], [0], [0], [1], [0, 0, 1, 1], [], []>} : vector<16x32xbf16>, vector<32x36xbf16>, vector<16x36xf32> -> vector<16x36xf32>
    %49 = arith.addf %42, %48 : vector<16x36xf32>
    %c0_49 = arith.constant 0 : index
    %c2_50 = arith.constant 2 : index
    %c1_51 = arith.constant 1 : index
    %c0_52 = arith.constant 0 : index
    %50 = vector.load %arg1[%c0_49, %c2_50, %c1_51, %c0_52] : memref<1x6x6x32xbf16, #tpu.memory_space<vmem>>, vector<1x4x4x32xbf16>
    %51 = vector.shape_cast %50 : vector<1x4x4x32xbf16> to vector<4x4x32xbf16>
    %52 = vector.shape_cast %51 : vector<4x4x32xbf16> to vector<16x32xbf16>
    %c7 = arith.constant 7 : index
    %c0_53 = arith.constant 0 : index
    %c0_54 = arith.constant 0 : index
    %53 = vector.load %arg2[%c7, %c0_53, %c0_54] : memref<9x32x36xbf16, #tpu.memory_space<vmem>>, vector<1x32x36xbf16>
    %54 = vector.shape_cast %53 : vector<1x32x36xbf16> to vector<32x36xbf16>
    %cst_55 = arith.constant dense<0.000000e+00> : vector<16x36xf32>
    %55 = tpu.matmul %52, %54, %cst_55 {dimension_numbers = #tpu.dot_dimension_numbers<[1], [0], [0], [1], [0, 0, 1, 1], [], []>} : vector<16x32xbf16>, vector<32x36xbf16>, vector<16x36xf32> -> vector<16x36xf32>
    %56 = arith.addf %49, %55 : vector<16x36xf32>
    %c0_56 = arith.constant 0 : index
    %c2_57 = arith.constant 2 : index
    %c2_58 = arith.constant 2 : index
    %c0_59 = arith.constant 0 : index
    %57 = vector.load %arg1[%c0_56, %c2_57, %c2_58, %c0_59] : memref<1x6x6x32xbf16, #tpu.memory_space<vmem>>, vector<1x4x4x32xbf16>
    %58 = vector.shape_cast %57 : vector<1x4x4x32xbf16> to vector<4x4x32xbf16>
    %59 = vector.shape_cast %58 : vector<4x4x32xbf16> to vector<16x32xbf16>
    %c8 = arith.constant 8 : index
    %c0_60 = arith.constant 0 : index
    %c0_61 = arith.constant 0 : index
    %60 = vector.load %arg2[%c8, %c0_60, %c0_61] : memref<9x32x36xbf16, #tpu.memory_space<vmem>>, vector<1x32x36xbf16>
    %61 = vector.shape_cast %60 : vector<1x32x36xbf16> to vector<32x36xbf16>
    %cst_62 = arith.constant dense<0.000000e+00> : vector<16x36xf32>
    %62 = tpu.matmul %59, %61, %cst_62 {dimension_numbers = #tpu.dot_dimension_numbers<[1], [0], [0], [1], [0, 0, 1, 1], [], []>} : vector<16x32xbf16>, vector<32x36xbf16>, vector<16x36xf32> -> vector<16x36xf32>
    %63 = arith.addf %56, %62 : vector<16x36xf32>
    %c0_63 = arith.constant 0 : index
    %c0_64 = arith.constant 0 : index
    %64 = vector.load %arg3[%c0_63, %c0_64] : memref<1x36xf32, #tpu.memory_space<vmem>>, vector<1x36xf32>
    %65 = vector.broadcast %64 : vector<1x36xf32> to vector<16x36xf32>
    %66 = arith.addf %63, %65 : vector<16x36xf32>
    %c0_65 = arith.constant 0 : index
    %c0_66 = arith.constant 0 : index
    %c0_67 = arith.constant 0 : index
    %67 = vector.load %arg4[%c0_65, %c0_66, %c0_67] : memref<1x16x36xf32, #tpu.memory_space<vmem>>, vector<1x16x36xf32>
    %68 = vector.shape_cast %67 : vector<1x16x36xf32> to vector<16x36xf32>
    %69 = vector.shape_cast %66 : vector<16x36xf32> to vector<1x16x36xf32>
    tpu.vector_store %arg4[%c0_65, %c0_66, %c0_67], %69 {strides = array<i32>} : memref<1x16x36xf32, #tpu.memory_space<vmem>>, vector<1x16x36xf32>,
    return
  }
  func.func @transform_0(%arg0: i32) -> (i32, i32, i32, i32) {
    %c0_i32 = arith.constant 0 : i32
    %c0_i32_0 = arith.constant 0 : i32
    %c0_i32_1 = arith.constant 0 : i32
    %c0_i32_2 = arith.constant 0 : i32
    return %arg0, %c0_i32, %c0_i32_0, %c0_i32_1 : i32, i32, i32, i32
  }
  func.func @transform_1(%arg0: i32) -> (i32, i32, i32) {
    %c0_i32 = arith.constant 0 : i32
    %c0_i32_0 = arith.constant 0 : i32
    %c0_i32_1 = arith.constant 0 : i32
    %c0_i32_2 = arith.constant 0 : i32
    return %c0_i32, %c0_i32_0, %c0_i32_1 : i32, i32, i32
  }
  func.func @transform_2(%arg0: i32) -> (i32, i32) {
    %c0_i32 = arith.constant 0 : i32
    %c0_i32_0 = arith.constant 0 : i32
    %c0_i32_1 = arith.constant 0 : i32
    return %c0_i32, %c0_i32_0 : i32, i32
  }
  func.func @transform_3(%arg0: i32) -> (i32, i32, i32) {
    %c0_i32 = arith.constant 0 : i32
    %c0_i32_0 = arith.constant 0 : i32
    %c0_i32_1 = arith.constant 0 : i32
    return %arg0, %c0_i32, %c0_i32_0 : i32, i32, i32
  }
}

</mosaic_0001>

<bundles_post_ra>
// kernel: ssd_forward.8
= control target key start
LH: loop header
LB: loop body
LE: loop exit
PB: predicated region body
PF: predicated region fallthrough
CT: control target
= control target key end

     0   :  { %s847_s12 = smov 0   ;;  %s980_s0 = inlined_call_operand.vmem [shape: bf16[2,5,5,64], index: 0, kind: input, shape index: {}]   ;;  %s981_s1 = inlined_call_operand.vmem [shape: bf16[4,64,32], index: 1, kind: input, shape index: {}]   ;;  %s982_s2 = inlined_call_operand.vmem [shape: f32[1,32], index: 2, kind: input, shape index: {}]   ;;  %s983_s3 = inlined_call_operand.vmem [shape: bf16[2,16,32], index: 3, kind: output, shape index: {}]  }
   0x1 LB: > { %s682_s13 = sadd.s32 4294967295, %s825_s12   ;;  %p686_p0 = scmp.ge.s32.totalorder %s825_s12, 1  ;;  %s825_s12 = sphi %s847_s12, %s13_s12  }
   0x2   : > { %p137_p1 = scmp.lt.s32.totalorder %s825_s12, 3 }
   0x4   : > { %p138_p2 = pnand %p686_p0, %p137_p1 }
   0x5   : > { %p161_p3 = scmp.lt.s32.totalorder (!%p138_p2), %s682_s13, 1 }
   0x6   : > { %141 = sbr.rel (%p138_p2) target bundleno = 224 (0xe0), region = 32 }
   0xb   : > { %v804_v0 = vld [vmem:[%s981_s1 + $0x58] sm:$0xff]  ;;  %v803_v3 = vld [vmem:[%s981_s1 + $0x50] sm:$0xff]  ;;  %s987_s13 = smov (!%p161_p3, %s682_s13), 1  ;;  %v802_v8 = vld [vmem:[%s981_s1 + $0x48] sm:$0xff]  ;;  %vm196_vm0 = vcmask 1041408   ;;  %vm200_vm1 = vcmask 1043458  }
   0xc   : > { %v800_v1 = vld [vmem:[%s981_s1 + $0x38] sm:$0xff]  ;;  %451 = vmatpush.bf16.msra.mxu2 %v804_v0  ;;  %v799_v4 = vld [vmem:[%s981_s1 + $0x30] sm:$0xff]  ;;  %s809_s30 = smul.u32 20, %s987_s13  ;;  %v798_v9 = vld [vmem:[%s981_s1 + $0x28] sm:$0xff]  ;;  %vm222_vm2 = vsmask.f32 1280 }
   0xd   : > { %v796_v2 = vld [vmem:[%s981_s1 + $0x18] sm:$0xff]  ;;  %333 = vmatpush.bf16.msra.mxu0 %v800_v1  ;;  %v795_v6 = vld [vmem:[%s981_s1 + $0x10] sm:$0xff]  ;;  %v794_v10 = vld [vmem:[%s981_s1 + $0x8] sm:$0xff]  ;;  %vm223_vm3 = vsmask.f32 3336  ;;  %vm326_vm9 = vcmask 523264  }
   0xe   : > { %v808_v5 = vld [vmem:[%s981_s1 + $0x78] sm:$0xff]  ;;  %385 = vmatpush.bf16.msra.mxu1 %v796_v2  ;;  %v807_v7 = vld [vmem:[%s981_s1 + $0x70] sm:$0xff]  ;;  %s891_s10 = scalar_lea.vmem %s980_s0, %s809_s30  ;;  %v801_v17 = vld [vmem:[%s981_s1 + $0x40] sm:$0xff]  ;;  %vm225_vm4 = vsmask.f32 5392  ;;  %s792_s27 = sshll.u32 %s987_s13, 3 }
   0xf   : > { %602 = vmatpush.bf16.msra.mxu3 %v808_v5  ;;  %v184_v11 = vld [vmem:[%s891_s10] sm:$0x7]  ;;  %v185_v12 = vld [vmem:[%s891_s10 + $0x4] sm:$0x7]  ;;  %v186_v13 = vld [vmem:[%s891_s10 + $0x8] sm:$0x7]  ;;  %s170_s30 = scalar_lea.vmem %s983_s3, %s792_s27 }
  0x10   : > { %452 = vmatpush.bf16.msra.mxu2 %v803_v3  ;;  %v187_v14 = vld [vmem:[%s891_s10 + $0xc] sm:$0x7]  ;;  %v192_v15 = vrot.slane %v184_v11, 2  ;;  %v193_v16 = vrot.slane %v185_v12, 2  ;;  %v797_v18 = vld [vmem:[%s981_s1 + $0x20] sm:$0xff]  ;;  %v194_v19 = vrot.slane %v186_v13, 2  ;;  %vm224_vm5 = vmor %vm222_vm2, %vm223_vm3 }
  0x11   : > { %334 = vmatpush.bf16.msra.mxu0 %v799_v4  ;;  %v195_v20 = vrot.slane %v187_v14, 2  ;;  %v793_v21 = vld [vmem:[%s981_s1] sm:$0xff]  ;;  %vm226_vm6 = vmor %vm224_vm5, %vm225_vm4  ;;  %vm227_vm7 = vsmask.f32 7448  ;;  %vm624_vm10 = vcmask 257024  }
  0x12   : > { %386 = vmatpush.bf16.msra.mxu1 %v795_v6  ;;  %v199_v22 = vsel %vm196_vm0, %v184_v11, %v192_v15  ;;  %v201_v23 = vsel %vm200_vm1, %v184_v11, %v192_v15  ;;  %v206_v24 = vsel %vm196_vm0, %v185_v12, %v193_v16  ;;  %v207_v25 = vsel %vm200_vm1, %v185_v12, %v193_v16  ;;  %vm920_vm8 = vmor %vm226_vm6, %vm227_vm7  ;;  %v805_v11 = vld [vmem:[%s981_s1 + $0x60] sm:$0xff]  ;;  %v764_v12 = vld [vmem:[%s891_s10 + $0x10] sm:$0x7] }
  0x13   : > { %603 = vmatpush.bf16.msra.mxu3 %v807_v7  ;;  %v203_v26 = vrot.slane %v201_v23, 2  ;;  %v209_v27 = vrot.slane %v207_v25, 2  ;;  %v212_v28 = vsel %vm196_vm0, %v186_v13, %v194_v19  ;;  %v213_v29 = vsel %vm200_vm1, %v186_v13, %v194_v19  ;;  %v761_v7 = vld [vmem:[%s891_s10 + $0x4] sm:$0x7] }
  0x14   : > { %453 = vmatpush.bf16.msra.mxu2 %v802_v8  ;;  %v215_v30 = vrot.slane %v213_v29, 2  ;;  %v218_v31 = vsel %vm196_vm0, %v187_v14, %v195_v20  ;;  %v219_v32 = vsel %vm200_vm1, %v187_v14, %v195_v20  ;;  %v229_v33 = vshrl.u32 %v199_v22, 16  ;;  %v806_v8 = vld [vmem:[%s981_s1 + $0x68] sm:$0xff]  ;;  %v172_v14 = vld [vmem:[%s891_s10] sm:$0x3] }
  0x15   : > { %335 = vmatpush.bf16.msra.mxu0 %v798_v9  ;;  %v221_v34 = vrot.slane %v219_v32, 2  ;;  %v232_v35 = vshll.u32 %v199_v22, 16  ;;  %v238_v36 = vshll.u32 %v203_v26, 16  ;;  %v242_v37 = vshrl.u32 %v206_v24, 16  ;;  %v762_v9 = vld [vmem:[%s891_s10 + $0x8] sm:$0x7] }
  0x16   : > { %387 = vmatpush.bf16.msra.mxu1 %v794_v10  ;;  %v231_v38 = vrot.slane %v229_v33, 6  ;;  %v245_v39 = vshll.u32 %v206_v24, 16  ;;  %v251_v40 = vshll.u32 %v209_v27, 16  ;;  %v255_v41 = vshrl.u32 %v212_v28, 16  ;;  %v763_v10 = vld [vmem:[%s891_s10 + $0xc] sm:$0x7] }
  0x17   : > { %v234_v42 = vrot.slane %v232_v35, 7  ;;  %v244_v43 = vrot.slane %v242_v37, 6  ;;  %v258_v44 = vshll.u32 %v212_v28, 16  ;;  %v240_v45 = vrot.slane %v238_v36, 7  ;;  %604 = vmatpush.bf16.msra.mxu3 %v806_v8  ;;  %v173_v16 = vld [vmem:[%s891_s10 + $0x4] sm:$0x3] }
  0x18   : > { %454 = vmatpush.bf16.msra.mxu2 %v801_v17  ;;  %v247_v46 = vrot.slane %v245_v39, 7  ;;  %v257_v47 = vrot.slane %v255_v41, 6  ;;  %v264_v48 = vshll.u32 %v215_v30, 16  ;;  %v268_v51 = vshrl.u32 %v218_v31, 16  ;;  %v732_v37 = vld [vmem:[%s891_s10 + $0x4] sm:$0x3] }
  0x19   : > { %336 = vmatpush.bf16.msra.mxu0 %v797_v18  ;;  %v235_v49 = vor.u32 %v234_v42, %v231_v38  ;;  %v260_v50 = vrot.slane %v258_v44, 7  ;;  %v271_v52 = vshll.u32 %v218_v31, 16  ;;  %v253_v55 = vrot.slane %v251_v40, 7  ;;  %v174_v18 = vld [vmem:[%s891_s10 + $0x8] sm:$0x3] }
  0x1a   : > { %388 = vmatpush.bf16.msra.mxu1 %v793_v21  ;;  %v248_v54 = vor.u32 %v247_v46, %v244_v43  ;;  %v266_v56 = vrot.slane %v264_v48, 7  ;;  %v277_v57 = vshll.u32 %v221_v34, 16  ;;  %v270_v60 = vrot.slane %v268_v51, 6  ;;  %v175_v21 = vld [vmem:[%s891_s10 + $0xc] sm:$0x3] }
  0x1b   : > { %v236_v58 = vrot.slane %v235_v49, 2  ;;  %v261_v59 = vor.u32 %v260_v50, %v257_v47  ;;  %v273_v61 = vrot.slane %v271_v52, 7  ;;  %v471_v13 = vrot.slane %v761_v7, 2  ;;  %605 = vmatpush.bf16.msra.mxu3 %v805_v11  ;;  %v733_v42 = vld [vmem:[%s891_s10 + $0x8] sm:$0x3] }
  0x1c   : > { %v249_v62 = vrot.slane %v248_v54, 2  ;;  %v279_v2 = vrot.slane %v277_v57, 7  ;;  %v472_v15 = vrot.slane %v762_v9, 2  ;;  %v473_v17 = vrot.slane %v763_v10, 2  ;;  %v734_v46 = vld [vmem:[%s891_s10 + $0xc] sm:$0x3] }
  0x1d   : > { %v241_v63 = vsel %vm920_vm8, %v236_v58, %v240_v45  ;;  %v262_v0 = vrot.slane %v261_v59, 2  ;;  %v274_v1 = vor.u32 %v273_v61, %v270_v60  ;;  %v474_v20 = vrot.slane %v764_v12, 2 }
  0x1e   : > { %v254_v3 = vsel %vm920_vm8, %v249_v62, %v253_v55  ;;  %291 = vst [vmem:[#allocation1] ss:$4 sm:$0xff] %v241_v63  ;;  %v477_v22 = vsel %vm196_vm0, %v761_v7, %v471_v13  ;;  %v483_v23 = vsel %vm196_vm0, %v762_v9, %v472_v15  ;;  %v489_v24 = vsel %vm196_vm0, %v763_v10, %v473_v17  ;;  %v735_v55 = vld [vmem:[%s891_s10 + $0x10] sm:$0x3] }
  0x1f   : > { %v267_v4 = vsel %vm920_vm8, %v262_v0, %v266_v56  ;;  %v275_v5 = vrot.slane %v274_v1, 2  ;;  %294 = vst [vmem:[#allocation1 + $0x1] ss:$4 sm:$0xff] %v254_v3  ;;  %v495_v25 = vsel %vm196_vm0, %v764_v12, %v474_v20  ;;  %v499_v26 = vshrl.u32 %v477_v22, 16 }
  0x20   : > { %297 = vst [vmem:[#allocation1 + $0x2] ss:$4 sm:$0xff] %v267_v4  ;;  %v502_v27 = vshll.u32 %v477_v22, 16  ;;  %v478_v28 = vsel %vm200_vm1, %v761_v7, %v471_v13  ;;  %v512_v29 = vshrl.u32 %v483_v23, 16  ;;  %v515_v30 = vshll.u32 %v483_v23, 16 }
  0x21   : > { %v280_v6 = vsel %vm920_vm8, %v275_v5, %v279_v2  ;;  %v484_v31 = vsel %vm200_vm1, %v762_v9, %v472_v15  ;;  %v525_v32 = vshrl.u32 %v489_v24, 16  ;;  %v528_v33 = vshll.u32 %v489_v24, 16 }
  0x22   : > { %300 = vst [vmem:[#allocation1 + $0x3] ss:$4 sm:$0xff] %v280_v6  ;;  %v490_v34 = vsel %vm200_vm1, %v763_v10, %v473_v17  ;;  %v538_v35 = vshrl.u32 %v495_v25, 16  ;;  %v541_v36 = vshll.u32 %v495_v25, 16  ;;  %v480_v38 = vrot.slane %v478_v28, 2 }
  0x23   : > { %v496_v39 = vsel %vm200_vm1, %v764_v12, %v474_v20  ;;  %v501_v40 = vrot.slane %v499_v26, 6  ;;  %v504_v41 = vrot.slane %v502_v27, 7  ;;  %v486_v43 = vrot.slane %v484_v31, 2 }
  0x24   : > { %v514_v44 = vrot.slane %v512_v29, 6  ;;  %v517_v45 = vrot.slane %v515_v30, 7  ;;  %v492_v47 = vrot.slane %v490_v34, 2  ;;  %v527_v48 = vrot.slane %v525_v32, 6 }
  0x25   : > { %v530_v49 = vrot.slane %v528_v33, 7  ;;  %v498_v51 = vrot.slane %v496_v39, 2  ;;  %v540_v52 = vrot.slane %v538_v35, 6  ;;  %v543_v54 = vrot.slane %v541_v36, 7 }
  0x26   : > { %v505_v56 = vor.u32 %v504_v41, %v501_v40  ;;  %v508_v57 = vshll.u32 %v480_v38, 16  ;;  %v518_v58 = vor.u32 %v517_v45, %v514_v44  ;;  %v521_v59 = vshll.u32 %v486_v43, 16 }
  0x27   : > { %v531_v60 = vor.u32 %v530_v49, %v527_v48  ;;  %v534_v61 = vshll.u32 %v492_v47, 16  ;;  %v544_v62 = vor.u32 %v543_v54, %v540_v52  ;;  %v547_v63 = vshll.u32 %v498_v51, 16 }
  0x28   : > { %v506_v0 = vrot.slane %v505_v56, 2  ;;  %v510_v1 = vrot.slane %v508_v57, 7  ;;  %v519_v2 = vrot.slane %v518_v58, 2  ;;  %v523_v3 = vrot.slane %v521_v59, 7 }
  0x29   : > { %v301_v19 = vld.sshfl [vmem:[#allocation1] sm:$0xff pattern:$0x73625140]  ;;  %v532_v4 = vrot.slane %v531_v60, 2  ;;  %v536_v5 = vrot.slane %v534_v61, 7  ;;  %v545_v6 = vrot.slane %v544_v62, 2 }
  0x2a   : > { %344 = vst [vmem:[#allocation1] ss:$4 sm:$0xff] %v172_v14  ;;  %714 = vmatmul.msk.bf16.vlgmr.msra.gmra.mxu0 %vm326_vm9, %v301_v19  ;;  %v549_v7 = vrot.slane %v547_v63, 7  ;;  %v511_v8 = vsel %vm920_vm8, %v506_v0, %v510_v1  ;;  %v524_v9 = vsel %vm920_vm8, %v519_v2, %v523_v3  ;;  %v818_v19 = vld [vmem:[%s982_s2] ss:$0 sm:$0xff] }
  0x2b   : > { %347 = vst [vmem:[#allocation1 + $0x1] ss:$4 sm:$0xff] %v173_v16  ;;  %v537_v11 = vsel %vm920_vm8, %v532_v4, %v536_v5 }
  0x2c   : > { %350 = vst [vmem:[#allocation1 + $0x2] ss:$4 sm:$0xff] %v174_v18  ;;  %v550_v12 = vsel %vm920_vm8, %v545_v6, %v549_v7 }
  0x2d   : > { %353 = vst [vmem:[#allocation1 + $0x3] ss:$4 sm:$0xff] %v175_v21 }
  0x34   : > { %v354_v50 = vld.sshfl [vmem:[#allocation1] sm:$0xff pattern:$0x73625140] }
  0x35   : > { %410 = vst [vmem:[#allocation1] ss:$4 sm:$0xff] %v732_v37  ;;  %731 = vmatmul.msk.bf16.vlgmr.msra.gmra.mxu1 %vm326_vm9, %v354_v50 }
  0x36   : > { %413 = vst [vmem:[#allocation1 + $0x1] ss:$4 sm:$0xff] %v733_v42 }
  0x37   : > { %416 = vst [vmem:[#allocation1 + $0x2] ss:$4 sm:$0xff] %v734_v46 }
  0x38   : > { %419 = vst [vmem:[#allocation1 + $0x3] ss:$4 sm:$0xff] %v735_v55 }
  0x3f   : > { %v420_v10 = vld.sshfl [vmem:[#allocation1] sm:$0xff pattern:$0x73625140] }
  0x40   : > { %760 = vmatmul.msk.bf16.vlgmr.msra.gmra.mxu2 %vm326_vm9, %v420_v10  ;;  %561 = vst [vmem:[#allocation1] ss:$4 sm:$0xff] %v511_v8 }
  0x41   : > { %564 = vst [vmem:[#allocation1 + $0x1] ss:$4 sm:$0xff] %v524_v9 }
  0x42   : > { %567 = vst [vmem:[#allocation1 + $0x2] ss:$4 sm:$0xff] %v537_v11 }
  0x43   : > { %570 = vst [vmem:[#allocation1 + $0x3] ss:$4 sm:$0xff] %v550_v12 }
  0x4a   : > { %v571_v13 = vld.sshfl [vmem:[#allocation1] sm:$0xff pattern:$0x73625140] }
  0x4b   : > { %789 = vmatmul.msk.bf16.vlgmr.msra.gmra.mxu3 %vm326_vm9, %v571_v13 }
  0xa7   : > { %v338_v14 = vpop.f32.mrf.mxu0 }
  0xaf   : > { %v340_v21 = vpop.f32.mrf.mxu0 }
  0xb2   : > { %v390_v15 = vpop.f32.mrf.mxu1 }
  0xb3   : > { %v391_v16 = vadd.f32 %v390_v15, %v338_v14 }
  0xba   : > { %v392_v22 = vpop.f32.mrf.mxu1 }
  0xbb   : > { %v393_v25 = vadd.f32 %v392_v22, %v340_v21 }
  0xc3   : > { %v456_v17 = vpop.f32.mrf.mxu2 }
  0xc4   : > { %v461_v18 = vadd.f32 %v456_v17, %v391_v16 }
  0xcb   : > { %v458_v24 = vpop.f32.mrf.mxu2 }
  0xcc   : > { %v462_v27 = vadd.f32 %v458_v24, %v393_v25 }
  0xce   : > { %v607_v20 = vpop.f32.mrf.mxu3 }
  0xcf   : > { %v612_v53 = vadd.f32 %v607_v20, %v461_v18 }
  0xd1   : > { %v618_v23 = vadd.f32 %v818_v19, %v612_v53 }
  0xd3   : > { %v620_v26 = vmax.f32 %v618_v23, 0.0 }
  0xd5   : > { %v622_v28 = vpack.c.bf16 %v620_v26, %v620_v26 }
  0xd6   : > { %v609_v29 = vpop.f32.mrf.mxu3 }
  0xd7   : > { %625 = vst.msk [vmem:[%s170_s30] sm:$0xf] %vm624_vm10, %v622_v28  ;;  %v613_v30 = vadd.f32 %v609_v29, %v462_v27 }
  0xd9   : > { %v619_v31 = vadd.f32 %v818_v19, %v613_v30 }
  0xdb   : > { %v621_v32 = vmax.f32 %v619_v31, 0.0 }
  0xdd   : > { %v623_v33 = vpack.c.bf16 %v621_v32, %v621_v32 }
  0xdf   : > { %626 = vst.msk [vmem:[%s170_s30 + $0x4] sm:$0xf] %vm624_vm10, %v623_v33 }
  0xe0 PF: > { %s13_s12 = sadd.s32 1, %s825_s12  }
  0xe1   : > { %p10_p4 = scmp.ge.s32.totalorder %s13_s12, 4  }
  0xe3   :  { %12 = sbr.rel (!%p10_p4) target bundleno = 1 (0x1), region = 78 }

// kernel: ssd_forward.7
= control target key start
LH: loop header
LB: loop body
LE: loop exit
PB: predicated region body
PF: predicated region fallthrough
CT: control target
= control target key end

     0   :  { %s976_s12 = smov 0   ;;  %s1163_s0 = inlined_call_operand.vmem [shape: bf16[2,9,9,12], index: 0, kind: input, shape index: {}]   ;;  %s1164_s1 = inlined_call_operand.vmem [shape: bf16[4,12,16], index: 1, kind: input, shape index: {}]   ;;  %s1165_s2 = inlined_call_operand.vmem [shape: f32[1,16], index: 2, kind: input, shape index: {}]   ;;  %s1166_s3 = inlined_call_operand.vmem [shape: bf16[2,64,16], index: 3, kind: output, shape index: {}]  }
   0x1 LB: > { %s821_s13 = sadd.s32 4294967295, %s954_s12   ;;  %p825_p0 = scmp.ge.s32.totalorder %s954_s12, 1  ;;  %s954_s12 = sphi %s976_s12, %s13_s12  }
   0x2   : > { %p137_p1 = scmp.lt.s32.totalorder %s954_s12, 3 }
   0x4   : > { %p138_p2 = pnand %p825_p0, %p137_p1 }
   0x5   : > { %p161_p3 = scmp.lt.s32.totalorder (!%p138_p2), %s821_s13, 1 }
   0x6   : > { %141 = sbr.rel (%p138_p2) target bundleno = 234 (0xea), region = 32 }
   0xb   : > { %vm338_vm0 = vcmask 1045504   ;;  %v891_v0 = vld [vmem:[%s1164_s1 + $0x10] sm:$0xf]  ;;  %v936_v1 = vld [vmem:[%s1164_s1 + $0x10] sm:$0x30]  ;;  %s1170_s13 = smov (!%p161_p3, %s821_s13), 1 }
   0xc   : > { %v892_v2 = vor.u32 %v936_v1, %v891_v0  ;;  %v857_v3 = vld [vmem:[%s1164_s1] sm:$0xf]  ;;  %v930_v4 = vld [vmem:[%s1164_s1] sm:$0x30]  ;;  %v833_v6 = vld [vmem:[%s1164_s1 + $0x8] sm:$0xf] }
   0xd   : > { %v858_v5 = vor.u32 %v930_v4, %v857_v3  ;;  %v931_v7 = vld [vmem:[%s1164_s1 + $0x8] sm:$0x30]  ;;  %v917_v10 = vld [vmem:[%s1164_s1 + $0x18] sm:$0xf]  ;;  %v937_v11 = vld [vmem:[%s1164_s1 + $0x18] sm:$0x30] }
   0xe   : > { %v490_v8 = vsel %vm338_vm0, %v892_v2, 0  ;;  %v834_v9 = vor.u32 %v931_v7, %v833_v6  ;;  %s938_s30 = smul.u32 72, %s1170_s13  ;;  %v918_v13 = vor.u32 %v937_v11, %v917_v10  ;;  %vm325_vm1 = vcmask 97280   ;;  %v1128_v47 = vld [vmem:[%s1165_s2] ss:$0 sm:$0xff]  ;;  %s925_s9 = sshll.u32 %s1170_s13, 5 }
   0xf   : > { %499 = vmatpush.bf16.msra.mxu2 %v490_v8  ;;  %v409_v12 = vsel %vm338_vm0, %v858_v5, 0  ;;  %vm190_vm2 = vsmask.f32 3328  ;;  %vm191_vm3 = vsmask.f32 7440  ;;  %s1135_s14 = scalar_lea.vmem %s1166_s3, %s925_s9  ;;  %vm757_vm5 = vcmask 125952  }
  0x10   : > { %418 = vmatpush.bf16.msra.mxu1 %v409_v12  ;;  %v340_v14 = vsel %vm338_vm0, %v834_v9, 0  ;;  %s1017_s6 = scalar_lea.vmem %s1163_s0, %s938_s30  ;;  %v690_v15 = vsel %vm338_vm0, %v918_v13, 0  ;;  %vm1039_vm4 = vmor %vm190_vm2, %vm191_vm3 }
  0x11   : > { %349 = vmatpush.bf16.msra.mxu0 %v340_v14  ;;  %v875_v16 = vld [vmem:[%s1017_s6 + $0x8] sm:$0xf]  ;;  %v932_v17 = vld [vmem:[%s1017_s6 + $0xc] sm:$0xf0]  ;;  %v841_v18 = vld [vmem:[%s1017_s6] sm:$0xf]  ;;  %699 = vmatpush.bf16.msra.mxu3 %v690_v15 }
  0x12   : > { %v876_v19 = vor.u32 %v932_v17, %v875_v16  ;;  %v926_v20 = vld [vmem:[%s1017_s6 + $0x4] sm:$0xf0]  ;;  %v172_v21 = vld [vmem:[%s1017_s6] sm:$0xf]  ;;  %v182_v24 = vld [vmem:[%s1017_s6 + $0x4] sm:$0x1] }
  0x13   : > { %v173_v22 = vld [vmem:[%s1017_s6 + $0x8] sm:$0xf]  ;;  %v842_v23 = vor.u32 %v926_v20, %v841_v18  ;;  %v183_v25 = vld [vmem:[%s1017_s6 + $0xc] sm:$0x1]  ;;  %v194_v26 = vshrl.u32 %v172_v21, 16  ;;  %v197_v27 = vshll.u32 %v172_v21, 16 }
  0x14   : > { %893 = vmatmul.msk.bf16.vlgmr.msra.gmra.mxu2 %vm325_vm1, %v876_v19  ;;  %v203_v28 = vshll.u32 %v182_v24, 16  ;;  %v208_v29 = vshrl.u32 %v173_v22, 16  ;;  %v211_v30 = vshll.u32 %v173_v22, 16  ;;  %v217_v31 = vshll.u32 %v183_v25, 16  ;;  %v897_v32 = vld [vmem:[%s1017_s6 + $0x8] sm:$0xf] }
  0x15   : > { %859 = vmatmul.msk.bf16.vlgmr.msra.gmra.mxu1 %vm325_vm1, %v842_v23  ;;  %v196_v33 = vrot.slane %v194_v26, 4  ;;  %v199_v34 = vrot.slane %v197_v27, 5  ;;  %v898_v35 = vld [vmem:[%s1017_s6 + $0xc] sm:$0x1]  ;;  %v899_v36 = vld [vmem:[%s1017_s6 + $0x10] sm:$0xf] }
  0x16   : > { %v205_v37 = vrot.slane %v203_v28, 5  ;;  %v210_v38 = vrot.slane %v208_v29, 4  ;;  %v213_v39 = vrot.slane %v211_v30, 5  ;;  %v219_v40 = vrot.slane %v217_v31, 5  ;;  %v900_v41 = vld [vmem:[%s1017_s6 + $0x14] sm:$0x1] }
  0x17   : > { %v200_v42 = vor.u32 %v199_v34, %v196_v33  ;;  %v546_v43 = vshrl.u32 %v897_v32, 16  ;;  %v549_v44 = vshll.u32 %v897_v32, 16  ;;  %v555_v45 = vshll.u32 %v898_v35, 16  ;;  %v1035_v46 = vld [vmem:[%s1017_s6 + $0x18] sm:$0xf] }
  0x18   : > { %v214_v48 = vor.u32 %v213_v39, %v210_v38  ;;  %v560_v49 = vshrl.u32 %v899_v36, 16  ;;  %v563_v50 = vshll.u32 %v899_v36, 16  ;;  %v569_v51 = vshll.u32 %v900_v41, 16  ;;  %v933_v52 = vld [vmem:[%s1017_s6 + $0x1c] sm:$0xf0] }
  0x19   : > { %v201_v53 = vrot.slane %v200_v42, 4  ;;  %v548_v54 = vrot.slane %v546_v43, 4  ;;  %v551_v55 = vrot.slane %v549_v44, 5  ;;  %v557_v56 = vrot.slane %v555_v45, 5  ;;  %v845_v57 = vld [vmem:[%s1017_s6 + $0x10] sm:$0xf] }
  0x1a   : > { %v215_v58 = vrot.slane %v214_v48, 4  ;;  %v562_v59 = vrot.slane %v560_v49, 4  ;;  %v565_v60 = vrot.slane %v563_v50, 5  ;;  %v571_v61 = vrot.slane %v569_v51, 5  ;;  %v927_v62 = vld [vmem:[%s1017_s6 + $0x14] sm:$0xf0] }
  0x1b   : > { %v206_v63 = vsel %vm1039_vm4, %v201_v53, %v205_v37  ;;  %v552_v0 = vor.u32 %v551_v55, %v548_v54  ;;  %v880_v1 = vor.u32 %v933_v52, %v1035_v46  ;;  %v846_v2 = vor.u32 %v927_v62, %v845_v57  ;;  %v174_v3 = vld [vmem:[%s1017_s6 + $0x10] sm:$0xf]  ;;  %v175_v4 = vld [vmem:[%s1017_s6 + $0x18] sm:$0xf]  ;;  %v184_v5 = vld [vmem:[%s1017_s6 + $0x14] sm:$0x1] }
  0x1c   : > { %v220_v6 = vsel %vm1039_vm4, %v215_v58, %v219_v40  ;;  %v308_v7 = vunpack.c.l.b16 %v206_v63  ;;  %v566_v8 = vor.u32 %v565_v60, %v562_v59  ;;  %v222_v9 = vshrl.u32 %v174_v3, 16  ;;  %v185_v12 = vld [vmem:[%s1017_s6 + $0x1c] sm:$0x1]  ;;  %v901_v19 = vld [vmem:[%s1017_s6 + $0x18] sm:$0xf] }
  0x1d   : > { %v309_v10 = vunpack.c.l.b16 %v220_v6  ;;  %v553_v11 = vrot.slane %v552_v0, 4  ;;  %v225_v13 = vshll.u32 %v174_v3, 16  ;;  %v231_v14 = vshll.u32 %v184_v5, 16  ;;  %v902_v24 = vld [vmem:[%s1017_s6 + $0x1c] sm:$0x1] }
  0x1e   : > { %v567_v15 = vrot.slane %v566_v8, 4  ;;  %v224_v16 = vrot.slane %v222_v9, 4  ;;  %v236_v17 = vshrl.u32 %v175_v4, 16  ;;  %v239_v18 = vshll.u32 %v175_v4, 16  ;;  %v903_v25 = vld [vmem:[%s1017_s6 + $0x20] sm:$0xf] }
  0x1f   : > { %v316_v20 = vpack.c.b16 %v309_v10, %v308_v7  ;;  %v558_v21 = vsel %vm1039_vm4, %v553_v11, %v557_v56  ;;  %v227_v22 = vrot.slane %v225_v13, 5  ;;  %v233_v23 = vrot.slane %v231_v14, 5  ;;  %v904_v35 = vld [vmem:[%s1017_s6 + $0x24] sm:$0x1]  ;;  %v176_v45 = vld [vmem:[%s1017_s6 + $0x20] sm:$0xf] }
  0x20   : > { %v572_v26 = vsel %vm1039_vm4, %v567_v15, %v571_v61  ;;  %v660_v27 = vunpack.c.l.b16 %v558_v21  ;;  %v238_v28 = vrot.slane %v236_v17, 4  ;;  %v241_v29 = vrot.slane %v239_v18, 5  ;;  %v177_v51 = vld [vmem:[%s1017_s6 + $0x28] sm:$0xf]  ;;  %v934_v59 = vld [vmem:[%s1017_s6 + $0x2c] sm:$0xf0] }
  0x21   : > { %835 = vmatmul.msk.bf16.vlgmr.msra.gmra.mxu0 %vm325_vm1, %v316_v20  ;;  %v661_v30 = vunpack.c.l.b16 %v572_v26  ;;  %v228_v31 = vor.u32 %v227_v22, %v224_v16  ;;  %v245_v32 = vshll.u32 %v185_v12, 16  ;;  %v574_v33 = vshrl.u32 %v901_v19, 16  ;;  %v883_v55 = vld [vmem:[%s1017_s6 + $0x28] sm:$0xf]  ;;  %v186_v60 = vld [vmem:[%s1017_s6 + $0x24] sm:$0x1] }
  0x22   : > { %v242_v34 = vor.u32 %v241_v29, %v238_v28  ;;  %v577_v36 = vshll.u32 %v901_v19, 16  ;;  %v583_v37 = vshll.u32 %v902_v24, 16  ;;  %v588_v38 = vshrl.u32 %v903_v25, 16  ;;  %v187_v63 = vld [vmem:[%s1017_s6 + $0x2c] sm:$0x1] }
  0x23   : > { %v668_v39 = vpack.c.b16 %v661_v30, %v660_v27  ;;  %v229_v40 = vrot.slane %v228_v31, 4  ;;  %v247_v41 = vrot.slane %v245_v32, 5  ;;  %v576_v42 = vrot.slane %v574_v33, 4  ;;  %v905_v6 = vld [vmem:[%s1017_s6 + $0x28] sm:$0xf] }
  0x24   : > { %894 = vmatmul.msk.bf16.gmra.mxu2 %vm325_vm1, %v880_v1  ;;  %v243_v43 = vrot.slane %v242_v34, 4  ;;  %v579_v44 = vrot.slane %v577_v36, 5  ;;  %v590_v48 = vrot.slane %v588_v38, 4  ;;  %v591_v49 = vshll.u32 %v903_v25, 16  ;;  %v907_v11 = vld [vmem:[%s1017_s6 + $0x30] sm:$0xf] }
  0x25   : > { %919 = vmatmul.msk.bf16.vlgmr.msra.gmra.mxu3 %vm325_vm1, %v668_v39  ;;  %860 = vmatmul.msk.bf16.gmra.mxu1 %vm325_vm1, %v846_v2  ;;  %v234_v46 = vsel %vm1039_vm4, %v229_v40, %v233_v23  ;;  %v597_v50 = vshll.u32 %v904_v35, 16  ;;  %v585_v54 = vrot.slane %v583_v37, 5  ;;  %v250_v61 = vshrl.u32 %v176_v45, 16  ;;  %v906_v18 = vld [vmem:[%s1017_s6 + $0x2c] sm:$0x1] }
  0x26   : > { %v248_v52 = vsel %vm1039_vm4, %v243_v43, %v247_v41  ;;  %v580_v53 = vor.u32 %v579_v44, %v576_v42  ;;  %v310_v56 = vunpack.c.l.b16 %v234_v46  ;;  %v593_v58 = vrot.slane %v591_v49, 5  ;;  %v849_v23 = vld [vmem:[%s1017_s6 + $0x20] sm:$0xf]  ;;  %v908_v25 = vld [vmem:[%s1017_s6 + $0x34] sm:$0x1] }
  0x27   : > { %v311_v57 = vunpack.c.l.b16 %v248_v52  ;;  %v253_v0 = vshll.u32 %v176_v45, 16  ;;  %v264_v1 = vshrl.u32 %v177_v51, 16  ;;  %v599_v3 = vrot.slane %v597_v50, 5  ;;  %v928_v28 = vld [vmem:[%s1017_s6 + $0x24] sm:$0xf0] }
  0x28   : > { %v581_v62 = vrot.slane %v580_v53, 4  ;;  %v594_v2 = vor.u32 %v593_v58, %v590_v48  ;;  %v252_v4 = vrot.slane %v250_v61, 4  ;;  %v267_v5 = vshll.u32 %v177_v51, 16  ;;  %v178_v43 = vld [vmem:[%s1017_s6 + $0x30] sm:$0xf] }
  0x29   : > { %v255_v8 = vrot.slane %v253_v0, 5  ;;  %v259_v9 = vshll.u32 %v186_v60, 16  ;;  %v266_v10 = vrot.slane %v264_v1, 4  ;;  %v317_v12 = vpack.c.b16 %v311_v57, %v310_v56  ;;  %v179_v44 = vld [vmem:[%s1017_s6 + $0x38] sm:$0xf] }
  0x2a   : > { %v586_v7 = vsel %vm1039_vm4, %v581_v62, %v585_v54  ;;  %v595_v13 = vrot.slane %v594_v2, 4  ;;  %v884_v14 = vor.u32 %v934_v59, %v883_v55  ;;  %v269_v15 = vrot.slane %v267_v5, 5  ;;  %v909_v57 = vld [vmem:[%s1017_s6 + $0x38] sm:$0xf]  ;;  %v911_v58 = vld [vmem:[%s1017_s6 + $0x40] sm:$0xf] }
  0x2b   : > { %v256_v16 = vor.u32 %v255_v8, %v252_v4  ;;  %v273_v17 = vshll.u32 %v187_v63, 16  ;;  %v602_v19 = vshrl.u32 %v905_v6, 16  ;;  %v605_v20 = vshll.u32 %v905_v6, 16  ;;  %v188_v0 = vld [vmem:[%s1017_s6 + $0x34] sm:$0x1] }
  0x2c   : > { %v600_v21 = vsel %vm1039_vm4, %v595_v13, %v599_v3  ;;  %v662_v22 = vunpack.c.l.b16 %v586_v7  ;;  %v270_v24 = vor.u32 %v269_v15, %v266_v10  ;;  %v616_v26 = vshrl.u32 %v907_v11, 16  ;;  %v189_v4 = vld [vmem:[%s1017_s6 + $0x3c] sm:$0x1]  ;;  %v853_v15 = vld [vmem:[%s1017_s6 + $0x30] sm:$0xf] }
  0x2d   : > { %v663_v27 = vunpack.c.l.b16 %v600_v21  ;;  %v261_v29 = vrot.slane %v259_v9, 5  ;;  %v604_v30 = vrot.slane %v602_v19, 4  ;;  %v607_v31 = vrot.slane %v605_v20, 5  ;;  %v910_v20 = vld [vmem:[%s1017_s6 + $0x3c] sm:$0x1] }
  0x2e   : > { %v257_v32 = vrot.slane %v256_v16, 4  ;;  %v611_v33 = vshll.u32 %v906_v18, 16  ;;  %v618_v34 = vrot.slane %v616_v26, 4  ;;  %v619_v35 = vshll.u32 %v907_v11, 16  ;;  %v887_v11 = vld [vmem:[%s1017_s6 + $0x38] sm:$0xf] }
  0x2f   : > { %v271_v36 = vrot.slane %v270_v24, 4  ;;  %v275_v37 = vrot.slane %v273_v17, 5  ;;  %v608_v38 = vor.u32 %v607_v31, %v604_v30  ;;  %v625_v39 = vshll.u32 %v908_v25, 16  ;;  %v929_v16 = vld [vmem:[%s1017_s6 + $0x34] sm:$0xf0] }
  0x30   : > { %v669_v40 = vpack.c.b16 %v663_v27, %v662_v22  ;;  %v850_v41 = vor.u32 %v928_v28, %v849_v23  ;;  %v621_v42 = vrot.slane %v619_v35, 5  ;;  %v262_v45 = vsel %vm1039_vm4, %v257_v32, %v261_v29  ;;  %v912_v25 = vld [vmem:[%s1017_s6 + $0x44] sm:$0x1] }
  0x31   : > { %836 = vmatmul.msk.bf16.gmra.mxu0 %vm325_vm1, %v317_v12  ;;  %v613_v46 = vrot.slane %v611_v33, 5  ;;  %v276_v49 = vsel %vm1039_vm4, %v271_v36, %v275_v37  ;;  %v609_v50 = vrot.slane %v608_v38, 4  ;;  %v627_v51 = vrot.slane %v625_v39, 5  ;;  %v935_v12 = vld [vmem:[%s1017_s6 + $0x3c] sm:$0xf0] }
  0x32   : > { %v622_v48 = vor.u32 %v621_v42, %v618_v34  ;;  %v278_v52 = vshrl.u32 %v178_v43, 16  ;;  %v281_v54 = vshll.u32 %v178_v43, 16  ;;  %v292_v55 = vshrl.u32 %v179_v44, 16 }
  0x33   : > { %v295_v56 = vshll.u32 %v179_v44, 16  ;;  %v312_v59 = vunpack.c.l.b16 %v262_v45  ;;  %v313_v60 = vunpack.c.l.b16 %v276_v49  ;;  %v614_v61 = vsel %vm1039_vm4, %v609_v50, %v613_v46 }
  0x34   : > { %895 = vmatmul.msk.bf16.gmra.mxu2 %vm325_vm1, %v884_v14  ;;  %v623_v53 = vrot.slane %v622_v48, 4  ;;  %v280_v62 = vrot.slane %v278_v52, 4  ;;  %v283_v1 = vrot.slane %v281_v54, 5  ;;  %v294_v2 = vrot.slane %v292_v55, 4 }
  0x35   : > { %920 = vmatmul.msk.bf16.gmra.mxu3 %vm325_vm1, %v669_v40  ;;  %861 = vmatmul.msk.bf16.gmra.mxu1 %vm325_vm1, %v850_v41  ;;  %v297_v3 = vrot.slane %v295_v56, 5  ;;  %v630_v5 = vshrl.u32 %v909_v57, 16  ;;  %v633_v6 = vshll.u32 %v909_v57, 16  ;;  %v644_v7 = vshrl.u32 %v911_v58, 16 }
  0x36   : > { %v628_v63 = vsel %vm1039_vm4, %v623_v53, %v627_v51  ;;  %v647_v8 = vshll.u32 %v911_v58, 16  ;;  %v318_v9 = vpack.c.b16 %v313_v60, %v312_v59  ;;  %v664_v10 = vunpack.c.l.b16 %v614_v61 }
  0x37   : > { %v287_v13 = vshll.u32 %v188_v0, 16  ;;  %v665_v14 = vunpack.c.l.b16 %v628_v63  ;;  %v284_v17 = vor.u32 %v283_v1, %v280_v62  ;;  %v298_v18 = vor.u32 %v297_v3, %v294_v2 }
  0x38   : > { %v301_v19 = vshll.u32 %v189_v4, 16  ;;  %v632_v21 = vrot.slane %v630_v5, 4  ;;  %v635_v22 = vrot.slane %v633_v6, 5  ;;  %v646_v23 = vrot.slane %v644_v7, 4 }
  0x39   : > { %v649_v24 = vrot.slane %v647_v8, 5  ;;  %v888_v26 = vor.u32 %v935_v12, %v887_v11  ;;  %v854_v27 = vor.u32 %v929_v16, %v853_v15  ;;  %v289_v28 = vrot.slane %v287_v13, 5 }
  0x3a   : > { %v670_v29 = vpack.c.b16 %v665_v14, %v664_v10  ;;  %v285_v30 = vrot.slane %v284_v17, 4  ;;  %v303_v31 = vrot.slane %v301_v19, 5  ;;  %v639_v32 = vshll.u32 %v910_v20, 16 }
  0x3b   : > { %v299_v33 = vrot.slane %v298_v18, 4  ;;  %v636_v34 = vor.u32 %v635_v22, %v632_v21  ;;  %v650_v35 = vor.u32 %v649_v24, %v646_v23  ;;  %v653_v36 = vshll.u32 %v912_v25, 16 }
  0x3c   : > { %v290_v37 = vsel %vm1039_vm4, %v285_v30, %v289_v28  ;;  %v641_v38 = vrot.slane %v639_v32, 5 }
  0x3d   : > { %v304_v39 = vsel %vm1039_vm4, %v299_v33, %v303_v31  ;;  %v637_v40 = vrot.slane %v636_v34, 4  ;;  %v651_v41 = vrot.slane %v650_v35, 4  ;;  %v655_v42 = vrot.slane %v653_v36, 5 }
  0x3e   : > { %v314_v43 = vunpack.c.l.b16 %v290_v37  ;;  %v315_v44 = vunpack.c.l.b16 %v304_v39 }
  0x3f   : > { %v642_v45 = vsel %vm1039_vm4, %v637_v40, %v641_v38  ;;  %v656_v46 = vsel %vm1039_vm4, %v651_v41, %v655_v42 }
  0x40   : > { %v319_v48 = vpack.c.b16 %v315_v44, %v314_v43  ;;  %v666_v49 = vunpack.c.l.b16 %v642_v45  ;;  %v667_v50 = vunpack.c.l.b16 %v656_v46 }
  0x41   : > { %837 = vmatmul.msk.bf16.gmra.mxu0 %vm325_vm1, %v318_v9 }
  0x42   : > { %v671_v51 = vpack.c.b16 %v667_v50, %v666_v49 }
  0x44   : > { %896 = vmatmul.msk.bf16.gmra.mxu2 %vm325_vm1, %v888_v26 }
  0x45   : > { %921 = vmatmul.msk.bf16.gmra.mxu3 %vm325_vm1, %v670_v29  ;;  %862 = vmatmul.msk.bf16.gmra.mxu1 %vm325_vm1, %v854_v27 }
  0x51   : > { %838 = vmatmul.msk.bf16.gmra.mxu0 %vm325_vm1, %v319_v48 }
  0x55   : > { %922 = vmatmul.msk.bf16.gmra.mxu3 %vm325_vm1, %v671_v51 }
  0x92   : > { %v420_v52 = vpop.f32.mrf.mxu1 }
  0x97   : > { %v501_v53 = vpop.f32.mrf.mxu2 }
  0x9a   : > { %v422_v55 = vpop.f32.mrf.mxu1 }
  0x9e   : > { %v351_v54 = vpop.f32.mrf.mxu0 }
  0x9f   : > { %v421_v56 = vadd.f32 %v420_v52, %v351_v54  ;;  %v503_v57 = vpop.f32.mrf.mxu2 }
  0xa1   : > { %v521_v58 = vadd.f32 %v501_v53, %v421_v56 }
  0xa2   : > { %v425_v61 = vpop.f32.mrf.mxu1 }
  0xa6   : > { %v353_v59 = vpop.f32.mrf.mxu0 }
  0xa7   : > { %v423_v0 = vadd.f32 %v422_v55, %v353_v59  ;;  %v506_v1 = vpop.f32.mrf.mxu2 }
  0xa8   : > { %v701_v60 = vpop.f32.mrf.mxu3 }
  0xa9   : > { %v721_v62 = vadd.f32 %v701_v60, %v521_v58  ;;  %v522_v5 = vadd.f32 %v503_v57, %v423_v0 }
  0xaa   : > { %v427_v9 = vpop.f32.mrf.mxu1 }
  0xab   : > { %v733_v63 = vadd.f32 %v1128_v47, %v721_v62 }
  0xad   : > { %v741_v2 = vmax.f32 %v733_v63, 0.0 }
  0xae   : > { %v356_v3 = vpop.f32.mrf.mxu0 }
  0xaf   : > { %v749_v4 = vpack.c.bf16 %v741_v2, %v741_v2  ;;  %v426_v8 = vadd.f32 %v425_v61, %v356_v3  ;;  %v508_v13 = vpop.f32.mrf.mxu2 }
  0xb0   : > { %v703_v6 = vpop.f32.mrf.mxu3 }
  0xb1   : > { %758 = vst.msk [vmem:[%s1135_s14] sm:$0xf] %vm757_vm5, %v749_v4  ;;  %v722_v7 = vadd.f32 %v703_v6, %v522_v5  ;;  %v523_v12 = vadd.f32 %v506_v1, %v426_v8 }
  0xb2   : > { %v430_v20 = vpop.f32.mrf.mxu1 }
  0xb3   : > { %v734_v10 = vadd.f32 %v1128_v47, %v722_v7 }
  0xb5   : > { %v742_v11 = vmax.f32 %v734_v10, 0.0 }
  0xb6   : > { %v358_v14 = vpop.f32.mrf.mxu0 }
  0xb7   : > { %v750_v15 = vpack.c.bf16 %v742_v11, %v742_v11  ;;  %v428_v19 = vadd.f32 %v427_v9, %v358_v14  ;;  %v511_v25 = vpop.f32.mrf.mxu2 }
  0xb8   : > { %v706_v16 = vpop.f32.mrf.mxu3 }
  0xb9   : > { %759 = vst.msk [vmem:[%s1135_s14 + $0x4] sm:$0xf] %vm757_vm5, %v750_v15  ;;  %v723_v17 = vadd.f32 %v706_v16, %v523_v12  ;;  %v524_v24 = vadd.f32 %v508_v13, %v428_v19 }
  0xba   : > { %v432_v32 = vpop.f32.mrf.mxu1 }
  0xbb   : > { %v735_v18 = vadd.f32 %v1128_v47, %v723_v17 }
  0xbd   : > { %v743_v21 = vmax.f32 %v735_v18, 0.0 }
  0xbe   : > { %v361_v22 = vpop.f32.mrf.mxu0 }
  0xbf   : > { %v751_v23 = vpack.c.bf16 %v743_v21, %v743_v21  ;;  %v431_v28 = vadd.f32 %v430_v20, %v361_v22  ;;  %v513_v37 = vpop.f32.mrf.mxu2 }
  0xc0   : > { %v708_v26 = vpop.f32.mrf.mxu3 }
  0xc1   : > { %760 = vst.msk [vmem:[%s1135_s14 + $0x8] sm:$0xf] %vm757_vm5, %v751_v23  ;;  %v724_v27 = vadd.f32 %v708_v26, %v524_v24  ;;  %v525_v31 = vadd.f32 %v511_v25, %v431_v28 }
  0xc2   : > { %v435_v44 = vpop.f32.mrf.mxu1 }
  0xc3   : > { %v736_v29 = vadd.f32 %v1128_v47, %v724_v27 }
  0xc5   : > { %v744_v30 = vmax.f32 %v736_v29, 0.0 }
  0xc6   : > { %v363_v33 = vpop.f32.mrf.mxu0 }
  0xc7   : > { %v752_v34 = vpack.c.bf16 %v744_v30, %v744_v30  ;;  %v433_v39 = vadd.f32 %v432_v32, %v363_v33  ;;  %v516_v50 = vpop.f32.mrf.mxu2 }
  0xc8   : > { %v711_v35 = vpop.f32.mrf.mxu3 }
  0xc9   : > { %761 = vst.msk [vmem:[%s1135_s14 + $0xc] sm:$0xf] %vm757_vm5, %v752_v34  ;;  %v725_v36 = vadd.f32 %v711_v35, %v525_v31  ;;  %v526_v43 = vadd.f32 %v513_v37, %v433_v39 }
  0xca   : > { %v437_v57 = vpop.f32.mrf.mxu1 }
  0xcb   : > { %v737_v38 = vadd.f32 %v1128_v47, %v725_v36 }
  0xcd   : > { %v745_v40 = vmax.f32 %v737_v38, 0.0 }
  0xce   : > { %v366_v41 = vpop.f32.mrf.mxu0 }
  0xcf   : > { %v753_v42 = vpack.c.bf16 %v745_v40, %v745_v40  ;;  %v436_v48 = vadd.f32 %v435_v44, %v366_v41  ;;  %v518_v61 = vpop.f32.mrf.mxu2 }
  0xd0   : > { %v713_v45 = vpop.f32.mrf.mxu3 }
  0xd1   : > { %762 = vst.msk [vmem:[%s1135_s14 + $0x10] sm:$0xf] %vm757_vm5, %v753_v42  ;;  %v726_v46 = vadd.f32 %v713_v45, %v526_v43  ;;  %v527_v52 = vadd.f32 %v516_v50, %v436_v48 }
  0xd3   : > { %v738_v49 = vadd.f32 %v1128_v47, %v726_v46 }
  0xd5   : > { %v746_v51 = vmax.f32 %v738_v49, 0.0 }
  0xd6   : > { %v368_v55 = vpop.f32.mrf.mxu0 }
  0xd7   : > { %v754_v53 = vpack.c.bf16 %v746_v51, %v746_v51  ;;  %v438_v59 = vadd.f32 %v437_v57, %v368_v55 }
  0xd8   : > { %v716_v54 = vpop.f32.mrf.mxu3 }
  0xd9   : > { %763 = vst.msk [vmem:[%s1135_s14 + $0x14] sm:$0xf] %vm757_vm5, %v754_v53  ;;  %v727_v56 = vadd.f32 %v716_v54, %v527_v52  ;;  %v528_v63 = vadd.f32 %v518_v61, %v438_v59 }
  0xdb   : > { %v739_v58 = vadd.f32 %v1128_v47, %v727_v56 }
  0xdd   : > { %v747_v60 = vmax.f32 %v739_v58, 0.0 }
  0xdf   : > { %v755_v62 = vpack.c.bf16 %v747_v60, %v747_v60 }
  0xe0   : > { %v718_v0 = vpop.f32.mrf.mxu3 }
  0xe1   : > { %764 = vst.msk [vmem:[%s1135_s14 + $0x18] sm:$0xf] %vm757_vm5, %v755_v62  ;;  %v728_v1 = vadd.f32 %v718_v0, %v528_v63 }
  0xe3   : > { %v740_v2 = vadd.f32 %v1128_v47, %v728_v1 }
  0xe5   : > { %v748_v3 = vmax.f32 %v740_v2, 0.0 }
  0xe7   : > { %v756_v4 = vpack.c.bf16 %v748_v3, %v748_v3 }
  0xe9   : > { %765 = vst.msk [vmem:[%s1135_s14 + $0x1c] sm:$0xf] %vm757_vm5, %v756_v4 }
  0xea PF: > { %s13_s12 = sadd.s32 1, %s954_s12  }
  0xeb   : > { %p10_p4 = scmp.ge.s32.totalorder %s13_s12, 4  }
  0xed   :  { %12 = sbr.rel (!%p10_p4) target bundleno = 1 (0x1), region = 66 }

// kernel: ssd_forward.10
= control target key start
LH: loop header
LB: loop body
LE: loop exit
PB: predicated region body
PF: predicated region fallthrough
CT: control target
= control target key end

     0   :  { %s961_s12 = smov 0   ;;  %s1135_s0 = inlined_call_operand.vmem [shape: bf16[2,3,3,128], index: 0, kind: input, shape index: {}]   ;;  %s1136_s1 = inlined_call_operand.vmem [shape: bf16[4,128,64], index: 1, kind: input, shape index: {}]   ;;  %s1137_s2 = inlined_call_operand.vmem [shape: f32[1,64], index: 2, kind: input, shape index: {}]   ;;  %s1138_s3 = inlined_call_operand.vmem [shape: bf16[2,4,64], index: 3, kind: output, shape index: {}]  }
   0x1 LB: > { %s698_s13 = sadd.s32 4294967295, %s939_s12   ;;  %p702_p0 = scmp.ge.s32.totalorder %s939_s12, 1  ;;  %s939_s12 = sphi %s961_s12, %s13_s12  }
   0x2   : > { %p137_p1 = scmp.lt.s32.totalorder %s939_s12, 3 }
   0x4   : > { %p138_p2 = pnand %p702_p0, %p137_p1 }
   0x5   : > { %p160_p3 = scmp.lt.s32.totalorder (!%p138_p2), %s698_s13, 1 }
   0x6   : > { %141 = sbr.rel (%p138_p2) target bundleno = 205 (0xcd), region = 32 }
   0xb   : > { %v914_v0 = vld [vmem:[%s1136_s1 + $0xb8] sm:$0xff]  ;;  %v913_v3 = vld [vmem:[%s1136_s1 + $0xb0] sm:$0xff]  ;;  %s1142_s13 = smov (!%p160_p3, %s698_s13), 1  ;;  %v912_v8 = vld [vmem:[%s1136_s1 + $0xa8] sm:$0xff]  ;;  %vm197_vm0 = vcmask 1040384   ;;  %vm201_vm1 = vcmask 1042434  }
   0xc   : > { %v906_v1 = vld [vmem:[%s1136_s1 + $0x78] sm:$0xff]  ;;  %486 = vmatpush.bf16.msra.mxu2 %v914_v0  ;;  %v905_v4 = vld [vmem:[%s1136_s1 + $0x70] sm:$0xff]  ;;  %s923_s30 = smul.u32 6, %s1142_s13  ;;  %v904_v9 = vld [vmem:[%s1136_s1 + $0x68] sm:$0xff]  ;;  %vm205_vm2 = vcmask 1041408   ;;  %vm207_vm3 = vcmask 1041409  }
   0xd   : > { %v898_v2 = vld [vmem:[%s1136_s1 + $0x38] sm:$0xff]  ;;  %330 = vmatpush.bf16.msra.mxu0 %v906_v1  ;;  %v897_v6 = vld [vmem:[%s1136_s1 + $0x30] sm:$0xff]  ;;  %v896_v10 = vld [vmem:[%s1136_s1 + $0x28] sm:$0xff]  ;;  %vm209_vm4 = vcmask 1043459   ;;  %vm211_vm5 = vcmask 1042433   ;;  %s704_s7 = sshll.u32 %s1142_s13, 1 }
   0xe   : > { %v922_v5 = vld [vmem:[%s1136_s1 + $0xf8] sm:$0xff]  ;;  %398 = vmatpush.bf16.msra.mxu1 %v898_v2  ;;  %v921_v7 = vld [vmem:[%s1136_s1 + $0xf0] sm:$0xff]  ;;  %s1008_s14 = scalar_lea.vmem %s1135_s0, %s923_s30  ;;  %v920_v11 = vld [vmem:[%s1136_s1 + $0xe8] sm:$0xff]  ;;  %vm227_vm6 = vsmask.f32 256  ;;  %s168_s10 = scalar_lea.vmem %s1138_s3, %s704_s7 }
   0xf   : > { %622 = vmatpush.bf16.msra.mxu3 %v922_v5  ;;  %vm228_vm7 = vsmask.f32 1284  ;;  %v911_v12 = vld [vmem:[%s1136_s1 + $0xa0] sm:$0xff]  ;;  %vm230_vm8 = vsmask.f32 2312  ;;  %v910_v28 = vld [vmem:[%s1136_s1 + $0x98] sm:$0xff] }
  0x10   : > { %487 = vmatpush.bf16.msra.mxu2 %v913_v3  ;;  %v903_v13 = vld [vmem:[%s1136_s1 + $0x60] sm:$0xff]  ;;  %vm232_vm9 = vsmask.f32 3340  ;;  %vm234_vm10 = vsmask.f32 4368  ;;  %vm229_vm12 = vmor %vm227_vm6, %vm228_vm7  ;;  %v902_v29 = vld [vmem:[%s1136_s1 + $0x58] sm:$0xff] }
  0x11   : > { %331 = vmatpush.bf16.msra.mxu0 %v905_v4  ;;  %v187_v14 = vld [vmem:[%s1008_s14] sm:$0x3]  ;;  %vm236_vm11 = vsmask.f32 5396  ;;  %v188_v16 = vld [vmem:[%s1008_s14 + $0x2] sm:$0x3]  ;;  %vm231_vm13 = vmor %vm229_vm12, %vm230_vm8 }
  0x12   : > { %399 = vmatpush.bf16.msra.mxu1 %v897_v6  ;;  %v895_v15 = vld [vmem:[%s1136_s1 + $0x20] sm:$0xff]  ;;  %v191_v17 = vrot.slane %v187_v14, 1  ;;  %v192_v18 = vrot.slane %v187_v14, 2  ;;  %v193_v19 = vrot.slane %v187_v14, 3  ;;  %v194_v21 = vrot.slane %v188_v16, 1  ;;  %vm233_vm15 = vmor %vm231_vm13, %vm232_vm9  ;;  %v894_v33 = vld [vmem:[%s1136_s1 + $0x18] sm:$0xff] }
  0x13   : > { %623 = vmatpush.bf16.msra.mxu3 %v921_v7  ;;  %v919_v20 = vld [vmem:[%s1136_s1 + $0xe0] sm:$0xff]  ;;  %v195_v22 = vrot.slane %v188_v16, 2  ;;  %v196_v23 = vrot.slane %v188_v16, 3  ;;  %vm238_vm14 = vsmask.f32 6424  ;;  %vm235_vm6 = vmor %vm233_vm15, %vm234_vm10  ;;  %v918_v38 = vld [vmem:[%s1136_s1 + $0xd8] sm:$0xff] }
  0x14   : > { %488 = vmatpush.bf16.msra.mxu2 %v912_v8  ;;  %v200_v24 = vsel %vm197_vm0, %v187_v14, %v191_v17  ;;  %v204_v25 = vsel %vm201_vm1, %v192_v18, %v193_v19  ;;  %v208_v26 = vsel %vm207_vm3, %v187_v14, %v191_v17  ;;  %v210_v27 = vsel %vm209_vm4, %v192_v18, %v193_v19  ;;  %vm237_vm8 = vmor %vm235_vm6, %vm236_vm11  ;;  %v909_v46 = vld [vmem:[%s1136_s1 + $0x90] sm:$0xff]  ;;  %v908_v53 = vld [vmem:[%s1136_s1 + $0x88] sm:$0xff] }
  0x15   : > { %332 = vmatpush.bf16.msra.mxu0 %v904_v9  ;;  %v206_v30 = vsel %vm205_vm2, %v200_v24, %v204_v25  ;;  %v212_v31 = vsel %vm211_vm5, %v208_v26, %v210_v27  ;;  %v217_v32 = vsel %vm197_vm0, %v188_v16, %v194_v21  ;;  %vm240_vm7 = vsmask.f32 7452  ;;  %vm239_vm9 = vmor %vm237_vm8, %vm238_vm14  ;;  %v901_v47 = vld [vmem:[%s1136_s1 + $0x50] sm:$0xff]  ;;  %v900_v54 = vld [vmem:[%s1136_s1 + $0x48] sm:$0xff] }
  0x16   : > { %400 = vmatpush.bf16.msra.mxu1 %v896_v10  ;;  %v214_v34 = vrot.slane %v212_v31, 1  ;;  %v220_v35 = vsel %vm201_vm1, %v195_v22, %v196_v23  ;;  %v222_v36 = vsel %vm207_vm3, %v188_v16, %v194_v21  ;;  %v223_v37 = vsel %vm209_vm4, %v195_v22, %v196_v23  ;;  %vm1059_vm10 = vmor %vm239_vm9, %vm240_vm7  ;;  %v893_v48 = vld [vmem:[%s1136_s1 + $0x10] sm:$0xff]  ;;  %v892_v55 = vld [vmem:[%s1136_s1 + $0x8] sm:$0xff] }
  0x17   : > { %624 = vmatpush.bf16.msra.mxu3 %v920_v11  ;;  %v221_v39 = vsel %vm205_vm2, %v217_v32, %v220_v35  ;;  %v224_v40 = vsel %vm211_vm5, %v222_v36, %v223_v37  ;;  %v242_v41 = vshrl.u32 %v206_v30, 16  ;;  %v917_v51 = vld [vmem:[%s1136_s1 + $0xd0] sm:$0xff]  ;;  %v837_v56 = vld [vmem:[%s1008_s14 + $0x2] sm:$0x3]  ;;  %v916_v57 = vld [vmem:[%s1136_s1 + $0xc8] sm:$0xff] }
  0x18   : > { %489 = vmatpush.bf16.msra.mxu2 %v911_v12  ;;  %v226_v42 = vrot.slane %v224_v40, 1  ;;  %v247_v44 = vshll.u32 %v214_v34, 16  ;;  %v250_v45 = vshrl.u32 %v221_v39, 16  ;;  %v838_v58 = vld [vmem:[%s1008_s14 + $0x4] sm:$0x3]  ;;  %v504_v63 = vrot.slane %v837_v56, 1 }
  0x19   : > { %333 = vmatpush.bf16.msra.mxu0 %v903_v13  ;;  %v907_v59 = vld [vmem:[%s1136_s1 + $0x80] sm:$0xff]  ;;  %v505_v0 = vrot.slane %v837_v56, 2  ;;  %v506_v1 = vrot.slane %v837_v56, 3  ;;  %v507_v3 = vrot.slane %v838_v58, 1  ;;  %v508_v4 = vrot.slane %v838_v58, 2 }
  0x1a   : > { %401 = vmatpush.bf16.msra.mxu1 %v895_v15  ;;  %v249_v49 = vsel %vm1059_vm10, %v242_v41, %v247_v44  ;;  %v255_v50 = vshll.u32 %v226_v42, 16  ;;  %v899_v60 = vld [vmem:[%s1136_s1 + $0x40] sm:$0xff]  ;;  %v509_v5 = vrot.slane %v838_v58, 3  ;;  %v517_v8 = vsel %vm207_vm3, %v837_v56, %v504_v63 }
  0x1b   : > { %625 = vmatpush.bf16.msra.mxu3 %v919_v20  ;;  %276 = vst [vmem:[#allocation1] ss:$9 sm:$0xff] %v249_v49  ;;  %v891_v61 = vld [vmem:[%s1136_s1] sm:$0xff]  ;;  %v518_v9 = vsel %vm209_vm4, %v505_v0, %v506_v1  ;;  %v529_v10 = vsel %vm207_vm3, %v838_v58, %v507_v3  ;;  %v512_v13 = vsel %vm197_vm0, %v837_v56, %v504_v63 }
  0x1c   : > { %490 = vmatpush.bf16.msra.mxu2 %v910_v28  ;;  %v257_v52 = vsel %vm1059_vm10, %v250_v45, %v255_v50  ;;  %v169_v62 = vld [vmem:[%s1008_s14] sm:$0x1]  ;;  %v170_v2 = vld [vmem:[%s1008_s14 + $0x2] sm:$0x1]  ;;  %v530_v11 = vsel %vm209_vm4, %v508_v4, %v509_v5  ;;  %v519_v12 = vsel %vm211_vm5, %v517_v8, %v518_v9  ;;  %v515_v14 = vsel %vm201_vm1, %v505_v0, %v506_v1  ;;  %v788_v19 = vld [vmem:[%s1008_s14 + $0x4] sm:$0x1] }
  0x1d   : > { %334 = vmatpush.bf16.msra.mxu0 %v902_v29  ;;  %279 = vst [vmem:[#allocation1 + $0x1] ss:$9 sm:$0xff] %v257_v52  ;;  %v915_v6 = vld [vmem:[%s1136_s1 + $0xc0] sm:$0xff]  ;;  %v531_v15 = vsel %vm211_vm5, %v529_v10, %v530_v11  ;;  %v524_v17 = vsel %vm197_vm0, %v838_v58, %v507_v3  ;;  %v527_v18 = vsel %vm201_vm1, %v508_v4, %v509_v5  ;;  %v521_v20 = vrot.slane %v519_v12, 1 }
  0x1e   : > { %402 = vmatpush.bf16.msra.mxu1 %v894_v33  ;;  %v787_v16 = vld [vmem:[%s1008_s14 + $0x2] sm:$0x1]  ;;  %v516_v22 = vsel %vm205_vm2, %v512_v13, %v515_v14  ;;  %v533_v23 = vrot.slane %v531_v15, 1  ;;  %v528_v24 = vsel %vm205_vm2, %v524_v17, %v527_v18  ;;  %v932_v41 = vld [vmem:[%s1137_s2] ss:$0 sm:$0xff]  ;;  %vm643_vm0 = vcmask 517120  }
  0x1f   : > { %626 = vmatpush.bf16.msra.mxu3 %v918_v38  ;;  %v534_v25 = vshrl.u32 %v516_v22, 16  ;;  %v539_v26 = vshll.u32 %v521_v20, 16  ;;  %v542_v27 = vshrl.u32 %v528_v24, 16 }
  0x20   : > { %491 = vmatpush.bf16.msra.mxu2 %v909_v46  ;;  %v547_v28 = vshll.u32 %v533_v23, 16 }
  0x21   : > { %335 = vmatpush.bf16.msra.mxu0 %v901_v47  ;;  %v541_v29 = vsel %vm1059_vm10, %v534_v25, %v539_v26 }
  0x22   : > { %403 = vmatpush.bf16.msra.mxu1 %v893_v48  ;;  %v549_v30 = vsel %vm1059_vm10, %v542_v27, %v547_v28 }
  0x23   : > { %627 = vmatpush.bf16.msra.mxu3 %v917_v51 }
  0x24   : > { %492 = vmatpush.bf16.msra.mxu2 %v908_v53  ;;  %v280_v7 = vld [vmem:[#allocation1] sm:$0xff] }
  0x25   : > { %336 = vmatpush.bf16.msra.mxu0 %v900_v54  ;;  %344 = vst [vmem:[#allocation1] ss:$9 sm:$0xff] %v169_v62 }
  0x26   : > { %404 = vmatpush.bf16.msra.mxu1 %v892_v55  ;;  %347 = vst [vmem:[#allocation1 + $0x1] ss:$9 sm:$0xff] %v170_v2 }
  0x27   : > { %628 = vmatpush.bf16.msra.mxu3 %v916_v57 }
  0x28   : > { %493 = vmatpush.bf16.msra.mxu2 %v907_v59 }
  0x29   : > { %337 = vmatpush.bf16.msra.mxu0 %v899_v60 }
  0x2a   : > { %405 = vmatpush.bf16.msra.mxu1 %v891_v61 }
  0x2b   : > { %629 = vmatpush.bf16.msra.mxu3 %v915_v6 }
  0x2c   : > { %338 = vmatmul.bf16.vlgmr.msra.gmra.mxu0 %v280_v7 }
  0x2d   : > { %v348_v21 = vld [vmem:[#allocation1] sm:$0xff] }
  0x2e   : > { %432 = vst [vmem:[#allocation1] ss:$9 sm:$0xff] %v787_v16  ;;  %406 = vmatmul.bf16.vlgmr.msra.gmra.mxu1 %v348_v21 }
  0x2f   : > { %435 = vst [vmem:[#allocation1 + $0x1] ss:$9 sm:$0xff] %v788_v19 }
  0x36   : > { %v436_v31 = vld [vmem:[#allocation1] sm:$0xff] }
  0x37   : > { %494 = vmatmul.bf16.vlgmr.msra.gmra.mxu2 %v436_v31  ;;  %568 = vst [vmem:[#allocation1] ss:$9 sm:$0xff] %v541_v29 }
  0x38   : > { %571 = vst [vmem:[#allocation1 + $0x1] ss:$9 sm:$0xff] %v549_v30 }
  0x3f   : > { %v572_v32 = vld [vmem:[#allocation1] sm:$0xff] }
  0x40   : > { %630 = vmatmul.bf16.vlgmr.msra.gmra.mxu3 %v572_v32 }
  0xa9   : > { %v339_v33 = vpop.f32.mrf.mxu0 }
  0xab   : > { %v407_v34 = vpop.f32.mrf.mxu1 }
  0xac   : > { %v408_v38 = vadd.f32 %v407_v34, %v339_v33 }
  0xb1   : > { %v341_v35 = vpop.f32.mrf.mxu0 }
  0xb3   : > { %v409_v36 = vpop.f32.mrf.mxu1 }
  0xba   : > { %v495_v37 = vpop.f32.mrf.mxu2 }
  0xbb   : > { %v499_v39 = vadd.f32 %v495_v37, %v408_v38 }
  0xc2   : > { %v497_v40 = vpop.f32.mrf.mxu2 }
  0xc3   : > { %v631_v42 = vpop.f32.mrf.mxu3 }
  0xc4   : > { %v635_v43 = vadd.f32 %v631_v42, %v499_v39 }
  0xc6   : > { %v640_v44 = vadd.f32 %v932_v41, %v635_v43 }
  0xc8   : > { %v641_v45 = vmax.f32 %v640_v44, 0.0 }
  0xca   : > { %v642_v46 = vpack.c.bf16 %v641_v45, %v641_v45 }
  0xcb   : > { %v633_v47 = vpop.f32.mrf.mxu3 }
  0xcc   : > { %644 = vst.msk [vmem:[%s168_s10] sm:$0x3] %vm643_vm0, %v642_v46 }
  0xcd PF: > { %s13_s12 = sadd.s32 1, %s939_s12  }
  0xce   : > { %p10_p4 = scmp.ge.s32.totalorder %s13_s12, 4  }
  0xd0   :  { %12 = sbr.rel (!%p10_p4) target bundleno = 1 (0x1), region = 70 }

// kernel: ssd_forward.12
= control target key start
LH: loop header
LB: loop body
LE: loop exit
PB: predicated region body
PF: predicated region fallthrough
CT: control target
= control target key end

     0   :  { %s1339_s12 = smov 0   ;;  %s1560_s0 = inlined_call_operand.vmem [shape: bf16[2,2,2,256], index: 0, kind: input, shape index: {}]   ;;  %s1561_s1 = inlined_call_operand.vmem [shape: bf16[4,256,64], index: 1, kind: input, shape index: {}]   ;;  %s1562_s2 = inlined_call_operand.vmem [shape: f32[1,64], index: 2, kind: input, shape index: {}]   ;;  %s1563_s3 = inlined_call_operand.vmem [shape: bf16[2,1,64], index: 3, kind: output, shape index: {}]  }
   0x1 LB: > { %s877_s13 = sadd.s32 4294967295, %s1317_s12   ;;  %p881_p0 = scmp.ge.s32.totalorder %s1317_s12, 1  ;;  %s1317_s12 = sphi %s1339_s12, %s13_s12  }
   0x2   : > { %p136_p1 = scmp.lt.s32.totalorder %s1317_s12, 3 }
   0x4   : > { %p137_p2 = pnand %p881_p0, %p136_p1 }
   0x5   : > { %p157_p3 = scmp.lt.s32.totalorder (!%p137_p2), %s877_s13, 1 }
   0x6   : > { %140 = sbr.rel (%p137_p2) target bundleno = 222 (0xde), region = 32 }
   0xb   : > { %v1262_v0 = vld [vmem:[%s1561_s1 + $0xb8] sm:$0xff]  ;;  %v1261_v4 = vld [vmem:[%s1561_s1 + $0xb0] sm:$0xff]  ;;  %s1565_s13 = smov (!%p157_p3, %s877_s13), 1  ;;  %v1260_v8 = vld [vmem:[%s1561_s1 + $0xa8] sm:$0xff]  ;;  %vm824_vm0 = vcmask 516096  }
   0xc   : > { %v1270_v1 = vld [vmem:[%s1561_s1 + $0xf8] sm:$0xff]  ;;  %336 = vmatpush.bf16.msra.mxu0 %v1262_v0  ;;  %v1269_v5 = vld [vmem:[%s1561_s1 + $0xf0] sm:$0xff]  ;;  %v1268_v9 = vld [vmem:[%s1561_s1 + $0xe8] sm:$0xff]  ;;  %s882_s11 = sshll.u32 %s1565_s13, 2  ;;  %s163_s27 = scalar_lea.vmem %s1563_s3, %s1565_s13  ;;  %vm825_vm1 = vsmask.f32 256 }
   0xd   : > { %v1246_v2 = vld [vmem:[%s1561_s1 + $0x38] sm:$0xff]  ;;  %349 = vmatpush.bf16.msra.mxu1 %v1270_v1  ;;  %v1245_v6 = vld [vmem:[%s1561_s1 + $0x30] sm:$0xff]  ;;  %v1244_v10 = vld [vmem:[%s1561_s1 + $0x28] sm:$0xff]  ;;  %s1395_s20 = scalar_lea.vmem %s1560_s0, %s882_s11 }
   0xe   : > { %v1254_v3 = vld [vmem:[%s1561_s1 + $0x78] sm:$0xff]  ;;  %463 = vmatpush.bf16.msra.mxu2 %v1246_v2  ;;  %v1253_v7 = vld [vmem:[%s1561_s1 + $0x70] sm:$0xff]  ;;  %v1252_v11 = vld [vmem:[%s1561_s1 + $0x68] sm:$0xff] }
   0xf   : > { %476 = vmatpush.bf16.msra.mxu3 %v1254_v3  ;;  %v1259_v12 = vld [vmem:[%s1561_s1 + $0xa0] sm:$0xff]  ;;  %v1258_v17 = vld [vmem:[%s1561_s1 + $0x98] sm:$0xff]  ;;  %v1257_v21 = vld [vmem:[%s1561_s1 + $0x90] sm:$0xff] }
  0x10   : > { %337 = vmatpush.bf16.msra.mxu0 %v1261_v4  ;;  %v1267_v13 = vld [vmem:[%s1561_s1 + $0xe0] sm:$0xff]  ;;  %v1266_v18 = vld [vmem:[%s1561_s1 + $0xd8] sm:$0xff]  ;;  %v1265_v22 = vld [vmem:[%s1561_s1 + $0xd0] sm:$0xff] }
  0x11   : > { %350 = vmatpush.bf16.msra.mxu1 %v1269_v5  ;;  %v1243_v14 = vld [vmem:[%s1561_s1 + $0x20] sm:$0xff]  ;;  %v1242_v19 = vld [vmem:[%s1561_s1 + $0x18] sm:$0xff]  ;;  %v1241_v23 = vld [vmem:[%s1561_s1 + $0x10] sm:$0xff] }
  0x12   : > { %464 = vmatpush.bf16.msra.mxu2 %v1245_v6  ;;  %v1251_v15 = vld [vmem:[%s1561_s1 + $0x60] sm:$0xff]  ;;  %v1250_v20 = vld [vmem:[%s1561_s1 + $0x58] sm:$0xff]  ;;  %v1249_v24 = vld [vmem:[%s1561_s1 + $0x50] sm:$0xff] }
  0x13   : > { %477 = vmatpush.bf16.msra.mxu3 %v1253_v7  ;;  %v164_v16 = vld [vmem:[%s1395_s20] sm:$0x3]  ;;  %v1256_v27 = vld [vmem:[%s1561_s1 + $0x88] sm:$0xff]  ;;  %v1043_v35 = vld [vmem:[%s1395_s20 + $0x2] sm:$0x3] }
  0x14   : > { %338 = vmatpush.bf16.msra.mxu0 %v1260_v8  ;;  %231 = vst [vmem:[#allocation1] ss:$9 sm:$0xff] %v164_v16  ;;  %v1264_v28 = vld [vmem:[%s1561_s1 + $0xc8] sm:$0xff]  ;;  %v1255_v31 = vld [vmem:[%s1561_s1 + $0x80] sm:$0xff]  ;;  %v1278_v36 = vld [vmem:[%s1561_s1 + $0x138] sm:$0xff] }
  0x15   : > { %351 = vmatpush.bf16.msra.mxu1 %v1268_v9  ;;  %v1240_v29 = vld [vmem:[%s1561_s1 + $0x8] sm:$0xff]  ;;  %v1263_v32 = vld [vmem:[%s1561_s1 + $0xc0] sm:$0xff]  ;;  %v1286_v37 = vld [vmem:[%s1561_s1 + $0x178] sm:$0xff] }
  0x16   : > { %465 = vmatpush.bf16.msra.mxu2 %v1244_v10  ;;  %v1248_v30 = vld [vmem:[%s1561_s1 + $0x48] sm:$0xff]  ;;  %v1239_v33 = vld [vmem:[%s1561_s1] sm:$0xff]  ;;  %v1294_v38 = vld [vmem:[%s1561_s1 + $0x1b8] sm:$0xff] }
  0x17   : > { %478 = vmatpush.bf16.msra.mxu3 %v1252_v11  ;;  %v1247_v34 = vld [vmem:[%s1561_s1 + $0x40] sm:$0xff]  ;;  %v1302_v39 = vld [vmem:[%s1561_s1 + $0x1f8] sm:$0xff]  ;;  %v1277_v44 = vld [vmem:[%s1561_s1 + $0x130] sm:$0xff] }
  0x18   : > { %339 = vmatpush.bf16.msra.mxu0 %v1259_v12  ;;  %v1285_v45 = vld [vmem:[%s1561_s1 + $0x170] sm:$0xff]  ;;  %v1140_v48 = vld [vmem:[%s1395_s20 + $0x2] sm:$0x3]  ;;  %v1276_v49 = vld [vmem:[%s1561_s1 + $0x128] sm:$0xff] }
  0x19   : > { %352 = vmatpush.bf16.msra.mxu1 %v1267_v13  ;;  %v1293_v46 = vld [vmem:[%s1561_s1 + $0x1b0] sm:$0xff]  ;;  %v1284_v50 = vld [vmem:[%s1561_s1 + $0x168] sm:$0xff]  ;;  %v1275_v55 = vld [vmem:[%s1561_s1 + $0x120] sm:$0xff] }
  0x1a   : > { %466 = vmatpush.bf16.msra.mxu2 %v1243_v14  ;;  %v1301_v47 = vld [vmem:[%s1561_s1 + $0x1f0] sm:$0xff]  ;;  %v1292_v51 = vld [vmem:[%s1561_s1 + $0x1a8] sm:$0xff]  ;;  %v1283_v56 = vld [vmem:[%s1561_s1 + $0x160] sm:$0xff] }
  0x1b   : > { %479 = vmatpush.bf16.msra.mxu3 %v1251_v15  ;;  %v232_v25 = vld [vmem:[#allocation1] sm:$0xff]  ;;  %v233_v26 = vld [vmem:[#allocation1 + $0x9] sm:$0xff]  ;;  %v1274_v59 = vld [vmem:[%s1561_s1 + $0x118] sm:$0xff] }
  0x1c   : > { %340 = vmatpush.bf16.msra.mxu0 %v1258_v17  ;;  %362 = vst [vmem:[#allocation1] ss:$9 sm:$0xff] %v164_v16  ;;  %v234_v42 = vshrl.u32 %v232_v25, 16  ;;  %v236_v43 = vshrl.u32 %v233_v26, 16  ;;  %v1300_v52 = vld [vmem:[%s1561_s1 + $0x1e8] sm:$0xff]  ;;  %v1291_v57 = vld [vmem:[%s1561_s1 + $0x1a0] sm:$0xff]  ;;  %vm826_vm2 = vmand %vm824_vm0, %vm825_vm1 }
  0x1d   : > { %353 = vmatpush.bf16.msra.mxu1 %v1266_v18  ;;  %v1299_v58 = vld [vmem:[%s1561_s1 + $0x1e0] sm:$0xff]  ;;  %v1282_v60 = vld [vmem:[%s1561_s1 + $0x158] sm:$0xff]  ;;  %v1273_v63 = vld [vmem:[%s1561_s1 + $0x110] sm:$0xff] }
  0x1e   : > { %467 = vmatpush.bf16.msra.mxu2 %v1242_v19  ;;  %v1290_v61 = vld [vmem:[%s1561_s1 + $0x198] sm:$0xff]  ;;  %v1281_v0 = vld [vmem:[%s1561_s1 + $0x150] sm:$0xff]  ;;  %v1272_v3 = vld [vmem:[%s1561_s1 + $0x108] sm:$0xff] }
  0x1f   : > { %480 = vmatpush.bf16.msra.mxu3 %v1250_v20  ;;  %v1298_v62 = vld [vmem:[%s1561_s1 + $0x1d8] sm:$0xff]  ;;  %v1289_v1 = vld [vmem:[%s1561_s1 + $0x190] sm:$0xff]  ;;  %v1280_v4 = vld [vmem:[%s1561_s1 + $0x148] sm:$0xff] }
  0x20   : > { %341 = vmatpush.bf16.msra.mxu0 %v1257_v21  ;;  %v1297_v2 = vld [vmem:[%s1561_s1 + $0x1d0] sm:$0xff]  ;;  %v1288_v5 = vld [vmem:[%s1561_s1 + $0x188] sm:$0xff]  ;;  %v1271_v7 = vld [vmem:[%s1561_s1 + $0x100] sm:$0xff] }
  0x21   : > { %354 = vmatpush.bf16.msra.mxu1 %v1265_v22  ;;  %v1296_v6 = vld [vmem:[%s1561_s1 + $0x1c8] sm:$0xff]  ;;  %v1279_v8 = vld [vmem:[%s1561_s1 + $0x140] sm:$0xff] }
  0x22   : > { %468 = vmatpush.bf16.msra.mxu2 %v1241_v23  ;;  %v1287_v9 = vld [vmem:[%s1561_s1 + $0x180] sm:$0xff] }
  0x23   : > { %481 = vmatpush.bf16.msra.mxu3 %v1249_v24  ;;  %v363_v40 = vld [vmem:[#allocation1] sm:$0xff]  ;;  %v364_v41 = vld [vmem:[#allocation1 + $0x9] sm:$0xff] }
  0x24   : > { %342 = vmatpush.bf16.msra.mxu0 %v1256_v27  ;;  %525 = vst [vmem:[#allocation1] ss:$9 sm:$0xff] %v1043_v35  ;;  %v1295_v10 = vld [vmem:[%s1561_s1 + $0x1c0] sm:$0xff] }
  0x25   : > { %355 = vmatpush.bf16.msra.mxu1 %v1264_v28  ;;  %v820_v35 = vld [vmem:[%s1562_s2] sm:$0x1] }
  0x26   : > { %469 = vmatpush.bf16.msra.mxu2 %v1240_v29 }
  0x27   : > { %482 = vmatpush.bf16.msra.mxu3 %v1248_v30 }
  0x28   : > { %343 = vmatpush.bf16.msra.mxu0 %v1255_v31 }
  0x29   : > { %356 = vmatpush.bf16.msra.mxu1 %v1263_v32 }
  0x2a   : > { %470 = vmatpush.bf16.msra.mxu2 %v1239_v33 }
  0x2b   : > { %483 = vmatpush.bf16.msra.mxu3 %v1247_v34  ;;  %344 = vmatmul.bf16.vlgmr.msra.gmra.mxu0 %v234_v42  ;;  %v526_v53 = vld [vmem:[#allocation1] sm:$0xff]  ;;  %v527_v54 = vld [vmem:[#allocation1 + $0x9] sm:$0xff] }
  0x2c   : > { %626 = vmatpush.bf16.msrb.mxu0 %v1278_v36  ;;  %357 = vmatmul.bf16.vlgmr.msra.gmra.mxu1 %v236_v43  ;;  %688 = vst [vmem:[#allocation1] ss:$9 sm:$0xff] %v1140_v48 }
  0x2d   : > { %639 = vmatpush.bf16.msrb.mxu1 %v1286_v37  ;;  %471 = vmatmul.bf16.vlgmr.msra.gmra.mxu2 %v363_v40 }
  0x2e   : > { %793 = vmatpush.bf16.msrb.mxu2 %v1294_v38  ;;  %484 = vmatmul.bf16.vlgmr.msra.gmra.mxu3 %v364_v41 }
  0x2f   : > { %806 = vmatpush.bf16.msrb.mxu3 %v1302_v39  ;;  %v827_v39 = vld [vmem:[%s163_s27] sm:$0x1] }
  0x30   : > { %627 = vmatpush.bf16.msrb.mxu0 %v1277_v44 }
  0x31   : > { %640 = vmatpush.bf16.msrb.mxu1 %v1285_v45 }
  0x32   : > { %794 = vmatpush.bf16.msrb.mxu2 %v1293_v46 }
  0x33   : > { %807 = vmatpush.bf16.msrb.mxu3 %v1301_v47  ;;  %v689_v11 = vld [vmem:[#allocation1] sm:$0xff]  ;;  %v690_v12 = vld [vmem:[#allocation1 + $0x9] sm:$0xff] }
  0x34   : > { %628 = vmatpush.bf16.msrb.mxu0 %v1276_v49  ;;  %v691_v13 = vshrl.u32 %v689_v11, 16  ;;  %v693_v14 = vshrl.u32 %v690_v12, 16 }
  0x35   : > { %641 = vmatpush.bf16.msrb.mxu1 %v1284_v50 }
  0x36   : > { %795 = vmatpush.bf16.msrb.mxu2 %v1292_v51 }
  0x37   : > { %808 = vmatpush.bf16.msrb.mxu3 %v1300_v52 }
  0x38   : > { %629 = vmatpush.bf16.msrb.mxu0 %v1275_v55 }
  0x39   : > { %642 = vmatpush.bf16.msrb.mxu1 %v1283_v56 }
  0x3a   : > { %796 = vmatpush.bf16.msrb.mxu2 %v1291_v57 }
  0x3b   : > { %809 = vmatpush.bf16.msrb.mxu3 %v1299_v58 }
  0x3c   : > { %630 = vmatpush.bf16.msrb.mxu0 %v1274_v59 }
  0x3d   : > { %643 = vmatpush.bf16.msrb.mxu1 %v1282_v60 }
  0x3e   : > { %797 = vmatpush.bf16.msrb.mxu2 %v1290_v61 }
  0x3f   : > { %810 = vmatpush.bf16.msrb.mxu3 %v1298_v62 }
  0x40   : > { %631 = vmatpush.bf16.msrb.mxu0 %v1273_v63 }
  0x41   : > { %644 = vmatpush.bf16.msrb.mxu1 %v1281_v0 }
  0x42   : > { %798 = vmatpush.bf16.msrb.mxu2 %v1289_v1 }
  0x43   : > { %811 = vmatpush.bf16.msrb.mxu3 %v1297_v2 }
  0x44   : > { %632 = vmatpush.bf16.msrb.mxu0 %v1272_v3 }
  0x45   : > { %645 = vmatpush.bf16.msrb.mxu1 %v1280_v4 }
  0x46   : > { %799 = vmatpush.bf16.msrb.mxu2 %v1288_v5 }
  0x47   : > { %812 = vmatpush.bf16.msrb.mxu3 %v1296_v6 }
  0x48   : > { %633 = vmatpush.bf16.msrb.mxu0 %v1271_v7 }
  0x49   : > { %646 = vmatpush.bf16.msrb.mxu1 %v1279_v8 }
  0x4a   : > { %800 = vmatpush.bf16.msrb.mxu2 %v1287_v9 }
  0x4b   : > { %813 = vmatpush.bf16.msrb.mxu3 %v1295_v10  ;;  %634 = vmatmul.bf16.vlgmr.msrb.gmra.mxu0 %v526_v53 }
  0x4c   : > { %647 = vmatmul.bf16.vlgmr.msrb.gmra.mxu1 %v527_v54 }
  0x4d   : > { %801 = vmatmul.bf16.vlgmr.msrb.gmra.mxu2 %v691_v13 }
  0x4e   : > { %814 = vmatmul.bf16.vlgmr.msrb.gmra.mxu3 %v693_v14 }
  0xa8   : > { %v345_v15 = vpop.f32.mrf.mxu0 }
  0xa9   : > { %v358_v16 = vpop.f32.mrf.mxu1 }
  0xaa   : > { %v359_v23 = vadd.f32 %v358_v16, %v345_v15 }
  0xb0   : > { %v472_v17 = vpop.f32.mrf.mxu2  ;;  %v347_v19 = vpop.f32.mrf.mxu0 }
  0xb1   : > { %v485_v18 = vpop.f32.mrf.mxu3  ;;  %v360_v20 = vpop.f32.mrf.mxu1  ;;  %v473_v26 = vadd.f32 %v472_v17, %v359_v23 }
  0xb3   : > { %v486_v28 = vadd.f32 %v485_v18, %v473_v26 }
  0xb8   : > { %v474_v21 = vpop.f32.mrf.mxu2 }
  0xb9   : > { %v487_v22 = vpop.f32.mrf.mxu3 }
  0xc8   : > { %v635_v24 = vpop.f32.mrf.mxu0 }
  0xc9   : > { %v648_v25 = vpop.f32.mrf.mxu1 }
  0xca   : > { %v649_v27 = vadd.f32 %v648_v25, %v635_v24 }
  0xcc   : > { %v652_v31 = vadd.f32 %v649_v27, %v486_v28 }
  0xd0   : > { %v802_v29 = vpop.f32.mrf.mxu2  ;;  %v637_v33 = vpop.f32.mrf.mxu0 }
  0xd1   : > { %v815_v30 = vpop.f32.mrf.mxu3  ;;  %v650_v34 = vpop.f32.mrf.mxu1 }
  0xd2   : > { %v816_v32 = vadd.f32 %v815_v30, %v802_v29 }
  0xd4   : > { %v819_v36 = vadd.f32 %v816_v32, %v652_v31 }
  0xd6   : > { %v821_v37 = vadd.f32 %v820_v35, %v819_v36 }
  0xd8   : > { %v822_v38 = vmax.f32 %v821_v37, 0.0  ;;  %v804_v40 = vpop.f32.mrf.mxu2 }
  0xd9   : > { %v817_v41 = vpop.f32.mrf.mxu3 }
  0xda   : > { %v823_v42 = vpack.c.bf16 %v822_v38, %v822_v38 }
  0xdc   : > { %v828_v43 = vsel %vm826_vm2, %v823_v42, %v827_v39 }
  0xdd   : > { %829 = vst [vmem:[%s163_s27] sm:$0x1] %v828_v43 }
  0xde PF: > { %s13_s12 = sadd.s32 1, %s1317_s12  }
  0xdf   : > { %p10_p4 = scmp.ge.s32.totalorder %s13_s12, 4  }
  0xe1   :  { %12 = sbr.rel (!%p10_p4) target bundleno = 1 (0x1), region = 66 }

// kernel: ssd_forward.13
= control target key start
LH: loop header
LB: loop body
LE: loop exit
PB: predicated region body
PF: predicated region fallthrough
CT: control target
= control target key end

     0   :  { %s1004_s12 = smov 0   ;;  %s1153_s0 = inlined_call_operand.vmem [shape: bf16[2,3,3,64], index: 0, kind: input, shape index: {}]   ;;  %s1154_s1 = inlined_call_operand.vmem [shape: bf16[9,64,36], index: 1, kind: input, shape index: {}]   ;;  %s1155_s2 = inlined_call_operand.vmem [shape: f32[1,36], index: 2, kind: input, shape index: {}]   ;;  %s1156_s3 = inlined_call_operand.vmem [shape: f32[2,1,36], index: 3, kind: output, shape index: {}]  }
   0x1 LB: > { %s702_s13 = sadd.s32 4294967295, %s982_s12   ;;  %p706_p0 = scmp.ge.s32.totalorder %s982_s12, 1  ;;  %s982_s12 = sphi %s1004_s12, %s13_s12  }
   0x2   : > { %p137_p1 = scmp.lt.s32.totalorder %s982_s12, 3 }
   0x4   : > { %p138_p2 = pnand %p706_p0, %p137_p1 }
   0x5   : > { %p159_p3 = scmp.lt.s32.totalorder (!%p138_p2), %s702_s13, 1 }
   0x6   : > { %141 = sbr.rel (%p138_p2) target bundleno = 200 (0xc8), region = 32 }
   0xb   : > { %v938_v0 = vld [vmem:[%s1154_s1 + $0x38] sm:$0xff]  ;;  %v937_v4 = vld [vmem:[%s1154_s1 + $0x30] sm:$0xff]  ;;  %s1158_s13 = smov (!%p159_p3, %s702_s13), 1  ;;  %v936_v8 = vld [vmem:[%s1154_s1 + $0x28] sm:$0xff]  ;;  %vm215_vm0 = vcmask 523264   ;;  %vm653_vm1 = vcmask 286720  }
   0xc   : > { %v934_v1 = vld [vmem:[%s1154_s1 + $0x18] sm:$0xff]  ;;  %223 = vmatpush.bf16.msra.mxu0 %v938_v0  ;;  %v933_v5 = vld [vmem:[%s1154_s1 + $0x10] sm:$0xff]  ;;  %s967_s30 = smul.u32 6, %s1158_s13  ;;  %v932_v10 = vld [vmem:[%s1154_s1 + $0x8] sm:$0xff]  ;;  %s166_s20 = scalar_lea.vmem %s1156_s3, %s1158_s13 }
   0xd   : > { %v942_v2 = vld [vmem:[%s1154_s1 + $0x58] sm:$0xff]  ;;  %262 = vmatpush.bf16.msra.mxu1 %v934_v1  ;;  %v941_v6 = vld [vmem:[%s1154_s1 + $0x50] sm:$0xff]  ;;  %v940_v11 = vld [vmem:[%s1154_s1 + $0x48] sm:$0xff] }
   0xe   : > { %v946_v3 = vld [vmem:[%s1154_s1 + $0x78] sm:$0xff]  ;;  %317 = vmatpush.bf16.msra.mxu2 %v942_v2  ;;  %v945_v7 = vld [vmem:[%s1154_s1 + $0x70] sm:$0xff]  ;;  %s1045_s8 = scalar_lea.vmem %s1153_s0, %s967_s30  ;;  %v944_v12 = vld [vmem:[%s1154_s1 + $0x68] sm:$0xff] }
   0xf   : > { %369 = vmatpush.bf16.msra.mxu3 %v946_v3  ;;  %v168_v9 = vld [vmem:[%s1045_s8] sm:$0x1]  ;;  %v950_v14 = vld [vmem:[%s1154_s1 + $0x98] sm:$0xff]  ;;  %v271_v18 = vld [vmem:[%s1045_s8] sm:$0x2] }
  0x10   : > { %224 = vmatpush.bf16.msra.mxu0 %v937_v4  ;;  %187 = vst [vmem:[#allocation1] ss:$4 sm:$0xff] %v168_v9  ;;  %v935_v13 = vld [vmem:[%s1154_s1 + $0x20] sm:$0xff]  ;;  %v954_v19 = vld [vmem:[%s1154_s1 + $0xb8] sm:$0xff]  ;;  %v949_v22 = vld [vmem:[%s1154_s1 + $0x90] sm:$0xff] }
  0x11   : > { %263 = vmatpush.bf16.msra.mxu1 %v933_v5  ;;  %v931_v15 = vld [vmem:[%s1154_s1] sm:$0xff]  ;;  %v958_v20 = vld [vmem:[%s1154_s1 + $0xd8] sm:$0xff]  ;;  %v953_v25 = vld [vmem:[%s1154_s1 + $0xb0] sm:$0xff] }
  0x12   : > { %318 = vmatpush.bf16.msra.mxu2 %v941_v6  ;;  %v939_v16 = vld [vmem:[%s1154_s1 + $0x40] sm:$0xff]  ;;  %v962_v24 = vld [vmem:[%s1154_s1 + $0xf8] sm:$0xff]  ;;  %v957_v26 = vld [vmem:[%s1154_s1 + $0xd0] sm:$0xff] }
  0x13   : > { %370 = vmatpush.bf16.msra.mxu3 %v945_v7  ;;  %v943_v17 = vld [vmem:[%s1154_s1 + $0x60] sm:$0xff]  ;;  %v948_v28 = vld [vmem:[%s1154_s1 + $0x88] sm:$0xff]  ;;  %v961_v29 = vld [vmem:[%s1154_s1 + $0xf0] sm:$0xff] }
  0x14   : > { %225 = vmatpush.bf16.msra.mxu0 %v936_v8  ;;  %v775_v27 = vld [vmem:[%s1045_s8 + $0x2] sm:$0x1]  ;;  %v952_v30 = vld [vmem:[%s1154_s1 + $0xa8] sm:$0xff]  ;;  %v966_v35 = vld [vmem:[%s1154_s1 + $0x118] sm:$0xff] }
  0x15   : > { %264 = vmatpush.bf16.msra.mxu1 %v932_v10  ;;  %v956_v31 = vld [vmem:[%s1154_s1 + $0xc8] sm:$0xff]  ;;  %v947_v33 = vld [vmem:[%s1154_s1 + $0x80] sm:$0xff]  ;;  %v965_v39 = vld [vmem:[%s1154_s1 + $0x110] sm:$0xff] }
  0x16   : > { %319 = vmatpush.bf16.msra.mxu2 %v940_v11  ;;  %v960_v36 = vld [vmem:[%s1154_s1 + $0xe8] sm:$0xff]  ;;  %v951_v37 = vld [vmem:[%s1154_s1 + $0xa0] sm:$0xff] }
  0x17   : > { %371 = vmatpush.bf16.msra.mxu3 %v944_v12  ;;  %v188_v21 = vld.sshfl [vmem:[#allocation1] sm:$0xff pattern:$0x73625140]  ;;  %v964_v44 = vld [vmem:[%s1154_s1 + $0x108] sm:$0xff] }
  0x18   : > { %226 = vmatpush.bf16.msra.mxu0 %v935_v13  ;;  %v189_v23 = vshrl.u32 %v188_v21, 16  ;;  %282 = vst [vmem:[#allocation1] ss:$4 sm:$0xff] %v271_v18  ;;  %v955_v38 = vld [vmem:[%s1154_s1 + $0xc0] sm:$0xff] }
  0x19   : > { %265 = vmatpush.bf16.msra.mxu1 %v931_v15  ;;  %v959_v40 = vld [vmem:[%s1154_s1 + $0xe0] sm:$0xff] }
  0x1a   : > { %320 = vmatpush.bf16.msra.mxu2 %v939_v16  ;;  %v826_v41 = vld [vmem:[%s1045_s8 + $0x2] sm:$0x2]  ;;  %v852_v46 = vld [vmem:[%s1045_s8 + $0x4] sm:$0x1]  ;;  %v903_v49 = vld [vmem:[%s1045_s8 + $0x4] sm:$0x2] }
  0x1b   : > { %372 = vmatpush.bf16.msra.mxu3 %v943_v17  ;;  %732 = vmatmul.msk.bf16.vlgmr.msra.gmra.mxu0 %vm215_vm0, %v189_v23  ;;  %v963_v45 = vld [vmem:[%s1154_s1 + $0x100] sm:$0xff] }
  0x1c   : > { %423 = vmatpush.bf16.msrb.mxu0 %v950_v14  ;;  %749 = vmatmul.msk.bf16.vlgmr.msra.gmra.mxu1 %vm215_vm0, %v168_v9  ;;  %v651_v13 = vld [vmem:[%s1155_s2] sm:$0x1] }
  0x1d   : > { %479 = vmatpush.bf16.msrb.mxu1 %v954_v19 }
  0x1e   : > { %531 = vmatpush.bf16.msrb.mxu2 %v958_v20  ;;  %800 = vmatmul.msk.bf16.vlgmr.msra.gmra.mxu3 %vm215_vm0, %v775_v27 }
  0x1f   : > { %585 = vmatpush.bf16.msrb.mxu3 %v962_v24  ;;  %v283_v32 = vld.sshfl [vmem:[#allocation1] sm:$0xff pattern:$0x73625140] }
  0x20   : > { %424 = vmatpush.bf16.msrb.mxu0 %v949_v22  ;;  %v285_v34 = vrot.slane %v283_v32, 1  ;;  %388 = vst [vmem:[#allocation1] ss:$4 sm:$0xff] %v775_v27 }
  0x21   : > { %480 = vmatpush.bf16.msrb.mxu1 %v953_v25 }
  0x22   : > { %532 = vmatpush.bf16.msrb.mxu2 %v957_v26 }
  0x23   : > { %586 = vmatpush.bf16.msrb.mxu3 %v961_v29  ;;  %774 = vmatmul.msk.bf16.vlgmr.msra.gmra.mxu2 %vm215_vm0, %v285_v34 }
  0x24   : > { %425 = vmatpush.bf16.msrb.mxu0 %v948_v28 }
  0x25   : > { %481 = vmatpush.bf16.msrb.mxu1 %v952_v30 }
  0x26   : > { %533 = vmatpush.bf16.msrb.mxu2 %v956_v31 }
  0x27   : > { %587 = vmatpush.bf16.msrb.mxu3 %v960_v36  ;;  %v389_v42 = vld.sshfl [vmem:[#allocation1] sm:$0xff pattern:$0x73625140] }
  0x28   : > { %426 = vmatpush.bf16.msrb.mxu0 %v947_v33  ;;  %v390_v43 = vshrl.u32 %v389_v42, 16  ;;  %444 = vst [vmem:[#allocation1] ss:$4 sm:$0xff] %v826_v41 }
  0x29   : > { %482 = vmatpush.bf16.msrb.mxu1 %v951_v37 }
  0x2a   : > { %534 = vmatpush.bf16.msrb.mxu2 %v955_v38 }
  0x2b   : > { %588 = vmatpush.bf16.msrb.mxu3 %v959_v40  ;;  %825 = vmatmul.msk.bf16.vlgmr.msrb.gmra.mxu0 %vm215_vm0, %v390_v43 }
  0x2c   : > { %641 = vmatpush.bf16.msra.mxu0 %v966_v35 }
  0x2f   : > { %v445_v47 = vld.sshfl [vmem:[#allocation1] sm:$0xff pattern:$0x73625140] }
  0x30   : > { %642 = vmatpush.bf16.msra.mxu0 %v965_v39  ;;  %v447_v48 = vrot.slane %v445_v47, 1  ;;  %550 = vst [vmem:[#allocation1] ss:$4 sm:$0xff] %v852_v46 }
  0x32   : > { %851 = vmatmul.msk.bf16.vlgmr.msrb.gmra.mxu1 %vm215_vm0, %v447_v48 }
  0x33   : > { %877 = vmatmul.msk.bf16.vlgmr.msrb.gmra.mxu2 %vm215_vm0, %v852_v46 }
  0x34   : > { %643 = vmatpush.bf16.msra.mxu0 %v964_v44 }
  0x37   : > { %v551_v50 = vld.sshfl [vmem:[#allocation1] sm:$0xff pattern:$0x73625140] }
  0x38   : > { %644 = vmatpush.bf16.msra.mxu0 %v963_v45  ;;  %v552_v51 = vshrl.u32 %v551_v50, 16  ;;  %606 = vst [vmem:[#allocation1] ss:$4 sm:$0xff] %v903_v49 }
  0x3a   : > { %902 = vmatmul.msk.bf16.vlgmr.msrb.gmra.mxu3 %vm215_vm0, %v552_v51 }
  0x3f   : > { %v607_v52 = vld.sshfl [vmem:[#allocation1] sm:$0xff pattern:$0x73625140] }
  0x40   : > { %v609_v53 = vrot.slane %v607_v52, 1 }
  0x42   : > { %928 = vmatmul.msk.bf16.vlgmr.msra.gmra.mxu0 %vm215_vm0, %v609_v53 }
  0x98   : > { %v228_v54 = vpop.f32.mrf.mxu0 }
  0x99   : > { %v267_v55 = vpop.f32.mrf.mxu1 }
  0x9a   : > { %v268_v63 = vadd.f32 %v267_v55, %v228_v54 }
  0xa0   : > { %v230_v57 = vpop.f32.mrf.mxu0 }
  0xa1   : > { %v374_v56 = vpop.f32.mrf.mxu3  ;;  %v269_v58 = vpop.f32.mrf.mxu1 }
  0xa6   : > { %v322_v59 = vpop.f32.mrf.mxu2 }
  0xa7   : > { %v326_v2 = vadd.f32 %v322_v59, %v268_v63 }
  0xa8   : > { %v428_v61 = vpop.f32.mrf.mxu0 }
  0xa9   : > { %v376_v60 = vpop.f32.mrf.mxu3  ;;  %v378_v3 = vadd.f32 %v374_v56, %v326_v2 }
  0xab   : > { %v432_v6 = vadd.f32 %v428_v61, %v378_v3 }
  0xae   : > { %v324_v62 = vpop.f32.mrf.mxu2 }
  0xaf   : > { %v484_v1 = vpop.f32.mrf.mxu1 }
  0xb0   : > { %v430_v0 = vpop.f32.mrf.mxu0  ;;  %v488_v7 = vadd.f32 %v484_v1, %v432_v6 }
  0xb6   : > { %v536_v4 = vpop.f32.mrf.mxu2 }
  0xb7   : > { %v486_v5 = vpop.f32.mrf.mxu1  ;;  %v540_v8 = vadd.f32 %v536_v4, %v488_v7 }
  0xbd   : > { %v590_v9 = vpop.f32.mrf.mxu3 }
  0xbe   : > { %v538_v10 = vpop.f32.mrf.mxu2  ;;  %v594_v11 = vadd.f32 %v590_v9, %v540_v8 }
  0xbf   : > { %v646_v12 = vpop.f32.mrf.mxu0 }
  0xc0   : > { %v650_v14 = vadd.f32 %v646_v12, %v594_v11 }
  0xc2   : > { %v652_v15 = vadd.f32 %v651_v13, %v650_v14 }
  0xc4   : > { %654 = vst.msk [vmem:[%s166_s20] sm:$0x1] %vm653_vm1, %v652_v15 }
  0xc5   : > { %v592_v16 = vpop.f32.mrf.mxu3 }
  0xc7   : > { %v648_v17 = vpop.f32.mrf.mxu0 }
  0xc8 PF: > { %s13_s12 = sadd.s32 1, %s982_s12  }
  0xc9   : > { %p10_p4 = scmp.ge.s32.totalorder %s13_s12, 4  }
  0xcb   :  { %12 = sbr.rel (!%p10_p4) target bundleno = 1 (0x1), region = 72 }

// kernel: ssd_forward.11
= control target key start
LH: loop header
LB: loop body
LE: loop exit
PB: predicated region body
PF: predicated region fallthrough
CT: control target
= control target key end

     0   :  { %s1245_s12 = smov 0   ;;  %s1472_s0 = inlined_call_operand.vmem [shape: bf16[2,4,4,64], index: 0, kind: input, shape index: {}]   ;;  %s1473_s1 = inlined_call_operand.vmem [shape: bf16[9,64,36], index: 1, kind: input, shape index: {}]   ;;  %s1474_s2 = inlined_call_operand.vmem [shape: f32[1,36], index: 2, kind: input, shape index: {}]   ;;  %s1475_s3 = inlined_call_operand.vmem [shape: f32[2,4,36], index: 3, kind: output, shape index: {}]  }
   0x1 LB: > { %s926_s13 = sadd.s32 4294967295, %s1223_s12   ;;  %p930_p0 = scmp.ge.s32.totalorder %s1223_s12, 1  ;;  %s1223_s12 = sphi %s1245_s12, %s13_s12  }
   0x2   : > { %p137_p1 = scmp.lt.s32.totalorder %s1223_s12, 3 }
   0x4   : > { %p138_p2 = pnand %p930_p0, %p137_p1 }
   0x5   : > { %p160_p3 = scmp.lt.s32.totalorder (!%p138_p2), %s926_s13, 1 }
   0x6   : > { %141 = sbr.rel (%p138_p2) target bundleno = 265 (0x109), region = 32 }
   0xb   : > { %v1179_v0 = vld [vmem:[%s1473_s1 + $0x38] sm:$0xff]  ;;  %v1178_v3 = vld [vmem:[%s1473_s1 + $0x30] sm:$0xff]  ;;  %s1481_s13 = smov (!%p160_p3, %s926_s13), 1  ;;  %vm190_vm0 = vcmask 1040384   ;;  %vm194_vm1 = vcmask 1042434   ;;  %vm198_vm3 = vcmask 1041408  }
   0xc   : > { %v1175_v1 = vld [vmem:[%s1473_s1 + $0x18] sm:$0xff]  ;;  %297 = vmatpush.bf16.msra.mxu0 %v1179_v0  ;;  %v1174_v4 = vld [vmem:[%s1473_s1 + $0x10] sm:$0xff]  ;;  %vm220_vm2 = vsmask.f32 256  ;;  %s1171_s30 = sshll.u32 %s1481_s13, 3  ;;  %vm200_vm4 = vcmask 1041409  }
   0xd   : > { %v1183_v2 = vld [vmem:[%s1473_s1 + $0x58] sm:$0xff]  ;;  %342 = vmatpush.bf16.msra.mxu1 %v1175_v1  ;;  %v1182_v6 = vld [vmem:[%s1473_s1 + $0x50] sm:$0xff]  ;;  %vm221_vm5 = vsmask.f32 1284  ;;  %v1177_v8 = vld [vmem:[%s1473_s1 + $0x28] sm:$0xff]  ;;  %s1286_s8 = scalar_lea.vmem %s1472_s0, %s1171_s30  ;;  %vm202_vm6 = vcmask 1043459  }
   0xe   : > { %v1187_v5 = vld [vmem:[%s1473_s1 + $0x78] sm:$0xff]  ;;  %404 = vmatpush.bf16.msra.mxu2 %v1183_v2  ;;  %v1186_v7 = vld [vmem:[%s1473_s1 + $0x70] sm:$0xff]  ;;  %vm1288_vm7 = vmor %vm220_vm2, %vm221_vm5  ;;  %vm223_vm8 = vsmask.f32 2312  ;;  %vm225_vm9 = vsmask.f32 3340 }
   0xf   : > { %462 = vmatpush.bf16.msra.mxu3 %v1187_v5  ;;  %v1173_v10 = vld [vmem:[%s1473_s1 + $0x8] sm:$0xff]  ;;  %v180_v11 = vld [vmem:[%s1286_s8] sm:$0x3]  ;;  %vm204_vm10 = vcmask 1042433   ;;  %vm227_vm11 = vsmask.f32 4368  ;;  %vm224_vm12 = vmor %vm1288_vm7, %vm223_vm8 }
  0x10   : > { %298 = vmatpush.bf16.msra.mxu0 %v1178_v3  ;;  %v1181_v12 = vld [vmem:[%s1473_s1 + $0x48] sm:$0xff]  ;;  %v181_v13 = vld [vmem:[%s1286_s8 + $0x2] sm:$0x3]  ;;  %v184_v14 = vrot.slane %v180_v11, 1  ;;  %v185_v15 = vrot.slane %v180_v11, 2  ;;  %v186_v16 = vrot.slane %v180_v11, 3  ;;  %vm226_vm13 = vmor %vm224_vm12, %vm225_vm9 }
  0x11   : > { %343 = vmatpush.bf16.msra.mxu1 %v1174_v4  ;;  %v1176_v17 = vld [vmem:[%s1473_s1 + $0x20] sm:$0xff]  ;;  %v187_v18 = vrot.slane %v181_v13, 1  ;;  %v188_v19 = vrot.slane %v181_v13, 2  ;;  %v189_v20 = vrot.slane %v181_v13, 3  ;;  %vm229_vm14 = vsmask.f32 5396  ;;  %vm228_vm15 = vmor %vm226_vm13, %vm227_vm11 }
  0x12   : > { %405 = vmatpush.bf16.msra.mxu2 %v1182_v6  ;;  %v1185_v21 = vld [vmem:[%s1473_s1 + $0x68] sm:$0xff]  ;;  %v1172_v22 = vld [vmem:[%s1473_s1] sm:$0xff]  ;;  %v193_v24 = vsel %vm190_vm0, %v180_v11, %v184_v14  ;;  %v197_v25 = vsel %vm194_vm1, %v185_v15, %v186_v16  ;;  %v201_v26 = vsel %vm200_vm4, %v180_v11, %v184_v14  ;;  %v203_v27 = vsel %vm202_vm6, %v185_v15, %v186_v16  ;;  %vm230_vm2 = vmor %vm228_vm15, %vm229_vm14 }
  0x13   : > { %463 = vmatpush.bf16.msra.mxu3 %v1186_v7  ;;  %v1180_v23 = vld [vmem:[%s1473_s1 + $0x40] sm:$0xff]  ;;  %v199_v28 = vsel %vm198_vm3, %v193_v24, %v197_v25  ;;  %v205_v29 = vsel %vm204_vm10, %v201_v26, %v203_v27  ;;  %v210_v30 = vsel %vm190_vm0, %v181_v13, %v187_v18  ;;  %vm231_vm5 = vsmask.f32 6424  ;;  %v1191_v32 = vld [vmem:[%s1473_s1 + $0x98] sm:$0xff]  ;;  %v1194_v14 = vld [vmem:[%s1473_s1 + $0xb0] sm:$0xff] }
  0x14   : > { %299 = vmatpush.bf16.msra.mxu0 %v1177_v8  ;;  %v1113_v31 = vld [vmem:[%s1286_s8 + $0x4] sm:$0x3]  ;;  %v207_v33 = vrot.slane %v205_v29, 1  ;;  %v213_v34 = vsel %vm194_vm1, %v188_v19, %v189_v20  ;;  %v215_v35 = vsel %vm200_vm4, %v181_v13, %v187_v18  ;;  %v216_v36 = vsel %vm202_vm6, %v188_v19, %v189_v20  ;;  %vm232_vm7 = vmor %vm230_vm2, %vm231_vm5  ;;  %v1114_v37 = vld [vmem:[%s1286_s8 + $0x6] sm:$0x3] }
  0x15   : > { %344 = vmatpush.bf16.msra.mxu1 %v1173_v10  ;;  %v214_v38 = vsel %vm198_vm3, %v210_v30, %v213_v34  ;;  %v217_v39 = vsel %vm204_vm10, %v215_v35, %v216_v36  ;;  %vm233_vm8 = vsmask.f32 7452  ;;  %v235_v40 = vshrl.u32 %v199_v28, 16  ;;  %v1195_v7 = vld [vmem:[%s1473_s1 + $0xb8] sm:$0xff]  ;;  %v1184_v9 = vld [vmem:[%s1473_s1 + $0x60] sm:$0xff]  ;;  %v1198_v15 = vld [vmem:[%s1473_s1 + $0xd0] sm:$0xff] }
  0x16   : > { %406 = vmatpush.bf16.msra.mxu2 %v1181_v12  ;;  %v219_v41 = vrot.slane %v217_v39, 1  ;;  %vm1333_vm9 = vmor %vm232_vm7, %vm233_vm8  ;;  %v240_v43 = vshll.u32 %v207_v33, 16  ;;  %v243_v44 = vshrl.u32 %v214_v38, 16  ;;  %v702_v45 = vrot.slane %v1113_v31, 1  ;;  %v1199_v8 = vld [vmem:[%s1473_s1 + $0xd8] sm:$0xff]  ;;  %v1190_v12 = vld [vmem:[%s1473_s1 + $0x90] sm:$0xff] }
  0x17   : > { %464 = vmatpush.bf16.msra.mxu3 %v1185_v21  ;;  %v703_v46 = vrot.slane %v1113_v31, 2  ;;  %v704_v47 = vrot.slane %v1113_v31, 3  ;;  %v705_v48 = vrot.slane %v1114_v37, 1  ;;  %v706_v49 = vrot.slane %v1114_v37, 2  ;;  %v170_v13 = vld [vmem:[%s1286_s8] sm:$0x1] }
  0x18   : > { %300 = vmatpush.bf16.msra.mxu0 %v1176_v17  ;;  %v242_v50 = vsel %vm1333_vm9, %v235_v40, %v240_v43  ;;  %v248_v51 = vshll.u32 %v219_v41, 16  ;;  %v707_v52 = vrot.slane %v1114_v37, 3  ;;  %v710_v53 = vsel %vm190_vm0, %v1113_v31, %v702_v45  ;;  %v171_v16 = vld [vmem:[%s1286_s8 + $0x2] sm:$0x1]  ;;  %v352_v19 = vld [vmem:[%s1286_s8 + $0x2] sm:$0x2] }
  0x19   : > { %345 = vmatpush.bf16.msra.mxu1 %v1172_v22  ;;  %261 = vst [vmem:[#allocation1] ss:$9 sm:$0xff] %v242_v50  ;;  %v713_v54 = vsel %vm194_vm1, %v703_v46, %v704_v47  ;;  %v715_v55 = vsel %vm200_vm4, %v1113_v31, %v702_v45  ;;  %v716_v56 = vsel %vm202_vm6, %v703_v46, %v704_v47  ;;  %vm290_vm11 = vcmask 523264   ;;  %v351_v20 = vld [vmem:[%s1286_s8] sm:$0x2]  ;;  %v1189_v24 = vld [vmem:[%s1473_s1 + $0x88] sm:$0xff] }
  0x1a   : > { %407 = vmatpush.bf16.msra.mxu2 %v1180_v23  ;;  %v722_v57 = vsel %vm190_vm0, %v1114_v37, %v705_v48  ;;  %v250_v58 = vsel %vm1333_vm9, %v243_v44, %v248_v51  ;;  %v714_v59 = vsel %vm198_vm3, %v710_v53, %v713_v54  ;;  %v717_v60 = vsel %vm204_vm10, %v715_v55, %v716_v56  ;;  %v1030_v22 = vld [vmem:[%s1286_s8 + $0x2] sm:$0x3]  ;;  %v1031_v23 = vld [vmem:[%s1286_s8 + $0x4] sm:$0x3]  ;;  %v1193_v25 = vld [vmem:[%s1473_s1 + $0xa8] sm:$0xff] }
  0x1b   : > { %v725_v61 = vsel %vm194_vm1, %v706_v49, %v707_v52  ;;  %264 = vst [vmem:[#allocation1 + $0x1] ss:$9 sm:$0xff] %v250_v58  ;;  %v719_v62 = vrot.slane %v717_v60, 1  ;;  %v727_v0 = vsel %vm200_vm4, %v1114_v37, %v705_v48  ;;  %v728_v1 = vsel %vm202_vm6, %v706_v49, %v707_v52  ;;  %465 = vmatpush.bf16.msra.mxu3 %v1184_v9  ;;  %v1197_v26 = vld [vmem:[%s1473_s1 + $0xc8] sm:$0xff]  ;;  %v1203_v28 = vld [vmem:[%s1473_s1 + $0xf8] sm:$0xff]  ;;  %v1192_v33 = vld [vmem:[%s1473_s1 + $0xa0] sm:$0xff] }
  0x1c   : > { %567 = vmatpush.bf16.msrb.mxu0 %v1191_v32  ;;  %v726_v63 = vsel %vm198_vm3, %v722_v57, %v725_v61  ;;  %v729_v2 = vsel %vm204_vm10, %v727_v0, %v728_v1  ;;  %v732_v3 = vshrl.u32 %v714_v59, 16  ;;  %v476_v27 = vrot.slane %v1030_v22, 1  ;;  %v1188_v32 = vld [vmem:[%s1473_s1 + $0x80] sm:$0xff]  ;;  %v1202_v38 = vld [vmem:[%s1473_s1 + $0xf0] sm:$0xff]  ;;  %v1205_v9 = vld [vmem:[%s1473_s1 + $0x108] sm:$0xff] }
  0x1d   : > { %v731_v4 = vrot.slane %v729_v2, 1  ;;  %v737_v5 = vshll.u32 %v719_v62, 16  ;;  %v740_v6 = vshrl.u32 %v726_v63, 16  ;;  %630 = vmatpush.bf16.msrb.mxu1 %v1195_v7  ;;  %v477_v30 = vrot.slane %v1030_v22, 2  ;;  %v1196_v37 = vld [vmem:[%s1473_s1 + $0xc0] sm:$0xff]  ;;  %v1201_v2 = vld [vmem:[%s1473_s1 + $0xe8] sm:$0xff] }
  0x1e   : > { %688 = vmatpush.bf16.msrb.mxu2 %v1199_v8  ;;  %v478_v31 = vrot.slane %v1030_v22, 3  ;;  %v479_v34 = vrot.slane %v1031_v23, 1  ;;  %v480_v35 = vrot.slane %v1031_v23, 2  ;;  %v481_v36 = vrot.slane %v1031_v23, 3  ;;  %v1003_v49 = vld [vmem:[%s1286_s8 + $0x2] sm:$0x1] }
  0x1f   : > { %v1364_v10 = vsel %vm1333_vm9, %v732_v3, %v737_v5  ;;  %v745_v11 = vshll.u32 %v731_v4, 16  ;;  %793 = vmatpush.bf16.msrb.mxu3 %v1203_v28  ;;  %v489_v40 = vsel %vm200_vm4, %v1030_v22, %v476_v27  ;;  %v484_v46 = vsel %vm190_vm0, %v1030_v22, %v476_v27  ;;  %v1004_v52 = vld [vmem:[%s1286_s8 + $0x4] sm:$0x1]  ;;  %v1060_v1 = vld [vmem:[%s1286_s8 + $0x4] sm:$0x2]  ;;  %v1207_v5 = vld [vmem:[%s1473_s1 + $0x118] sm:$0xff] }
  0x20   : > { %568 = vmatpush.bf16.msrb.mxu0 %v1190_v12  ;;  %v490_v41 = vsel %vm202_vm6, %v477_v30, %v478_v31  ;;  %v501_v43 = vsel %vm200_vm4, %v1031_v23, %v479_v34  ;;  %v502_v44 = vsel %vm202_vm6, %v480_v35, %v481_v36  ;;  %v487_v47 = vsel %vm194_vm1, %v477_v30, %v478_v31  ;;  %v1059_v3 = vld [vmem:[%s1286_s8 + $0x2] sm:$0x2]  ;;  %v1206_v8 = vld [vmem:[%s1473_s1 + $0x110] sm:$0xff]  ;;  %v1086_v12 = vld [vmem:[%s1286_s8 + $0x4] sm:$0x1] }
  0x21   : > { %v1379_v17 = vsel %vm1333_vm9, %v740_v6, %v745_v11  ;;  %631 = vmatpush.bf16.msrb.mxu1 %v1194_v14  ;;  %v491_v45 = vsel %vm204_vm10, %v489_v40, %v490_v41  ;;  %v503_v48 = vsel %vm204_vm10, %v501_v43, %v502_v44  ;;  %v496_v50 = vsel %vm190_vm0, %v1031_v23, %v479_v34  ;;  %v1200_v4 = vld [vmem:[%s1473_s1 + $0xe0] sm:$0xff] }
  0x22   : > { %v265_v18 = vld [vmem:[#allocation1] sm:$0xff]  ;;  %689 = vmatpush.bf16.msrb.mxu2 %v1198_v15  ;;  %v499_v51 = vsel %vm194_vm1, %v480_v35, %v481_v36  ;;  %v493_v53 = vrot.slane %v491_v45, 1  ;;  %v488_v55 = vsel %vm198_vm3, %v484_v46, %v487_v47  ;;  %v505_v56 = vrot.slane %v503_v48, 1 }
  0x23   : > { %960 = vmatmul.msk.bf16.vlgmr.msra.gmra.mxu0 %vm290_vm11, %v265_v18  ;;  %307 = vst [vmem:[#allocation1] ss:$9 sm:$0xff] %v170_v13  ;;  %794 = vmatpush.bf16.msrb.mxu3 %v1202_v38  ;;  %v500_v57 = vsel %vm198_vm3, %v496_v50, %v499_v51  ;;  %v506_v58 = vshrl.u32 %v488_v55, 16  ;;  %v1204_v11 = vld [vmem:[%s1473_s1 + $0x100] sm:$0xff]  ;;  %vm871_vm0 = vcmask 289792  }
  0x24   : > { %310 = vst [vmem:[#allocation1 + $0x1] ss:$9 sm:$0xff] %v171_v16  ;;  %569 = vmatpush.bf16.msrb.mxu0 %v1189_v24  ;;  %v511_v59 = vshll.u32 %v493_v53, 16  ;;  %v514_v60 = vshrl.u32 %v500_v57, 16  ;;  %v519_v61 = vshll.u32 %v505_v56, 16 }
  0x25   : > { %358 = vst [vmem:[#allocation1 + $0x10] sm:$0xff] %v352_v19  ;;  %632 = vmatpush.bf16.msrb.mxu1 %v1193_v25  ;;  %v1087_v13 = vld [vmem:[%s1286_s8 + $0x6] sm:$0x1]  ;;  %v1143_v16 = vld [vmem:[%s1286_s8 + $0x6] sm:$0x2] }
  0x26   : > { %690 = vmatpush.bf16.msrb.mxu2 %v1197_v26  ;;  %v513_v62 = vsel %vm1333_vm9, %v506_v58, %v511_v59  ;;  %v521_v63 = vsel %vm1333_vm9, %v514_v60, %v519_v61  ;;  %v1142_v18 = vld [vmem:[%s1286_s8 + $0x4] sm:$0x2]  ;;  %s933_s8 = sshll.u32 %s1481_s13, 2  ;;  %v1216_v45 = vld [vmem:[%s1474_s2] ss:$0 sm:$0xff] }
  0x27   : > { %795 = vmatpush.bf16.msrb.mxu3 %v1201_v2  ;;  %s168_s21 = scalar_lea.vmem %s1475_s3, %s933_s8 }
  0x28   : > { %570 = vmatpush.bf16.msrb.mxu0 %v1188_v32 }
  0x29   : > { %633 = vmatpush.bf16.msrb.mxu1 %v1192_v33 }
  0x2a   : > { %691 = vmatpush.bf16.msrb.mxu2 %v1196_v37 }
  0x2b   : > { %v311_v21 = vld [vmem:[#allocation1] sm:$0xff]  ;;  %796 = vmatpush.bf16.msrb.mxu3 %v1200_v4 }
  0x2c   : > { %977 = vmatmul.msk.bf16.vlgmr.msra.gmra.mxu1 %vm290_vm11, %v311_v21  ;;  %354 = vst [vmem:[#allocation1] sm:$0xff] %v351_v20  ;;  %v360_v29 = vld [vmem:[#allocation1 + $0x11] ss:$2 sm:$0xff]  ;;  %856 = vmatpush.bf16.msra.mxu0 %v1207_v5 }
  0x30   : > { %857 = vmatpush.bf16.msra.mxu0 %v1206_v8 }
  0x33   : > { %v356_v39 = vld [vmem:[#allocation1 + $0x1] ss:$2 sm:$0xff] }
  0x34   : > { %370 = vst [vmem:[#allocation1] ss:$9 sm:$0xff] %v356_v39  ;;  %858 = vmatpush.bf16.msra.mxu0 %v1205_v9 }
  0x35   : > { %372 = vst [vmem:[#allocation1 + $0x1] ss:$9 sm:$0xff] %v360_v29 }
  0x38   : > { %859 = vmatpush.bf16.msra.mxu0 %v1204_v11 }
  0x3c   : > { %v373_v54 = vld [vmem:[#allocation1] sm:$0xff] }
  0x3d   : > { %1002 = vmatmul.msk.bf16.vlgmr.msra.gmra.mxu2 %vm290_vm11, %v373_v54  ;;  %427 = vst [vmem:[#allocation1] ss:$9 sm:$0xff] %v1003_v49 }
  0x3e   : > { %430 = vst [vmem:[#allocation1 + $0x1] ss:$9 sm:$0xff] %v1004_v52 }
  0x45   : > { %v431_v0 = vld [vmem:[#allocation1] sm:$0xff] }
  0x46   : > { %1029 = vmatmul.msk.bf16.vlgmr.msra.gmra.mxu3 %vm290_vm11, %v431_v0  ;;  %532 = vst [vmem:[#allocation1] ss:$9 sm:$0xff] %v513_v62 }
  0x47   : > { %535 = vst [vmem:[#allocation1 + $0x1] ss:$9 sm:$0xff] %v521_v63 }
  0x48   : > { %584 = vst [vmem:[#allocation1 + $0x10] sm:$0xff] %v1060_v1 }
  0x4e   : > { %v536_v42 = vld [vmem:[#allocation1] sm:$0xff] }
  0x4f   : > { %1058 = vmatmul.msk.bf16.vlgmr.msrb.gmra.mxu0 %vm290_vm11, %v536_v42  ;;  %580 = vst [vmem:[#allocation1] sm:$0xff] %v1059_v3  ;;  %v586_v6 = vld [vmem:[#allocation1 + $0x11] ss:$2 sm:$0xff] }
  0x56   : > { %v582_v7 = vld [vmem:[#allocation1 + $0x1] ss:$2 sm:$0xff] }
  0x57   : > { %596 = vst [vmem:[#allocation1] ss:$9 sm:$0xff] %v582_v7 }
  0x58   : > { %598 = vst [vmem:[#allocation1 + $0x1] ss:$9 sm:$0xff] %v586_v6 }
  0x5f   : > { %v599_v14 = vld [vmem:[#allocation1] sm:$0xff] }
  0x60   : > { %1085 = vmatmul.msk.bf16.vlgmr.msrb.gmra.mxu1 %vm290_vm11, %v599_v14  ;;  %653 = vst [vmem:[#allocation1] ss:$9 sm:$0xff] %v1086_v12 }
  0x61   : > { %656 = vst [vmem:[#allocation1 + $0x1] ss:$9 sm:$0xff] %v1087_v13 }
  0x68   : > { %v657_v15 = vld [vmem:[#allocation1] sm:$0xff] }
  0x69   : > { %1112 = vmatmul.msk.bf16.vlgmr.msrb.gmra.mxu2 %vm290_vm11, %v657_v15  ;;  %758 = vst [vmem:[#allocation1] ss:$9 sm:$0xff] %v1364_v10 }
  0x6a   : > { %761 = vst [vmem:[#allocation1 + $0x1] ss:$9 sm:$0xff] %v1379_v17 }
  0x6b   : > { %810 = vst [vmem:[#allocation1 + $0x10] sm:$0xff] %v1143_v16 }
  0x71   : > { %v762_v19 = vld [vmem:[#allocation1] sm:$0xff] }
  0x72   : > { %1141 = vmatmul.msk.bf16.vlgmr.msrb.gmra.mxu3 %vm290_vm11, %v762_v19  ;;  %806 = vst [vmem:[#allocation1] sm:$0xff] %v1142_v18  ;;  %v812_v20 = vld [vmem:[#allocation1 + $0x11] ss:$2 sm:$0xff] }
  0x79   : > { %v808_v21 = vld [vmem:[#allocation1 + $0x1] ss:$2 sm:$0xff] }
  0x7a   : > { %822 = vst [vmem:[#allocation1] ss:$9 sm:$0xff] %v808_v21 }
  0x7b   : > { %824 = vst [vmem:[#allocation1 + $0x1] ss:$9 sm:$0xff] %v812_v20 }
  0x82   : > { %v825_v22 = vld [vmem:[#allocation1] sm:$0xff] }
  0x83   : > { %1168 = vmatmul.msk.bf16.vlgmr.msra.gmra.mxu0 %vm290_vm11, %v825_v22 }
  0xa0   : > { %v302_v23 = vpop.f32.mrf.mxu0 }
  0xa8   : > { %v304_v24 = vpop.f32.mrf.mxu0 }
  0xa9   : > { %v347_v25 = vpop.f32.mrf.mxu1 }
  0xaa   : > { %v348_v26 = vadd.f32 %v347_v25, %v302_v23 }
  0xb1   : > { %v349_v10 = vpop.f32.mrf.mxu1 }
  0xc0   : > { %v409_v27 = vpop.f32.mrf.mxu2 }
  0xc1   : > { %v413_v35 = vadd.f32 %v409_v27, %v348_v26 }
  0xc8   : > { %v411_v17 = vpop.f32.mrf.mxu2 }
  0xc9   : > { %v467_v28 = vpop.f32.mrf.mxu3 }
  0xca   : > { %v471_v36 = vadd.f32 %v467_v28, %v413_v35 }
  0xcc   : > { %v572_v29 = vpop.f32.mrf.mxu0 }
  0xcd   : > { %v576_v39 = vadd.f32 %v572_v29, %v471_v36 }
  0xd1   : > { %v469_v30 = vpop.f32.mrf.mxu3 }
  0xd4   : > { %v574_v31 = vpop.f32.mrf.mxu0 }
  0xdd   : > { %v635_v32 = vpop.f32.mrf.mxu1 }
  0xde   : > { %v639_v40 = vadd.f32 %v635_v32, %v576_v39 }
  0xe5   : > { %v637_v33 = vpop.f32.mrf.mxu1 }
  0xec   : > { %v693_v34 = vpop.f32.mrf.mxu2 }
  0xed   : > { %v697_v41 = vadd.f32 %v693_v34, %v639_v40 }
  0xf4   : > { %v695_v37 = vpop.f32.mrf.mxu2 }
  0xf5   : > { %v798_v38 = vpop.f32.mrf.mxu3 }
  0xf6   : > { %v802_v44 = vadd.f32 %v798_v38, %v697_v41 }
  0xfd   : > { %v800_v43 = vpop.f32.mrf.mxu3 }
 0x100   : > { %v861_v46 = vpop.f32.mrf.mxu0 }
 0x101   : > { %v865_v47 = vadd.f32 %v861_v46, %v802_v44 }
 0x103   : > { %v870_v48 = vadd.f32 %v1216_v45, %v865_v47 }
 0x105   : > { %872 = vst.msk [vmem:[%s168_s21] sm:$0xf] %vm871_vm0, %v870_v48 }
 0x108   : > { %v863_v49 = vpop.f32.mrf.mxu0 }
 0x109 PF: > { %s13_s12 = sadd.s32 1, %s1223_s12  }
 0x10a   : > { %p10_p4 = scmp.ge.s32.totalorder %s13_s12, 4  }
 0x10c   :  { %12 = sbr.rel (!%p10_p4) target bundleno = 1 (0x1), region = 87 }

// kernel: ssd_forward.9
= control target key start
LH: loop header
LB: loop body
LE: loop exit
PB: predicated region body
PF: predicated region fallthrough
CT: control target
= control target key end

     0   :  { %s1345_s12 = smov 0   ;;  %s1576_s0 = inlined_call_operand.vmem [shape: bf16[2,6,6,32], index: 0, kind: input, shape index: {}]   ;;  %s1577_s1 = inlined_call_operand.vmem [shape: bf16[9,32,36], index: 1, kind: input, shape index: {}]   ;;  %s1578_s2 = inlined_call_operand.vmem [shape: f32[1,36], index: 2, kind: input, shape index: {}]   ;;  %s1579_s3 = inlined_call_operand.vmem [shape: f32[2,16,36], index: 3, kind: output, shape index: {}]  }
   0x1 LB: > { %s1117_s13 = sadd.s32 4294967295, %s1323_s12   ;;  %p1121_p0 = scmp.ge.s32.totalorder %s1323_s12, 1  ;;  %s1323_s12 = sphi %s1345_s12, %s13_s12  }
   0x2   : > { %p137_p1 = scmp.lt.s32.totalorder %s1323_s12, 3 }
   0x4   : > { %p138_p2 = pnand %p1121_p0, %p137_p1 }
   0x5   : > { %p161_p3 = scmp.lt.s32.totalorder (!%p138_p2), %s1117_s13, 1 }
   0x6   : > { %141 = sbr.rel (%p138_p2) target bundleno = 269 (0x10d), region = 32 }
   0xb   : > { %v1292_v0 = vld [vmem:[%s1577_s1 + $0x18] sm:$0xff]  ;;  %v1294_v1 = vld [vmem:[%s1577_s1 + $0x28] sm:$0xff]  ;;  %v1291_v2 = vld [vmem:[%s1577_s1 + $0x10] sm:$0xff]  ;;  %s1585_s13 = smov (!%p161_p3, %s1117_s13), 1  ;;  %vm192_vm0 = vcmask 1041408   ;;  %vm196_vm1 = vcmask 1043458  }
   0xc   : > { %315 = vmatpush.bf16.msra.mxu0 %v1292_v0  ;;  %463 = vmatpush.bf16.msra.mxu2 %v1294_v1  ;;  %v1290_v3 = vld [vmem:[%s1577_s1 + $0x8] sm:$0xff]  ;;  %v1293_v4 = vld [vmem:[%s1577_s1 + $0x20] sm:$0xff]  ;;  %v1296_v5 = vld [vmem:[%s1577_s1 + $0x38] sm:$0xff]  ;;  %s1307_s26 = smul.u32 24, %s1585_s13  ;;  %vm218_vm2 = vsmask.f32 1280 }
   0xd   : > { %355 = vmatpush.bf16.msra.mxu1 %v1290_v3  ;;  %515 = vmatpush.bf16.msra.mxu3 %v1296_v5  ;;  %vm219_vm3 = vsmask.f32 3336  ;;  %vm221_vm4 = vsmask.f32 5392  ;;  %vm223_vm7 = vsmask.f32 7448 }
   0xe   : > { %s1377_s29 = scalar_lea.vmem %s1576_s0, %s1307_s26  ;;  %vm220_vm5 = vmor %vm218_vm2, %vm219_vm3  ;;  %v1289_v62 = vld [vmem:[%s1577_s1] sm:$0xff]  ;;  %v1295_v63 = vld [vmem:[%s1577_s1 + $0x30] sm:$0xff]  ;;  %vm403_vm9 = vcmask 1040384   ;;  %vm404_vm10 = vcmask 1042434   ;;  %vm306_vm11 = vcmask 261120   ;;  %vm406_vm13 = vcmask 1044484  }
   0xf   : > { %v180_v6 = vld [vmem:[%s1377_s29] sm:$0x7]  ;;  %v181_v7 = vld [vmem:[%s1377_s29 + $0x4] sm:$0x7]  ;;  %v182_v8 = vld [vmem:[%s1377_s29 + $0x8] sm:$0x7] }
  0x10   : > { %316 = vmatpush.bf16.msra.mxu0 %v1291_v2  ;;  %464 = vmatpush.bf16.msra.mxu2 %v1293_v4  ;;  %v183_v9 = vld [vmem:[%s1377_s29 + $0xc] sm:$0x7]  ;;  %v188_v10 = vrot.slane %v180_v6, 2  ;;  %v189_v11 = vrot.slane %v181_v7, 2  ;;  %v190_v12 = vrot.slane %v182_v8, 2  ;;  %vm222_vm6 = vmor %vm220_vm5, %vm221_vm4  ;;  %vm408_vm15 = vcmask 1046534  }
  0x11   : > { %v191_v13 = vrot.slane %v183_v9, 2  ;;  %vm1393_vm8 = vmor %vm222_vm6, %vm223_vm7  ;;  %356 = vmatpush.bf16.msra.mxu1 %v1289_v62  ;;  %516 = vmatpush.bf16.msra.mxu3 %v1295_v63  ;;  %v363_v1 = vld [vmem:[%s1377_s29] sm:$0x6]  ;;  %v364_v2 = vld [vmem:[%s1377_s29 + $0x4] sm:$0x6] }
  0x12   : > { %v195_v14 = vsel %vm192_vm0, %v180_v6, %v188_v10  ;;  %v197_v15 = vsel %vm196_vm1, %v180_v6, %v188_v10  ;;  %v202_v16 = vsel %vm192_vm0, %v181_v7, %v189_v11  ;;  %v203_v17 = vsel %vm196_vm1, %v181_v7, %v189_v11  ;;  %v365_v3 = vld [vmem:[%s1377_s29 + $0x8] sm:$0x6]  ;;  %v172_v4 = vld [vmem:[%s1377_s29] sm:$0x3]  ;;  %v366_v5 = vld [vmem:[%s1377_s29 + $0xc] sm:$0x6] }
  0x13   : > { %v199_v18 = vrot.slane %v197_v15, 2  ;;  %v205_v19 = vrot.slane %v203_v17, 2  ;;  %v208_v20 = vsel %vm192_vm0, %v182_v8, %v190_v12  ;;  %v209_v21 = vsel %vm196_vm1, %v182_v8, %v190_v12  ;;  %v173_v7 = vld [vmem:[%s1377_s29 + $0x4] sm:$0x3]  ;;  %v174_v8 = vld [vmem:[%s1377_s29 + $0x8] sm:$0x3]  ;;  %vm405_vm12 = vmor %vm403_vm9, %vm404_vm10 }
  0x14   : > { %v211_v22 = vrot.slane %v209_v21, 2  ;;  %v214_v23 = vsel %vm192_vm0, %v183_v9, %v191_v13  ;;  %v215_v24 = vsel %vm196_vm1, %v183_v9, %v191_v13  ;;  %v225_v25 = vshrl.u32 %v195_v14, 16  ;;  %v175_v12 = vld [vmem:[%s1377_s29 + $0xc] sm:$0x3]  ;;  %vm407_vm14 = vmor %vm405_vm12, %vm406_vm13 }
  0x15   : > { %v217_v26 = vrot.slane %v215_v24, 2  ;;  %v228_v27 = vshll.u32 %v195_v14, 16  ;;  %v234_v28 = vshll.u32 %v199_v18, 16  ;;  %v238_v29 = vshrl.u32 %v202_v16, 16  ;;  %v1298_v14 = vld [vmem:[%s1577_s1 + $0x48] sm:$0xff]  ;;  %vm1435_vm2 = vmor %vm407_vm14, %vm408_vm15 }
  0x16   : > { %v227_v30 = vrot.slane %v225_v25, 6  ;;  %v241_v31 = vshll.u32 %v202_v16, 16  ;;  %v247_v32 = vshll.u32 %v205_v19, 16  ;;  %v251_v33 = vshrl.u32 %v208_v20, 16  ;;  %650 = vmatpush.bf16.msrb.mxu0 %v1298_v14  ;;  %v1297_v19 = vld [vmem:[%s1577_s1 + $0x40] sm:$0xff] }
  0x17   : > { %v230_v34 = vrot.slane %v228_v27, 7  ;;  %v240_v35 = vrot.slane %v238_v29, 6  ;;  %v254_v36 = vshll.u32 %v208_v20, 16  ;;  %v236_v37 = vrot.slane %v234_v28, 7 }
  0x18   : > { %v243_v38 = vrot.slane %v241_v31, 7  ;;  %v253_v39 = vrot.slane %v251_v33, 6  ;;  %v260_v40 = vshll.u32 %v211_v22, 16  ;;  %v264_v43 = vshrl.u32 %v214_v23, 16  ;;  %v1187_v33 = vld [vmem:[%s1377_s29 + $0xc] sm:$0x7] }
  0x19   : > { %v231_v41 = vor.u32 %v230_v34, %v227_v30  ;;  %v256_v42 = vrot.slane %v254_v36, 7  ;;  %v267_v44 = vshll.u32 %v214_v23, 16  ;;  %v249_v47 = vrot.slane %v247_v32, 7  ;;  %v1186_v30 = vld [vmem:[%s1377_s29 + $0x8] sm:$0x7] }
  0x1a   : > { %v244_v46 = vor.u32 %v243_v38, %v240_v35  ;;  %v262_v48 = vrot.slane %v260_v40, 7  ;;  %v273_v49 = vshll.u32 %v217_v26, 16  ;;  %v266_v52 = vrot.slane %v264_v43, 6  ;;  %v1185_v26 = vld [vmem:[%s1377_s29 + $0x4] sm:$0x7]  ;;  %651 = vmatpush.bf16.msrb.mxu0 %v1297_v19 }
  0x1b   : > { %v232_v50 = vrot.slane %v231_v41, 2  ;;  %v257_v51 = vor.u32 %v256_v42, %v253_v39  ;;  %v269_v53 = vrot.slane %v267_v44, 7  ;;  %v371_v6 = vrot.slane %v363_v1, 2  ;;  %v1188_v36 = vld [vmem:[%s1377_s29 + $0x10] sm:$0x7] }
  0x1c   : > { %v245_v54 = vrot.slane %v244_v46, 2  ;;  %v275_v58 = vrot.slane %v273_v49, 7  ;;  %v372_v9 = vrot.slane %v364_v2, 2  ;;  %v373_v11 = vrot.slane %v365_v3, 2 }
  0x1d   : > { %v237_v55 = vsel %vm1393_vm8, %v232_v50, %v236_v37  ;;  %v258_v56 = vrot.slane %v257_v51, 2  ;;  %v270_v57 = vor.u32 %v269_v53, %v266_v52  ;;  %v374_v13 = vrot.slane %v366_v5, 2  ;;  %v1302_v50 = vld [vmem:[%s1577_s1 + $0x68] sm:$0xff]  ;;  %v1299_v52 = vld [vmem:[%s1577_s1 + $0x50] sm:$0xff] }
  0x1e   : > { %v250_v59 = vsel %vm1393_vm8, %v245_v54, %v249_v47  ;;  %283 = vst [vmem:[#allocation1] ss:$4 sm:$0xff] %v237_v55  ;;  %v377_v15 = vsel %vm192_vm0, %v363_v1, %v371_v6  ;;  %v379_v16 = vsel %vm196_vm1, %v363_v1, %v371_v6  ;;  %v384_v17 = vsel %vm192_vm0, %v364_v2, %v372_v9  ;;  %v1168_v1 = vld [vmem:[%s1377_s29 + $0x4] sm:$0x3]  ;;  %v1169_v6 = vld [vmem:[%s1377_s29 + $0x8] sm:$0x3] }
  0x1f   : > { %v263_v60 = vsel %vm1393_vm8, %v258_v56, %v262_v48  ;;  %v271_v61 = vrot.slane %v270_v57, 2  ;;  %286 = vst [vmem:[#allocation1 + $0x1] ss:$4 sm:$0xff] %v250_v59  ;;  %v386_v18 = vsel %vm196_vm1, %v364_v2, %v372_v9  ;;  %v391_v20 = vsel %vm192_vm0, %v365_v3, %v373_v11  ;;  %v1300_v48 = vld [vmem:[%s1577_s1 + $0x58] sm:$0xff]  ;;  %805 = vmatpush.bf16.msrb.mxu2 %v1302_v50 }
  0x20   : > { %289 = vst [vmem:[#allocation1 + $0x2] ss:$4 sm:$0xff] %v263_v60  ;;  %v393_v21 = vsel %vm196_vm1, %v365_v3, %v373_v11  ;;  %v398_v22 = vsel %vm192_vm0, %v366_v5, %v374_v13  ;;  %v400_v23 = vsel %vm196_vm1, %v366_v5, %v374_v13  ;;  %v1147_v24 = vrot.slane %v377_v15, 9  ;;  %753 = vmatpush.bf16.msrb.mxu1 %v1300_v48 }
  0x21   : > { %v276_v0 = vsel %vm1393_vm8, %v271_v61, %v275_v58  ;;  %v1148_v25 = vrot.slane %v379_v16, 9  ;;  %v1149_v28 = vrot.slane %v384_v17, 9  ;;  %v1150_v29 = vrot.slane %v386_v18, 9  ;;  %v1171_v18 = vld [vmem:[%s1377_s29 + $0x10] sm:$0x3] }
  0x22   : > { %292 = vst [vmem:[#allocation1 + $0x3] ss:$4 sm:$0xff] %v276_v0  ;;  %v1151_v31 = vrot.slane %v391_v20, 9  ;;  %v1152_v32 = vrot.slane %v393_v21, 9  ;;  %v1153_v34 = vrot.slane %v398_v22, 9  ;;  %v1154_v35 = vrot.slane %v400_v23, 9 }
  0x23   : > { %v533_v37 = vrot.slane %v1185_v26, 2  ;;  %v413_v38 = vsel %vm1435_vm2, %v1147_v24, %v1148_v25  ;;  %v534_v39 = vrot.slane %v1186_v30, 2  ;;  %v417_v40 = vsel %vm1435_vm2, %v1149_v28, %v1150_v29  ;;  %v1304_v23 = vld [vmem:[%s1577_s1 + $0x78] sm:$0xff]  ;;  %v1301_v24 = vld [vmem:[%s1577_s1 + $0x60] sm:$0xff] }
  0x24   : > { %v535_v41 = vrot.slane %v1187_v33, 2  ;;  %v421_v43 = vsel %vm1435_vm2, %v1151_v31, %v1152_v32  ;;  %v536_v44 = vrot.slane %v1188_v36, 2  ;;  %v425_v46 = vsel %vm1435_vm2, %v1153_v34, %v1154_v35  ;;  %754 = vmatpush.bf16.msrb.mxu1 %v1299_v52  ;;  %940 = vmatpush.bf16.msrb.mxu3 %v1304_v23  ;;  %v1202_v34 = vld [vmem:[%s1377_s29 + $0x4] sm:$0x6] }
  0x25   : > { %v539_v47 = vsel %vm192_vm0, %v1185_v26, %v533_v37  ;;  %v545_v49 = vsel %vm192_vm0, %v1186_v30, %v534_v39  ;;  %v540_v56 = vsel %vm196_vm1, %v1185_v26, %v533_v37  ;;  %v546_v59 = vsel %vm196_vm1, %v1186_v30, %v534_v39  ;;  %806 = vmatpush.bf16.msrb.mxu2 %v1301_v24  ;;  %v1203_v37 = vld [vmem:[%s1377_s29 + $0x8] sm:$0x6] }
  0x26   : > { %v551_v51 = vsel %vm192_vm0, %v1187_v33, %v535_v41  ;;  %v557_v53 = vsel %vm192_vm0, %v1188_v36, %v536_v44  ;;  %v561_v54 = vshrl.u32 %v539_v47, 16  ;;  %v564_v55 = vshll.u32 %v539_v47, 16 }
  0x27   : > { %v574_v57 = vshrl.u32 %v545_v49, 16  ;;  %v577_v58 = vshll.u32 %v545_v49, 16  ;;  %v587_v60 = vshrl.u32 %v551_v51, 16  ;;  %v590_v61 = vshll.u32 %v551_v51, 16 }
  0x28   : > { %v552_v62 = vsel %vm196_vm1, %v1187_v33, %v535_v41  ;;  %v600_v63 = vshrl.u32 %v557_v53, 16  ;;  %v603_v0 = vshll.u32 %v557_v53, 16  ;;  %v542_v2 = vrot.slane %v540_v56, 2 }
  0x29   : > { %v293_v10 = vld.sshfl [vmem:[#allocation1] sm:$0xff pattern:$0x73625140]  ;;  %v558_v3 = vsel %vm196_vm1, %v1188_v36, %v536_v44  ;;  %v566_v5 = vrot.slane %v564_v55, 7  ;;  %v579_v9 = vrot.slane %v577_v58, 7  ;;  %v554_v11 = vrot.slane %v552_v62, 2 }
  0x2a   : > { %1137 = vmatmul.msk.bf16.vlgmr.msra.gmra.mxu0 %vm306_vm11, %v293_v10  ;;  %324 = vst [vmem:[#allocation1] ss:$4 sm:$0xff] %v172_v4  ;;  %v563_v4 = vrot.slane %v561_v54, 6  ;;  %v1170_v10 = vld [vmem:[%s1377_s29 + $0xc] sm:$0x3]  ;;  %v592_v13 = vrot.slane %v590_v61, 7 }
  0x2b   : > { %327 = vst [vmem:[#allocation1 + $0x1] ss:$4 sm:$0xff] %v173_v7  ;;  %v548_v7 = vrot.slane %v546_v59, 2  ;;  %v560_v15 = vrot.slane %v558_v3, 2  ;;  %v602_v16 = vrot.slane %v600_v63, 6  ;;  %v605_v17 = vrot.slane %v603_v0, 7 }
  0x2c   : > { %330 = vst [vmem:[#allocation1 + $0x2] ss:$4 sm:$0xff] %v174_v8  ;;  %v576_v8 = vrot.slane %v574_v57, 6  ;;  %v567_v19 = vor.u32 %v566_v5, %v563_v4  ;;  %v570_v20 = vshll.u32 %v542_v2, 16  ;;  %v596_v26 = vshll.u32 %v554_v11, 16  ;;  %v1303_v54 = vld [vmem:[%s1577_s1 + $0x70] sm:$0xff] }
  0x2d   : > { %333 = vst [vmem:[#allocation1 + $0x3] ss:$4 sm:$0xff] %v175_v12  ;;  %v589_v12 = vrot.slane %v587_v60, 6  ;;  %v583_v22 = vshll.u32 %v548_v7, 16  ;;  %v606_v28 = vor.u32 %v605_v17, %v602_v16  ;;  %v609_v29 = vshll.u32 %v560_v15, 16  ;;  %v1306_v55 = vld [vmem:[%s1577_s1 + $0x88] sm:$0xff]  ;;  %941 = vmatpush.bf16.msrb.mxu3 %v1303_v54 }
  0x2e   : > { %v580_v21 = vor.u32 %v579_v9, %v576_v8  ;;  %v568_v30 = vrot.slane %v567_v19, 2  ;;  %v572_v31 = vrot.slane %v570_v20, 7  ;;  %v598_v36 = vrot.slane %v596_v26, 7  ;;  %1043 = vmatpush.bf16.msra.mxu0 %v1306_v55  ;;  %v1244_v0 = vld [vmem:[%s1377_s29 + $0x8] sm:$0x7] }
  0x2f   : > { %v593_v25 = vor.u32 %v592_v13, %v589_v12  ;;  %v585_v33 = vrot.slane %v583_v22, 7  ;;  %v611_v39 = vrot.slane %v609_v29, 7  ;;  %v1245_v3 = vld [vmem:[%s1377_s29 + $0xc] sm:$0x7]  ;;  %v1247_v9 = vld [vmem:[%s1377_s29 + $0x14] sm:$0x7] }
  0x30   : > { %v581_v32 = vrot.slane %v580_v21, 2  ;;  %v573_v41 = vsel %vm1393_vm8, %v568_v30, %v572_v31  ;;  %v824_v12 = vrot.slane %v1245_v3, 2  ;;  %v826_v17 = vrot.slane %v1247_v9, 2  ;;  %v1305_v29 = vld [vmem:[%s1577_s1 + $0x80] sm:$0xff]  ;;  %v1230_v54 = vld [vmem:[%s1377_s29 + $0x14] sm:$0x3] }
  0x31   : > { %v594_v35 = vrot.slane %v593_v25, 2 }
  0x32   : > { %v586_v44 = vsel %vm1393_vm8, %v581_v32, %v585_v33  ;;  %v835_v20 = vsel %vm192_vm0, %v1245_v3, %v824_v12  ;;  %v847_v22 = vsel %vm192_vm0, %v1247_v9, %v826_v17  ;;  %v836_v30 = vsel %vm196_vm1, %v1245_v3, %v824_v12  ;;  %1044 = vmatpush.bf16.msra.mxu0 %v1305_v29  ;;  %v1261_v3 = vld [vmem:[%s1377_s29 + $0x8] sm:$0x6] }
  0x33   : > { %v599_v48 = vsel %vm1393_vm8, %v594_v35, %v598_v36  ;;  %v864_v26 = vshrl.u32 %v835_v20, 16  ;;  %v893_v35 = vshll.u32 %v847_v22, 16  ;;  %v1227_v36 = vld [vmem:[%s1377_s29 + $0x8] sm:$0x3]  ;;  %v958_v12 = vrot.slane %v1261_v3, 2 }
  0x34   : > { %v334_v42 = vld.sshfl [vmem:[#allocation1] sm:$0xff pattern:$0x73625140] }
  0x35   : > { %432 = vst [vmem:[#allocation1] ss:$4 sm:$0xff] %v413_v38  ;;  %1146 = vmatmul.msk.bf16.vlgmr.msra.gmra.mxu1 %vm306_vm11, %v334_v42  ;;  %v607_v38 = vrot.slane %v606_v28, 2  ;;  %v1205_v42 = vld [vmem:[%s1377_s29 + $0x10] sm:$0x6]  ;;  %v867_v28 = vshll.u32 %v835_v20, 16  ;;  %v964_v20 = vsel %vm192_vm0, %v1261_v3, %v958_v12 }
  0x36   : > { %435 = vst [vmem:[#allocation1 + $0x1] ss:$4 sm:$0xff] %v417_v40  ;;  %v1204_v40 = vld [vmem:[%s1377_s29 + $0xc] sm:$0x6]  ;;  %v671_v51 = vrot.slane %v1205_v42, 2 }
  0x37   : > { %438 = vst [vmem:[#allocation1 + $0x2] ss:$4 sm:$0xff] %v421_v43  ;;  %v668_v43 = vrot.slane %v1202_v34, 2  ;;  %v670_v49 = vrot.slane %v1204_v40, 2  ;;  %v612_v50 = vsel %vm1393_vm8, %v607_v38, %v611_v39  ;;  %v848_v38 = vsel %vm196_vm1, %v1247_v9, %v826_v17  ;;  %v1263_v9 = vld [vmem:[%s1377_s29 + $0x10] sm:$0x6] }
  0x38   : > { %441 = vst [vmem:[#allocation1 + $0x3] ss:$4 sm:$0xff] %v425_v46  ;;  %v669_v46 = vrot.slane %v1203_v37, 2  ;;  %v695_v60 = vsel %vm192_vm0, %v1205_v42, %v671_v51  ;;  %v697_v61 = vsel %vm196_vm1, %v1205_v42, %v671_v51  ;;  %v838_v42 = vrot.slane %v836_v30, 2 }
  0x39   : > { %v674_v52 = vsel %vm192_vm0, %v1202_v34, %v668_v43  ;;  %v676_v53 = vsel %vm196_vm1, %v1202_v34, %v668_v43  ;;  %v688_v58 = vsel %vm192_vm0, %v1204_v40, %v670_v49  ;;  %v690_v59 = vsel %vm196_vm1, %v1204_v40, %v670_v49 }
  0x3a   : > { %v681_v56 = vsel %vm192_vm0, %v1203_v37, %v669_v46  ;;  %v683_v57 = vsel %vm196_vm1, %v1203_v37, %v669_v46  ;;  %v1206_v62 = vrot.slane %v674_v52, 9  ;;  %v1207_v63 = vrot.slane %v676_v53, 9  ;;  %v1229_v46 = vld [vmem:[%s1377_s29 + $0x10] sm:$0x3] }
  0x3b   : > { %v1209_v2 = vrot.slane %v683_v57, 9  ;;  %v1210_v4 = vrot.slane %v688_v58, 9  ;;  %v1211_v5 = vrot.slane %v690_v59, 9  ;;  %v1212_v7 = vrot.slane %v695_v60, 9 }
  0x3c   : > { %v1213_v8 = vrot.slane %v697_v61, 9  ;;  %v703_v11 = vsel %vm1435_vm2, %v1206_v62, %v1207_v63  ;;  %v890_v34 = vshrl.u32 %v847_v22, 16  ;;  %v866_v43 = vrot.slane %v864_v26, 6 }
  0x3d   : > { %v711_v16 = vsel %vm1435_vm2, %v1210_v4, %v1211_v5  ;;  %v850_v51 = vrot.slane %v848_v38, 2  ;;  %v895_v53 = vrot.slane %v893_v35, 7  ;;  %v873_v58 = vshll.u32 %v838_v42, 16 }
  0x3e   : > { %v892_v52 = vrot.slane %v890_v34, 6  ;;  %v960_v17 = vrot.slane %v1263_v9, 2 }
  0x3f   : > { %v442_v14 = vld.sshfl [vmem:[#allocation1] sm:$0xff pattern:$0x73625140]  ;;  %v899_v62 = vshll.u32 %v850_v51, 16 }
  0x40   : > { %1167 = vmatmul.msk.bf16.vlgmr.msra.gmra.mxu2 %vm306_vm11, %v442_v14  ;;  %484 = vst [vmem:[#allocation1] ss:$4 sm:$0xff] %v1168_v1  ;;  %v1208_v1 = vrot.slane %v681_v56, 9  ;;  %v896_v61 = vor.u32 %v895_v53, %v892_v52 }
  0x41   : > { %487 = vst [vmem:[#allocation1 + $0x1] ss:$4 sm:$0xff] %v1169_v6  ;;  %v1246_v6 = vld [vmem:[%s1377_s29 + $0x10] sm:$0x7] }
  0x42   : > { %490 = vst [vmem:[#allocation1 + $0x2] ss:$4 sm:$0xff] %v1170_v10  ;;  %v823_v10 = vrot.slane %v1244_v0, 2  ;;  %v707_v13 = vsel %vm1435_vm2, %v1208_v1, %v1209_v2  ;;  %v825_v14 = vrot.slane %v1246_v6, 2  ;;  %v875_v2 = vrot.slane %v873_v58, 7 }
  0x43   : > { %493 = vst [vmem:[#allocation1 + $0x3] ss:$4 sm:$0xff] %v1171_v18  ;;  %v715_v18 = vsel %vm1435_vm2, %v1212_v7, %v1213_v8  ;;  %v897_v7 = vrot.slane %v896_v61, 2  ;;  %v901_v8 = vrot.slane %v899_v62, 7 }
  0x44   : > { %v829_v19 = vsel %vm192_vm0, %v1244_v0, %v823_v10  ;;  %v841_v21 = vsel %vm192_vm0, %v1246_v6, %v825_v14  ;;  %v830_v25 = vsel %vm196_vm1, %v1244_v0, %v823_v10  ;;  %v842_v33 = vsel %vm196_vm1, %v1246_v6, %v825_v14  ;;  %v1262_v6 = vld [vmem:[%s1377_s29 + $0xc] sm:$0x6] }
  0x45   : > { %v851_v23 = vshrl.u32 %v829_v19, 16  ;;  %v854_v24 = vshll.u32 %v829_v19, 16  ;;  %v877_v31 = vshrl.u32 %v841_v21, 16  ;;  %v880_v32 = vshll.u32 %v841_v21, 16 }
  0x46   : > { %v832_v37 = vrot.slane %v830_v25, 2  ;;  %v959_v14 = vrot.slane %v1262_v6, 2  ;;  %v966_v21 = vsel %vm196_vm1, %v1261_v3, %v958_v12  ;;  %v980_v25 = vsel %vm196_vm1, %v1263_v9, %v960_v17  ;;  %v1316_v3 = vld [vmem:[%s1578_s2] ss:$0 sm:$0xff] }
  0x47   : > { %v853_v39 = vrot.slane %v851_v23, 6  ;;  %v856_v40 = vrot.slane %v854_v24, 7  ;;  %v882_v49 = vrot.slane %v880_v32, 7  ;;  %v978_v24 = vsel %vm192_vm0, %v1263_v9, %v960_v17 }
  0x48   : > { %v860_v56 = vshll.u32 %v832_v37, 16  ;;  %v971_v22 = vsel %vm192_vm0, %v1262_v6, %v959_v14  ;;  %v973_v23 = vsel %vm196_vm1, %v1262_v6, %v959_v14  ;;  %v1266_v29 = vrot.slane %v966_v21, 9 }
  0x49   : > { %v857_v55 = vor.u32 %v856_v40, %v853_v39  ;;  %v1267_v30 = vrot.slane %v971_v22, 9  ;;  %v1269_v32 = vrot.slane %v978_v24, 9 }
  0x4a   : > { %v494_v47 = vld.sshfl [vmem:[#allocation1] sm:$0xff pattern:$0x73625140]  ;;  %v862_v0 = vrot.slane %v860_v56, 7 }
  0x4b   : > { %1184 = vmatmul.msk.bf16.vlgmr.msra.gmra.mxu3 %vm306_vm11, %v494_v47  ;;  %619 = vst [vmem:[#allocation1] ss:$4 sm:$0xff] %v573_v41  ;;  %v1228_v41 = vld [vmem:[%s1377_s29 + $0xc] sm:$0x3]  ;;  %v844_v47 = vrot.slane %v842_v33, 2  ;;  %v858_v63 = vrot.slane %v857_v55, 2 }
  0x4c   : > { %622 = vst [vmem:[#allocation1 + $0x1] ss:$4 sm:$0xff] %v586_v44  ;;  %v869_v44 = vrot.slane %v867_v28, 7  ;;  %v1265_v28 = vrot.slane %v964_v20, 9  ;;  %v1270_v33 = vrot.slane %v980_v25, 9 }
  0x4d   : > { %625 = vst [vmem:[#allocation1 + $0x2] ss:$4 sm:$0xff] %v599_v48  ;;  %v879_v48 = vrot.slane %v877_v31, 6  ;;  %v886_v60 = vshll.u32 %v844_v47, 16  ;;  %v863_v10 = vsel %vm1393_vm8, %v858_v63, %v862_v0  ;;  %v1268_v31 = vrot.slane %v973_v23, 9 }
  0x4e   : > { %628 = vst [vmem:[#allocation1 + $0x3] ss:$4 sm:$0xff] %v612_v50  ;;  %v870_v57 = vor.u32 %v869_v44, %v866_v43  ;;  %v1001_v39 = vsel %vm1435_vm2, %v1269_v32, %v1270_v33 }
  0x4f   : > { %v883_v59 = vor.u32 %v882_v49, %v879_v48  ;;  %v888_v5 = vrot.slane %v886_v60, 7  ;;  %v997_v37 = vsel %vm1435_vm2, %v1267_v30, %v1268_v31 }
  0x50   : > { %v871_v1 = vrot.slane %v870_v57, 2 }
  0x51   : > { %v884_v4 = vrot.slane %v883_v59, 2 }
  0x55   : > { %v629_v15 = vld.sshfl [vmem:[#allocation1] sm:$0xff pattern:$0x73625140] }
  0x56   : > { %1201 = vmatmul.msk.bf16.vlgmr.msrb.gmra.mxu0 %vm306_vm11, %v629_v15  ;;  %722 = vst [vmem:[#allocation1] ss:$4 sm:$0xff] %v703_v11  ;;  %v1264_v11 = vld [vmem:[%s1377_s29 + $0x14] sm:$0x6]  ;;  %s1288_s29 = sshll.u32 %s1585_s13, 4 }
  0x57   : > { %725 = vst [vmem:[#allocation1 + $0x1] ss:$4 sm:$0xff] %v707_v13  ;;  %v876_v13 = vsel %vm1393_vm8, %v871_v1, %v875_v2  ;;  %v961_v19 = vrot.slane %v1264_v11, 2  ;;  %s170_s7 = scalar_lea.vmem %s1579_s3, %s1288_s29 }
  0x58   : > { %728 = vst [vmem:[#allocation1 + $0x2] ss:$4 sm:$0xff] %v711_v16  ;;  %v889_v16 = vsel %vm1393_vm8, %v884_v4, %v888_v5 }
  0x59   : > { %731 = vst [vmem:[#allocation1 + $0x3] ss:$4 sm:$0xff] %v715_v18  ;;  %v902_v18 = vsel %vm1393_vm8, %v897_v7, %v901_v8  ;;  %v985_v45 = vsel %vm192_vm0, %v1264_v11, %v961_v19  ;;  %v987_v26 = vsel %vm196_vm1, %v1264_v11, %v961_v19  ;;  %vm1059_vm0 = vcmask 293888  }
  0x5a   : > { %v1271_v34 = vrot.slane %v985_v45, 9  ;;  %v1272_v35 = vrot.slane %v987_v26, 9 }
  0x5c   : > { %v1005_v40 = vsel %vm1435_vm2, %v1271_v34, %v1272_v35 }
  0x60   : > { %v732_v50 = vld.sshfl [vmem:[#allocation1] sm:$0xff pattern:$0x73625140] }
  0x61   : > { %1226 = vmatmul.msk.bf16.vlgmr.msrb.gmra.mxu1 %vm306_vm11, %v732_v50  ;;  %774 = vst [vmem:[#allocation1] ss:$4 sm:$0xff] %v1227_v36  ;;  %v993_v36 = vsel %vm1435_vm2, %v1265_v28, %v1266_v29 }
  0x62   : > { %777 = vst [vmem:[#allocation1 + $0x1] ss:$4 sm:$0xff] %v1228_v41 }
  0x63   : > { %780 = vst [vmem:[#allocation1 + $0x2] ss:$4 sm:$0xff] %v1229_v46 }
  0x64   : > { %783 = vst [vmem:[#allocation1 + $0x3] ss:$4 sm:$0xff] %v1230_v54 }
  0x6b   : > { %v784_v15 = vld.sshfl [vmem:[#allocation1] sm:$0xff pattern:$0x73625140] }
  0x6c   : > { %1243 = vmatmul.msk.bf16.vlgmr.msrb.gmra.mxu2 %vm306_vm11, %v784_v15  ;;  %909 = vst [vmem:[#allocation1] ss:$4 sm:$0xff] %v863_v10 }
  0x6d   : > { %912 = vst [vmem:[#allocation1 + $0x1] ss:$4 sm:$0xff] %v876_v13 }
  0x6e   : > { %915 = vst [vmem:[#allocation1 + $0x2] ss:$4 sm:$0xff] %v889_v16 }
  0x6f   : > { %918 = vst [vmem:[#allocation1 + $0x3] ss:$4 sm:$0xff] %v902_v18 }
  0x76   : > { %v919_v38 = vld.sshfl [vmem:[#allocation1] sm:$0xff pattern:$0x73625140] }
  0x77   : > { %1260 = vmatmul.msk.bf16.vlgmr.msrb.gmra.mxu3 %vm306_vm11, %v919_v38  ;;  %1012 = vst [vmem:[#allocation1] ss:$4 sm:$0xff] %v993_v36 }
  0x78   : > { %1015 = vst [vmem:[#allocation1 + $0x1] ss:$4 sm:$0xff] %v997_v37 }
  0x79   : > { %1018 = vst [vmem:[#allocation1 + $0x2] ss:$4 sm:$0xff] %v1001_v39 }
  0x7a   : > { %1021 = vst [vmem:[#allocation1 + $0x3] ss:$4 sm:$0xff] %v1005_v40 }
  0x81   : > { %v1022_v41 = vld.sshfl [vmem:[#allocation1] sm:$0xff pattern:$0x73625140] }
  0x82   : > { %1285 = vmatmul.msk.bf16.vlgmr.msra.gmra.mxu0 %vm306_vm11, %v1022_v41 }
  0xa7   : > { %v318_v42 = vpop.f32.mrf.mxu0 }
  0xaf   : > { %v320_v44 = vpop.f32.mrf.mxu0 }
  0xb2   : > { %v358_v43 = vpop.f32.mrf.mxu1 }
  0xb3   : > { %v359_v47 = vadd.f32 %v358_v43, %v318_v42 }
  0xba   : > { %v360_v49 = vpop.f32.mrf.mxu1 }
  0xbb   : > { %v361_v55 = vadd.f32 %v360_v49, %v320_v44 }
  0xc3   : > { %v466_v46 = vpop.f32.mrf.mxu2 }
  0xc4   : > { %v471_v50 = vadd.f32 %v466_v46, %v359_v47 }
  0xcb   : > { %v468_v52 = vpop.f32.mrf.mxu2 }
  0xcc   : > { %v472_v59 = vadd.f32 %v468_v52, %v361_v55 }
  0xce   : > { %v518_v48 = vpop.f32.mrf.mxu3 }
  0xcf   : > { %v523_v27 = vadd.f32 %v518_v48, %v471_v50 }
  0xd3   : > { %v653_v51 = vpop.f32.mrf.mxu0 }
  0xd4   : > { %v658_v56 = vadd.f32 %v653_v51, %v523_v27 }
  0xd6   : > { %v520_v53 = vpop.f32.mrf.mxu3 }
  0xd7   : > { %v524_v61 = vadd.f32 %v520_v53, %v472_v59 }
  0xdb   : > { %v655_v58 = vpop.f32.mrf.mxu0 }
  0xdc   : > { %v659_v2 = vadd.f32 %v655_v58, %v524_v61 }
  0xde   : > { %v756_v54 = vpop.f32.mrf.mxu1 }
  0xdf   : > { %v761_v60 = vadd.f32 %v756_v54, %v658_v56 }
  0xe6   : > { %v758_v1 = vpop.f32.mrf.mxu1 }
  0xe7   : > { %v762_v6 = vadd.f32 %v758_v1, %v659_v2 }
  0xef   : > { %v808_v57 = vpop.f32.mrf.mxu2 }
  0xf0   : > { %v813_v62 = vadd.f32 %v808_v57, %v761_v60 }
  0xf7   : > { %v810_v4 = vpop.f32.mrf.mxu2 }
  0xf8   : > { %v814_v8 = vadd.f32 %v810_v4, %v762_v6 }
  0xfa   : > { %v943_v63 = vpop.f32.mrf.mxu3 }
  0xfb   : > { %v948_v0 = vadd.f32 %v943_v63, %v813_v62 }
  0xff   : > { %v1046_v5 = vpop.f32.mrf.mxu0 }
 0x100   : > { %v1051_v7 = vadd.f32 %v1046_v5, %v948_v0 }
 0x102   : > { %v1057_v9 = vadd.f32 %v1316_v3, %v1051_v7  ;;  %v945_v10 = vpop.f32.mrf.mxu3 }
 0x103   : > { %v949_v11 = vadd.f32 %v945_v10, %v814_v8 }
 0x104   : > { %1060 = vst.msk [vmem:[%s170_s7] sm:$0xff] %vm1059_vm0, %v1057_v9 }
 0x107   : > { %v1048_v12 = vpop.f32.mrf.mxu0 }
 0x108   : > { %v1052_v13 = vadd.f32 %v1048_v12, %v949_v11 }
 0x10a   : > { %v1058_v14 = vadd.f32 %v1316_v3, %v1052_v13 }
 0x10c   : > { %1061 = vst.msk [vmem:[%s170_s7 + $0x8] sm:$0xff] %vm1059_vm0, %v1058_v14 }
 0x10d PF: > { %s13_s12 = sadd.s32 1, %s1323_s12  }
 0x10e   : > { %p10_p4 = scmp.ge.s32.totalorder %s13_s12, 4  }
 0x110   :  { %12 = sbr.rel (!%p10_p4) target bundleno = 1 (0x1), region = 99 }

</bundles_post_ra>
